<compile_context>
chip_gen: v6e
topology: v6e:2x2x1
jax: 0.10.0
libtpu: 0.0.40
codegen_flags: <defaults>
</compile_context>

<pallas_src>
from functools import partial

import jax
import jax.numpy as jnp
from jax import lax
from jax.experimental import pallas as pl
from jax.experimental.pallas import tpu as pltpu

DIM_SCALE = 4          # p1 = p2 = 4  -> 16x channel expansion
LN_EPS = 1e-5          # torch.nn.LayerNorm default


def _expand_shuffle_norm_kernel(x_ref, w_ref, sdn_ref, sup_ref, supg_ref, b_ref, o_ref):
    """x_ref:   (dim, T)       channel-major slab of T = rows*W tokens (NCHW order)
    w_ref:   (dim, 16*dim)  expand weight (torch Linear weight transposed)
    sdn_ref: (16*dim, 16)   per-group averaging matrix (1/dim on block diagonal)
    sup_ref: (16, 16*dim)   per-group broadcast matrix (1s on block diagonal)
    supg_ref:(16, 16*dim)   broadcast matrix with gamma folded onto the diagonal
    b_ref:   (1, 16*dim)    LayerNorm beta tiled over the 16 groups
    o_ref:   (rows, 4, W, 4*dim) pixel-shuffled output block"""
    rows, _, W, four_dim = o_ref.shape

    # Fused NCHW->NHWC + Linear expand: contract the channel axis (lhs dim 0)
    # directly on the MXU, no explicit XLU transpose / (T, dim) temp.
    y = lax.dot_general(x_ref[...], w_ref[...],
                        dimension_numbers=(((0,), (0,)), ((), ())),
                        preferred_element_type=jnp.float32)          # (T, 16*dim)

    # Grouped LayerNorm with *narrow* (T, 16) statistics.
    mean16 = jnp.dot(y, sdn_ref[...], preferred_element_type=jnp.float32)       # (T, 16)
    centered = y - jnp.dot(mean16, sup_ref[...], preferred_element_type=jnp.float32)
    var16 = jnp.dot(centered * centered, sdn_ref[...],
                    preferred_element_type=jnp.float32)                         # (T, 16)
    inv16 = lax.rsqrt(var16 + LN_EPS)                       # EUP work at width 16 only
    scale = jnp.dot(inv16, supg_ref[...], preferred_element_type=jnp.float32)   # gamma folded
    y_norm = centered * scale + b_ref[...]                  # single full-width FMA pass

    # Fused pixel shuffle 'b h w (p1 p2 c) -> b (h p1) (w p2) c':
    #   out[row, p1, w, p2*dim + c] = y_norm[row*W + w, (4*p1 + p2)*dim + c]
    for p1 in range(DIM_SCALE):
        chunk = y_norm[:, p1 * four_dim:(p1 + 1) * four_dim]   # static lane-aligned slice
        o_ref[:, p1, :, :] = chunk.reshape(rows, W, four_dim).astype(o_ref.dtype)


def _vmem_capacity_bytes():
    try:
        return int(pltpu.get_tpu_info().vmem_capacity_bytes)
    except Exception:
        return 64 * 1024 * 1024          # conservative (v7x per-TensorCore)


def _pick_rows(B, H, W, max_tokens):
    """Pick rows-per-grid-step r such that r | H, the (dim, r*W) input block obeys the
    (8,128) rule (r*W % 128 == 0 or r == H), the output block stays within the token
    budget, and — when legal — the total grid has >= 2 steps (v7x megacore split)."""
    def legal(r):
        return (H % r == 0) and (((r * W) % 128 == 0) or (r == H))

    legal_rs = [r for r in range(1, H + 1) if legal(r)]
    fitting = [r for r in legal_rs if r * W <= max_tokens]
    if not fitting:
        # Never silently blow the budget with a giant fallback block: take the
        # smallest legal block; the caller re-checks the footprint and fails loudly.
        fitting = [min(legal_rs)]
    multi = [r for r in fitting if B * (H // r) >= 2]
    pool = multi if multi else fitting
    return max(pool)


@partial(jax.jit, static_argnames=("max_tokens",))
def final_patch_expand_x4(x_nchw, w, gamma, beta, *, max_tokens=None):
    """x_nchw: (B, C, H, W) float32.
    w: (dim, 16*dim) = torch Linear weight transposed.
    gamma, beta: (dim,) LayerNorm affine params.
    Returns (B, 4H, 4W, dim), matching the PyTorch module's output layout."""
    B, C, H, W = x_nchw.shape
    dim = C
    c16 = 16 * dim
    four_dim = 4 * dim

    # Fast-path guards: lane-dense stores need 4*dim to be a lane multiple and
    # W a sublane multiple.  TODO(synk): add a padded slow path for odd shapes.
    assert four_dim % 128 == 0, f"4*dim must be a multiple of 128, got 4*dim={four_dim}"
    assert W % 8 == 0, f"W must be a multiple of 8, got W={W}"

    vmem_cap = _vmem_capacity_bytes()
    big_vmem = vmem_cap >= 100 * 1024 * 1024
    out_target = (8 << 20) if big_vmem else (3 << 20)   # per-step output block target
    if max_tokens is None:
        max_tokens = max(W, out_target // (c16 * 4))

    r = _pick_rows(B, H, W, max_tokens)
    T = r * W
    grid = (B, H // r)

    # Per-step VMEM footprint (double-buffered blocks + ~4 live full-width f32 temps).
    out_blk = T * c16 * 4
    in_blk = T * dim * 4
    const_blk = (dim * c16 + c16 * 16 + 2 * 16 * c16 + c16) * 4
    footprint = 2 * out_blk + 2 * in_blk + 2 * const_blk + 4 * out_blk
    if footprint > vmem_cap:
        raise ValueError(
            f"FinalPatchExpand_X4 block footprint {footprint} B exceeds VMEM "
            f"capacity {vmem_cap} B (H={H}, W={W}, dim={dim}, rows={r}).")
    vmem_limit = max(32 << 20, min(footprint + (8 << 20), vmem_cap))

    # Free (metadata-only) view: NCHW rows are contiguous -> (B, dim, H*W).
    x_view = x_nchw.reshape(B, dim, H * W)

    # Constant auxiliaries for the lane-dense grouped LayerNorm (built under jit,
    # so they are constructed/uploaded once per compiled shape, not per call).
    eye16 = jnp.eye(16, dtype=jnp.float32)
    s_down = jnp.repeat(eye16, dim, axis=0) * (1.0 / dim)            # (16*dim, 16)
    s_up = jnp.repeat(eye16, dim, axis=1)                            # (16, 16*dim)
    gamma16 = jnp.tile(gamma.astype(jnp.float32), 16).reshape(1, c16)
    s_up_gamma = s_up * gamma16                                      # gamma folded in
    beta16 = jnp.tile(beta.astype(jnp.float32), 16).reshape(1, c16)

    # NOTE: the constant operands (w, s_down, s_up, s_up_gamma, beta16) are left
    # double-buffered; they are small relative to the data blocks.
    y = pl.pallas_call(
        _expand_shuffle_norm_kernel,
        out_shape=jax.ShapeDtypeStruct((B, H, 4, W, four_dim), jnp.float32),
        grid_spec=pltpu.PrefetchScalarGridSpec(
            num_scalar_prefetch=0,
            grid=grid,
            in_specs=[
                pl.BlockSpec((None, dim, T), lambda b, h: (b, 0, h)),   # NCHW slab
                pl.BlockSpec((dim, c16), lambda b, h: (0, 0)),          # expand weight
                pl.BlockSpec((c16, 16), lambda b, h: (0, 0)),           # group mean (down)
                pl.BlockSpec((16, c16), lambda b, h: (0, 0)),           # group bcast (up)
                pl.BlockSpec((16, c16), lambda b, h: (0, 0)),           # up * gamma
                pl.BlockSpec((1, c16), lambda b, h: (0, 0)),            # beta (tiled)
            ],
            out_specs=pl.BlockSpec((None, r, 4, W, four_dim),
                                   lambda b, h: (b, h, 0, 0, 0)),
        ),
        compiler_params=pltpu.CompilerParams(
            dimension_semantics=("parallel", "parallel"),
            vmem_limit_bytes=int(vmem_limit),
        ),
    )(x_view, w, s_down, s_up, s_up_gamma, beta16)

    # (B, H, 4, W, 4*dim) and (B, 4H, 4W, dim) share the same memory layout:
    # this reshape is pure metadata (no extra HBM pass).
    return y.reshape(B, DIM_SCALE * H, DIM_SCALE * W, dim)


def _reference(x_nchw, w, gamma, beta):
    """Pure-JAX reference mirroring the PyTorch forward exactly."""
    B, C, H, W = x_nchw.shape
    dim = C
    x = jnp.transpose(x_nchw, (0, 2, 3, 1))          # B,H,W,C
    x = x @ w                                        # B,H,W,16*dim
    x = x.reshape(B, H, W, DIM_SCALE, DIM_SCALE, dim)
    x = jnp.transpose(x, (0, 1, 3, 2, 4, 5)).reshape(B, H * 4, W * 4, dim)
    x = x.reshape(B, -1, dim)
    mean = x.mean(-1, keepdims=True)
    var = ((x - mean) ** 2).mean(-1, keepdims=True)
    x = (x - mean) * lax.rsqrt(var + LN_EPS) * gamma + beta
    return x.reshape(B, H * 4, W * 4, dim)


if __name__ == "__main__":
    key = jax.random.PRNGKey(0)
    B, dim, H, W = 2, 32, 16, 16

    k1, k2, k3, k4 = jax.random.split(key, 4)
    # Input tensor (NCHW, like the PyTorch module sees before its permute).
    x = jax.random.normal(k1, (B, dim, H, W), dtype=jnp.float32)
    # nn.Linear(dim, 16*dim, bias=False) weight is (16*dim, dim); we store W.T.
    w = (jax.random.normal(k2, (dim, 16 * dim), dtype=jnp.float32)
         * (1.0 / jnp.sqrt(dim)))
    # nn.LayerNorm(dim) affine params (non-trivial but deterministic).
    gamma = 1.0 + 0.1 * jax.random.normal(k3, (dim,), dtype=jnp.float32)
    beta = 0.1 * jax.random.normal(k4, (dim,), dtype=jnp.float32)

    out = jax.block_until_ready(final_patch_expand_x4(x, w, gamma, beta))
    ref = _reference(x, w, gamma, beta)

    assert out.shape == (B, H * 4, W * 4, dim), out.shape
    max_err = float(jnp.max(jnp.abs(out - ref)))
    assert max_err < 5e-4, max_err

    print("KERNEL_OK")
</pallas_src>

<mosaic_0001>
module attributes {stable_mosaic.version = 11 : i64} {
  func.func @_expand_shuffle_norm_kernel(%arg0: i32, %arg1: i32, %arg2: memref<1x32x256xf32, #tpu.memory_space<vmem>>, %arg3: memref<32x512xf32, #tpu.memory_space<vmem>>, %arg4: memref<512x16xf32, #tpu.memory_space<vmem>>, %arg5: memref<16x512xf32, #tpu.memory_space<vmem>>, %arg6: memref<16x512xf32, #tpu.memory_space<vmem>>, %arg7: memref<1x512xf32, #tpu.memory_space<vmem>>, %arg8: memref<1x16x4x16x128xf32, #tpu.memory_space<vmem>>) attributes {dimension_semantics = [#tpu.dimension_semantics<parallel>, #tpu.dimension_semantics<parallel>], iteration_bounds = array<i64: 2, 1>, scalar_prefetch = 0 : i64, scratch_operands = 0 : i64, tpu.core_type = #tpu.core_type<tc>, window_params = [{transform_indices = @transform_0, window_bounds = array<i64: 1, 32, 256>}, {pipeline_mode = #tpu.pipeline_mode<synchronous>, transform_indices = @transform_1, window_bounds = array<i64: 32, 512>}, {pipeline_mode = #tpu.pipeline_mode<synchronous>, transform_indices = @transform_2, window_bounds = array<i64: 512, 16>}, {pipeline_mode = #tpu.pipeline_mode<synchronous>, transform_indices = @transform_3, window_bounds = array<i64: 16, 512>}, {pipeline_mode = #tpu.pipeline_mode<synchronous>, transform_indices = @transform_4, window_bounds = array<i64: 16, 512>}, {pipeline_mode = #tpu.pipeline_mode<synchronous>, transform_indices = @transform_5, window_bounds = array<i64: 1, 512>}, {transform_indices = @transform_6, window_bounds = array<i64: 1, 16, 4, 16, 128>}]} {
    %c0 = arith.constant 0 : index
    %c0_0 = arith.constant 0 : index
    %c0_1 = arith.constant 0 : index
    %0 = vector.load %arg2[%c0, %c0_0, %c0_1] : memref<1x32x256xf32, #tpu.memory_space<vmem>>, vector<1x32x256xf32>
    %1 = vector.shape_cast %0 : vector<1x32x256xf32> to vector<32x256xf32>
    %c0_2 = arith.constant 0 : index
    %c0_3 = arith.constant 0 : index
    %2 = vector.load %arg3[%c0_2, %c0_3] : memref<32x512xf32, #tpu.memory_space<vmem>>, vector<32x512xf32>
    %cst = arith.constant dense<0.000000e+00> : vector<256x512xf32>
    %3 = tpu.matmul %1, %2, %cst {dimension_numbers = #tpu.dot_dimension_numbers<[0], [0], [1], [1], [0, 1, 1, 1], [], []>} : vector<32x256xf32>, vector<32x512xf32>, vector<256x512xf32> -> vector<256x512xf32>
    %c0_4 = arith.constant 0 : index
    %c0_5 = arith.constant 0 : index
    %4 = vector.load %arg4[%c0_4, %c0_5] : memref<512x16xf32, #tpu.memory_space<vmem>>, vector<512x16xf32>
    %cst_6 = arith.constant dense<0.000000e+00> : vector<256x16xf32>
    %5 = tpu.matmul %3, %4, %cst_6 {dimension_numbers = #tpu.dot_dimension_numbers<[1], [0], [0], [1], [0, 0, 1, 1], [], []>} : vector<256x512xf32>, vector<512x16xf32>, vector<256x16xf32> -> vector<256x16xf32>
    %c0_7 = arith.constant 0 : index
    %c0_8 = arith.constant 0 : index
    %6 = vector.load %arg5[%c0_7, %c0_8] : memref<16x512xf32, #tpu.memory_space<vmem>>, vector<16x512xf32>
    %cst_9 = arith.constant dense<0.000000e+00> : vector<256x512xf32>
    %7 = tpu.matmul %5, %6, %cst_9 {dimension_numbers = #tpu.dot_dimension_numbers<[1], [0], [0], [1], [0, 0, 1, 1], [], []>} : vector<256x16xf32>, vector<16x512xf32>, vector<256x512xf32> -> vector<256x512xf32>
    %8 = arith.subf %3, %7 : vector<256x512xf32>
    %9 = arith.mulf %8, %8 : vector<256x512xf32>
    %c0_10 = arith.constant 0 : index
    %c0_11 = arith.constant 0 : index
    %10 = vector.load %arg4[%c0_10, %c0_11] : memref<512x16xf32, #tpu.memory_space<vmem>>, vector<512x16xf32>
    %cst_12 = arith.constant dense<0.000000e+00> : vector<256x16xf32>
    %11 = tpu.matmul %9, %10, %cst_12 {dimension_numbers = #tpu.dot_dimension_numbers<[1], [0], [0], [1], [0, 0, 1, 1], [], []>} : vector<256x512xf32>, vector<512x16xf32>, vector<256x16xf32> -> vector<256x16xf32>
    %cst_13 = arith.constant 9.99999974E-6 : f32
    %12 = vector.broadcast %cst_13 : f32 to vector<256x16xf32>
    %13 = arith.addf %11, %12 : vector<256x16xf32>
    %14 = math.rsqrt %13 : vector<256x16xf32>
    %c0_14 = arith.constant 0 : index
    %c0_15 = arith.constant 0 : index
    %15 = vector.load %arg6[%c0_14, %c0_15] : memref<16x512xf32, #tpu.memory_space<vmem>>, vector<16x512xf32>
    %cst_16 = arith.constant dense<0.000000e+00> : vector<256x512xf32>
    %16 = tpu.matmul %14, %15, %cst_16 {dimension_numbers = #tpu.dot_dimension_numbers<[1], [0], [0], [1], [0, 0, 1, 1], [], []>} : vector<256x16xf32>, vector<16x512xf32>, vector<256x512xf32> -> vector<256x512xf32>
    %17 = arith.mulf %8, %16 : vector<256x512xf32>
    %c0_17 = arith.constant 0 : index
    %c0_18 = arith.constant 0 : index
    %18 = vector.load %arg7[%c0_17, %c0_18] : memref<1x512xf32, #tpu.memory_space<vmem>>, vector<1x512xf32>
    %19 = vector.broadcast %18 : vector<1x512xf32> to vector<256x512xf32>
    %20 = arith.addf %17, %19 : vector<256x512xf32>
    %21 = vector.extract_strided_slice %20 {offsets = [0, 0], sizes = [256, 128], strides = [1, 1]} : vector<256x512xf32> to vector<256x128xf32>
    %22 = vector.shape_cast %21 : vector<256x128xf32> to vector<16x16x128xf32>
    %c0_19 = arith.constant 0 : index
    %c0_20 = arith.constant 0 : index
    %c0_21 = arith.constant 0 : index
    %c0_22 = arith.constant 0 : index
    %c0_23 = arith.constant 0 : index
    %23 = vector.load %arg8[%c0_19, %c0_20, %c0_21, %c0_22, %c0_23] : memref<1x16x4x16x128xf32, #tpu.memory_space<vmem>>, vector<1x16x1x16x128xf32>
    %24 = vector.shape_cast %23 : vector<1x16x1x16x128xf32> to vector<16x16x128xf32>
    %25 = vector.shape_cast %22 : vector<16x16x128xf32> to vector<1x16x1x16x128xf32>
    tpu.vector_store %arg8[%c0_19, %c0_20, %c0_21, %c0_22, %c0_23], %25 {strides = array<i32>} : memref<1x16x4x16x128xf32, #tpu.memory_space<vmem>>, vector<1x16x1x16x128xf32>,
    %26 = vector.extract_strided_slice %20 {offsets = [0, 128], sizes = [256, 128], strides = [1, 1]} : vector<256x512xf32> to vector<256x128xf32>
    %27 = vector.shape_cast %26 : vector<256x128xf32> to vector<16x16x128xf32>
    %c0_24 = arith.constant 0 : index
    %c0_25 = arith.constant 0 : index
    %c1 = arith.constant 1 : index
    %c0_26 = arith.constant 0 : index
    %c0_27 = arith.constant 0 : index
    %28 = vector.load %arg8[%c0_24, %c0_25, %c1, %c0_26, %c0_27] : memref<1x16x4x16x128xf32, #tpu.memory_space<vmem>>, vector<1x16x1x16x128xf32>
    %29 = vector.shape_cast %28 : vector<1x16x1x16x128xf32> to vector<16x16x128xf32>
    %30 = vector.shape_cast %27 : vector<16x16x128xf32> to vector<1x16x1x16x128xf32>
    tpu.vector_store %arg8[%c0_24, %c0_25, %c1, %c0_26, %c0_27], %30 {strides = array<i32>} : memref<1x16x4x16x128xf32, #tpu.memory_space<vmem>>, vector<1x16x1x16x128xf32>,
    %31 = vector.extract_strided_slice %20 {offsets = [0, 256], sizes = [256, 128], strides = [1, 1]} : vector<256x512xf32> to vector<256x128xf32>
    %32 = vector.shape_cast %31 : vector<256x128xf32> to vector<16x16x128xf32>
    %c0_28 = arith.constant 0 : index
    %c0_29 = arith.constant 0 : index
    %c2 = arith.constant 2 : index
    %c0_30 = arith.constant 0 : index
    %c0_31 = arith.constant 0 : index
    %33 = vector.load %arg8[%c0_28, %c0_29, %c2, %c0_30, %c0_31] : memref<1x16x4x16x128xf32, #tpu.memory_space<vmem>>, vector<1x16x1x16x128xf32>
    %34 = vector.shape_cast %33 : vector<1x16x1x16x128xf32> to vector<16x16x128xf32>
    %35 = vector.shape_cast %32 : vector<16x16x128xf32> to vector<1x16x1x16x128xf32>
    tpu.vector_store %arg8[%c0_28, %c0_29, %c2, %c0_30, %c0_31], %35 {strides = array<i32>} : memref<1x16x4x16x128xf32, #tpu.memory_space<vmem>>, vector<1x16x1x16x128xf32>,
    %36 = vector.extract_strided_slice %20 {offsets = [0, 384], sizes = [256, 128], strides = [1, 1]} : vector<256x512xf32> to vector<256x128xf32>
    %37 = vector.shape_cast %36 : vector<256x128xf32> to vector<16x16x128xf32>
    %c0_32 = arith.constant 0 : index
    %c0_33 = arith.constant 0 : index
    %c3 = arith.constant 3 : index
    %c0_34 = arith.constant 0 : index
    %c0_35 = arith.constant 0 : index
    %38 = vector.load %arg8[%c0_32, %c0_33, %c3, %c0_34, %c0_35] : memref<1x16x4x16x128xf32, #tpu.memory_space<vmem>>, vector<1x16x1x16x128xf32>
    %39 = vector.shape_cast %38 : vector<1x16x1x16x128xf32> to vector<16x16x128xf32>
    %40 = vector.shape_cast %37 : vector<16x16x128xf32> to vector<1x16x1x16x128xf32>
    tpu.vector_store %arg8[%c0_32, %c0_33, %c3, %c0_34, %c0_35], %40 {strides = array<i32>} : memref<1x16x4x16x128xf32, #tpu.memory_space<vmem>>, vector<1x16x1x16x128xf32>,
    return
  }
  func.func @transform_0(%arg0: i32, %arg1: i32) -> (i32, i32, i32) {
    %c0_i32 = arith.constant 0 : i32
    %c0_i32_0 = arith.constant 0 : i32
    return %arg0, %c0_i32, %arg1 : i32, i32, i32
  }
  func.func @transform_1(%arg0: i32, %arg1: i32) -> (i32, i32) {
    %c0_i32 = arith.constant 0 : i32
    %c0_i32_0 = arith.constant 0 : i32
    %c0_i32_1 = arith.constant 0 : i32
    return %c0_i32, %c0_i32_0 : i32, i32
  }
  func.func @transform_2(%arg0: i32, %arg1: i32) -> (i32, i32) {
    %c0_i32 = arith.constant 0 : i32
    %c0_i32_0 = arith.constant 0 : i32
    %c0_i32_1 = arith.constant 0 : i32
    return %c0_i32, %c0_i32_0 : i32, i32
  }
  func.func @transform_3(%arg0: i32, %arg1: i32) -> (i32, i32) {
    %c0_i32 = arith.constant 0 : i32
    %c0_i32_0 = arith.constant 0 : i32
    %c0_i32_1 = arith.constant 0 : i32
    return %c0_i32, %c0_i32_0 : i32, i32
  }
  func.func @transform_4(%arg0: i32, %arg1: i32) -> (i32, i32) {
    %c0_i32 = arith.constant 0 : i32
    %c0_i32_0 = arith.constant 0 : i32
    %c0_i32_1 = arith.constant 0 : i32
    return %c0_i32, %c0_i32_0 : i32, i32
  }
  func.func @transform_5(%arg0: i32, %arg1: i32) -> (i32, i32) {
    %c0_i32 = arith.constant 0 : i32
    %c0_i32_0 = arith.constant 0 : i32
    %c0_i32_1 = arith.constant 0 : i32
    return %c0_i32, %c0_i32_0 : i32, i32
  }
  func.func @transform_6(%arg0: i32, %arg1: i32) -> (i32, i32, i32, i32, i32) {
    %c0_i32 = arith.constant 0 : i32
    %c0_i32_0 = arith.constant 0 : i32
    %c0_i32_1 = arith.constant 0 : i32
    %c0_i32_2 = arith.constant 0 : i32
    return %arg0, %arg1, %c0_i32, %c0_i32_0, %c0_i32_1 : i32, i32, i32, i32, i32
  }
}

</mosaic_0001>

<bundles_post_ra>
// kernel: tile.19
= control target key start
LH: loop header
LB: loop body
LE: loop exit
PB: predicated region body
PF: predicated region fallthrough
CT: control target
= control target key end

     0   :  { %s62_s8 = smov 96   ;;  %vm3_vm0 = vcmask 261120   ;;  %s64_s15 = smov 64   ;;  %vm9_vm1 = vcmask 1048320   ;;  %vm15_vm2 = vcmask 785920   ;;  %vm21_vm3 = vcmask 523520   ;;  %s99_s0 = inlined_call_operand.vmem [shape: f32[16,32], index: 0, kind: input, shape index: {}]   ;;  %s100_s1 = inlined_call_operand.vmem [shape: f32[1,512], index: 1, kind: output, shape index: {}]  }
   0x1   :  { %v53_v0 = vld [vmem:[%s99_s0 + $0x3] ss:$4 sm:$0xf]   ;;  %v54_v1 = vld [vmem:[%s99_s0 + $0x2] ss:$4 sm:$0xf]  }
   0x2   :  { %7 = vrot.lane.b32.xlu0 %v53_v0, %s62_s8  ;;  %v55_v2 = vld [vmem:[%s99_s0 + $0x1] ss:$4 sm:$0xf]   ;;  %v2_v3 = vld [vmem:[%s99_s0] ss:$4 sm:$0xf]  }
   0x3   :  { %s63_s0 = smov 32   ;;  %4 = vst.msk [vmem:[#allocation0] ss:$8 sm:$0xf] %vm3_vm0, %v2_v3  }
   0x4   :  { %19 = vrot.lane.b32.xlu1 %v55_v2, %s63_s0 }
   0x6   :  { %13 = vrot.lane.b32.xlu0 %v54_v1, %s64_s15 }
  0x74   :  { %v8_v4 = vpop.permute.xlu0 %7  }
  0x75   :  { %10 = vst.msk [vmem:[#allocation0] ss:$8 sm:$0xf] %vm9_vm1, %v8_v4  }
  0x76   :  { %v20_v5 = vpop.permute.xlu1 %19  }
  0x78   :  { %v14_v6 = vpop.permute.xlu0 %13  }
  0x79   :  { %16 = vst.msk [vmem:[#allocation0] ss:$8 sm:$0xf] %vm15_vm2, %v14_v6  }
  0x7a   :  { %22 = vst.msk [vmem:[#allocation0] ss:$8 sm:$0xf] %vm21_vm3, %v20_v5  }
  0x81   :  { %v27_v7 = vld [vmem:[#allocation0] sm:$0x1]  ;;  %v32_v8 = vld [vmem:[#allocation0 + $0x8] sm:$0x1]  ;;  %v38_v9 = vld [vmem:[#allocation0 + $0x10] sm:$0x1] }
  0x82   :  { %30 = vst [vmem:[%s100_s1] sm:$0x1] %v27_v7  ;;  %56 = vst [vmem:[%s100_s1 + $0x1] sm:$0x1] %v32_v8  ;;  %v45_v10 = vld [vmem:[#allocation0 + $0x18] sm:$0x1] }
  0x83   :  { %57 = vst [vmem:[%s100_s1 + $0x2] sm:$0x1] %v38_v9  ;;  %58 = vst [vmem:[%s100_s1 + $0x3] sm:$0x1] %v45_v10 }

// kernel: mul.9
= control target key start
LH: loop header
LB: loop body
LE: loop exit
PB: predicated region body
PF: predicated region fallthrough
CT: control target
= control target key end

     0   :  { %s37_s8 = smov 96   ;;  %vm3_vm0 = vcmask 261120   ;;  %s39_s15 = smov 64   ;;  %vm9_vm1 = vcmask 1048320   ;;  %vm15_vm2 = vcmask 785920   ;;  %vm21_vm3 = vcmask 523520   ;;  %s65_s0 = inlined_call_operand.vmem [shape: f32[16,32], index: 0, kind: input, shape index: {}]   ;;  %s66_s1 = inlined_call_operand.vmem [shape: f32[512], index: 1, kind: output, shape index: {}]  }
   0x1   :  { %v31_v0 = vld [vmem:[%s65_s0 + $0x3] ss:$4 sm:$0xf]   ;;  %v32_v1 = vld [vmem:[%s65_s0 + $0x2] ss:$4 sm:$0xf]  }
   0x2   :  { %7 = vrot.lane.b32.xlu0 %v31_v0, %s37_s8  ;;  %v33_v2 = vld [vmem:[%s65_s0 + $0x1] ss:$4 sm:$0xf]   ;;  %v2_v3 = vld [vmem:[%s65_s0] ss:$4 sm:$0xf]  }
   0x3   :  { %s38_s0 = smov 32   ;;  %4 = vst.msk [vmem:[#allocation0] sm:$0xf] %vm3_vm0, %v2_v3  }
   0x4   :  { %19 = vrot.lane.b32.xlu1 %v33_v2, %s38_s0 }
   0x6   :  { %13 = vrot.lane.b32.xlu0 %v32_v1, %s39_s15 }
  0x74   :  { %v8_v4 = vpop.permute.xlu0 %7  }
  0x75   :  { %10 = vst.msk [vmem:[#allocation0] sm:$0xf] %vm9_vm1, %v8_v4  }
  0x76   :  { %v20_v5 = vpop.permute.xlu1 %19  }
  0x78   :  { %v14_v6 = vpop.permute.xlu0 %13  }
  0x79   :  { %16 = vst.msk [vmem:[#allocation0] sm:$0xf] %vm15_vm2, %v14_v6  }
  0x7a   :  { %22 = vst.msk [vmem:[#allocation0] sm:$0xf] %vm21_vm3, %v20_v5  }
  0x81   :  { %v27_v7 = vld [vmem:[#allocation0] sm:$0xf] }
  0x82   :  { %30 = vst [vmem:[%s66_s1] sm:$0xf] %v27_v7 }

// kernel: tile.13
= control target key start
LH: loop header
LB: loop body
LE: loop exit
PB: predicated region body
PF: predicated region fallthrough
CT: control target
= control target key end

     0   :  { %2 = vsyncpa [#allocation1], 0  ;;  %s45_s6 = smov [#allocation0]   ;;  %s65_s0 = inlined_call_operand.hbm [shape: f32[32], index: 0, kind: input, shape index: {}]   ;;  %s66_s1 = inlined_call_operand.vmem [shape: f32[16,32], index: 1, kind: output, shape index: {}]  }
   0x1   :  { %s9_s7 = sshll.u32 %s45_s6, 4  ;;  %s10_s7 = int_to_ptr.vmem [resolvable:$true] %s9_s7 }
   0x2   :  { %s31_s8 = scalar_lea.vmem %s10_s7, 16  ;;  %s35_s9 = scalar_lea.vmem %s10_s7, 32 }
   0x3   :  { %p32_p0 = scmp.ne.s32.totalorder %s10_s7, %s31_s8  ;;  %p36_p1 = scmp.lt.s32.totalorder %s10_s7, %s10_s7 }
   0x4   :  { %p37_p2 = scmp.lt.s32.totalorder %s35_s9, %s31_s8 }
   0x6   :  { %p38_p3 = por %p37_p2, %p36_p1 }
   0x8   :  { %p39_p4 = pnand %p38_p3, %p32_p0 }
   0xa   :  { %42 = shalt.err (!%p39_p4)
}
   0xb   :  { %12 = dma.hbm_to_vmem [thread:$0]  %s65_s0, 16, %s10_s7, [#allocation1]  }
   0xc   :  { %43 = dma.done.wait [#allocation1], 16  }
   0xd   :  { %44 = vsyncadd [#allocation1], 4294967280  ;;  %v16_v0 = vld [vmem:[#allocation0] ss:$0 sm:$0xff] }
   0xe   :  { %17 = vst [vmem:[%s66_s1] sm:$0xff] %v16_v0  ;;  %21 = vst [vmem:[%s66_s1 + $0x8] sm:$0xff] %v16_v0 }
   0xf   :  { %20 = vsyncpa [#allocation1], 1 }

// kernel: final_patch_expand_x4.1
= control target key start
LH: loop header
LB: loop body
LE: loop exit
PB: predicated region body
PF: predicated region fallthrough
CT: control target
= control target key end

     0   :  { %11 = vsyncpa [#allocation3], 0  ;;  %s4572_s21 = smov 0   ;;  %s4574_s22 = smov 0   ;;  %s7030_s0 = inlined_call_operand.vmem [shape: f32[2,32,256], index: 0, kind: input, shape index: {}]   ;;  %s7031_s1 = inlined_call_operand.hbm [shape: f32[32,512], index: 1, kind: input, shape index: {}]   ;;  %s7032_s2 = inlined_call_operand.vmem [shape: f32[512,16], index: 2, kind: input, shape index: {}]   ;;  %s7033_s3 = inlined_call_operand.vmem [shape: f32[16,512], index: 3, kind: input, shape index: {}]   ;;  %s7034_s4 = inlined_call_operand.vmem [shape: f32[16,512], index: 4, kind: input, shape index: {}]   ;;  %s7035_s5 = inlined_call_operand.vmem [shape: f32[1,512], index: 5, kind: input, shape index: {}]   ;;  %s7036_s6 = inlined_call_operand.vmem [shape: f32[2,16,4,16,128], index: 6, kind: output, shape index: {}]  }
   0x1   :  { %s4576_s23 = smov 0  }
   0x2 LB: > { %s4010_s24 = sadd.s32 4294967295, %s4531_s23   ;;  %s29_s25 = sadd.s32 1, %s4527_s22  ;;  %s4531_s23 = sphi %s4576_s23, %s17_s23   ;;  %s4527_s22 = sphi %s4574_s22, %s7525_s22   ;;  %s4523_s21 = sphi %s4572_s21, %s7524_s21  }
   0x3   : > { %p31_p0 = scmp.ge.s32.totalorder %s29_s25, 2  ;;  %p4012_p1 = scmp.ge.s32.totalorder %s4531_s23, 1 }
   0x4   : > { %p195_p2 = scmp.lt.s32.totalorder %s4531_s23, 3  ;;  %p4597_p4 = scmp.eq.s32.totalorder %s4010_s24, 0 }
   0x5   : > { %s7527_s25 = smov (%p31_p0, %s29_s25), 0  ;;  %s4533_s28 = smov [#allocation2]  }
   0x6   : > { %p4593_p3 = pnand %p4012_p1, %p195_p2  ;;  %s207_s29 = sshll.u32 %s4533_s28, 4  ;;  %s208_s29 = int_to_ptr.vmem [resolvable:$true] %s207_s29 }
   0x7   : > { %s4490_s30 = scalar_lea.vmem %s208_s29, 2048  ;;  %p4498_p11 = scmp.lt.s32.totalorder %s208_s29, %s208_s29 }
   0x8   : > { %p4317_p5 = pneg %p4593_p3  ;;  %p4491_p8 = scmp.ne.s32.totalorder %s208_s29, %s4490_s30 }
   0x9   : > { %p4499_p12 = scmp.lt.s32.totalorder %s4490_s30, %s4490_s30 }
   0xa   : > { %p4318_p6 = pnand %p4597_p4, %p4317_p5 }
   0xb   : > { %p4500_p13 = por %p4499_p12, %p4498_p11 }
   0xc   : > { %p4481_p7 = pneg %p4318_p6 }
   0xe   : > { %p4493_p9 = pnand %p4491_p8, %p4481_p7 }
  0x10   : > { %p4494_p10 = pneg %p4493_p9 }
  0x12   : > { %p4501_p0 = pnand %p4500_p13, %p4494_p10 }
  0x14   : > { %4504 = shalt.err (!%p4501_p0)
}
  0x15   : > { %s4534_s7 = smov 512   ;;  %s4535_s8 = smov 32  }
  0x16   : > { %4320 = dma.hbm_to_vmem [thread:$0]  (!%p4318_p6), %s7031_s1, 2048, %s208_s29, [#allocation3], %s4534_s7, %s4534_s7, %s4535_s8  }
  0x17   : > { %248 = sbr.rel (%p4593_p3) target bundleno = 1286 (0x506), region = 44 }
  0x1c   : > { %4518 = dma.done.wait (%p4597_p4), [#allocation3], 2048  }
  0x1d   : > { %4520 = vsyncadd (%p4597_p4), [#allocation3], 4294965248  ;;  %p288_p1 = scmp.lt.s32.totalorder %s4523_s21, 1  ;;  %v7037_v0 = vmov 0.0   ;;  %v329_v5 = vld [vmem:[#allocation2 + $0x68] sm:$0xff]  ;;  %v331_v6 = vld [vmem:[#allocation2 + $0x78] sm:$0xff] }
  0x1e   : > { %557 = vmatprep.mubr.f32.mxu0 %v7037_v0  ;;  %814 = vmatprep.mubr.f32.mxu1 %v7037_v0  ;;  %v328_v7 = vld [vmem:[#allocation2 + $0x60] sm:$0xff]  ;;  %v330_v8 = vld [vmem:[#allocation2 + $0x70] sm:$0xff]  ;;  %v325_v9 = vld [vmem:[#allocation2 + $0x48] sm:$0xff]  ;;  %vm396_vm0 = vcmask 261120   ;;  %vm1529_vm1 = vcmask 130048  }
  0x1f   : > { %s7529_s21 = smov (!%p288_p1, %s4523_s21), 1  ;;  %517 = vmatprep.subr.mxu0 %v329_v5  ;;  %774 = vmatprep.subr.mxu1 %v331_v6  ;;  %v327_v10 = vld [vmem:[#allocation2 + $0x58] sm:$0xff]  ;;  %v324_v11 = vld [vmem:[#allocation2 + $0x40] sm:$0xff]  ;;  %v326_v12 = vld [vmem:[#allocation2 + $0x50] sm:$0xff] }
  0x20   : > { %s4311_s11 = sshll.u32 %s7529_s21, 6  ;;  %518 = vmatpush1.msra.mxu0 %v328_v7  ;;  %775 = vmatpush1.msra.mxu1 %v330_v8  ;;  %v321_v13 = vld [vmem:[#allocation2 + $0x28] sm:$0xff]  ;;  %v323_v15 = vld [vmem:[#allocation2 + $0x38] sm:$0xff]  ;;  %v320_v17 = vld [vmem:[#allocation2 + $0x20] sm:$0xff]  ;;  %s4312_s29 = sshll.u32 %s7529_s21, 10 }
  0x21   : > { %s4624_s14 = scalar_lea.vmem %s7030_s0, %s4311_s11  ;;  %519 = vmatprep.subr.mxu0 %v325_v9  ;;  %776 = vmatprep.subr.mxu1 %v327_v10  ;;  %v322_v18 = vld [vmem:[#allocation2 + $0x30] sm:$0xff]  ;;  %v317_v19 = vld [vmem:[#allocation2 + $0x8] sm:$0xff]  ;;  %v319_v20 = vld [vmem:[#allocation2 + $0x18] sm:$0xff]  ;;  %s6637_s8 = scalar_lea.vmem %s7036_s6, %s4312_s29 }
  0x22   : > { %v308_v1 = vld [vmem:[%s4624_s14] sm:$0xff]  ;;  %v309_v2 = vld [vmem:[%s4624_s14 + $0x8] sm:$0xff]  ;;  %v310_v3 = vld [vmem:[%s4624_s14 + $0x10] sm:$0xff]  ;;  %520 = vmatpush1.msra.mxu0 %v324_v11  ;;  %777 = vmatpush1.msra.mxu1 %v326_v12 }
  0x23   : > { %332 = vxpose.xlu0.b32.start [1/4] (short) %v308_v1, 128  ;;  %364 = vxpose.xlu1.b32.start [1/4] (short) %v309_v2, 128  ;;  %v311_v4 = vld [vmem:[%s4624_s14 + $0x18] sm:$0xff]  ;;  %v312_v14 = vld [vmem:[%s4624_s14 + $0x20] sm:$0xff]  ;;  %v313_v16 = vld [vmem:[%s4624_s14 + $0x28] sm:$0xff] }
  0x24   : > { %521 = vmatprep.subr.mxu0 %v321_v13  ;;  %778 = vmatprep.subr.mxu1 %v323_v15  ;;  %v316_v21 = vld [vmem:[#allocation2] sm:$0xff]  ;;  %v314_v22 = vld [vmem:[%s4624_s14 + $0x30] sm:$0xff]  ;;  %v315_v24 = vld [vmem:[%s4624_s14 + $0x38] sm:$0xff] }
  0x25   : > { %522 = vmatpush1.msra.mxu0 %v320_v17  ;;  %v318_v23 = vld [vmem:[#allocation2 + $0x10] sm:$0xff]  ;;  %779 = vmatpush1.msra.mxu1 %v322_v18  ;;  %v1022_v26 = vld [vmem:[%s7032_s2 + $0x78] sm:$0xff]  ;;  %v1020_v32 = vld [vmem:[%s7032_s2 + $0x68] sm:$0xff] }
  0x26   : > { %523 = vmatprep.subr.mxu0 %v317_v19  ;;  %780 = vmatprep.subr.mxu1 %v319_v20  ;;  %v1054_v27 = vld [vmem:[%s7032_s2 + $0x178] sm:$0xff]  ;;  %v1021_v29 = vld [vmem:[%s7032_s2 + $0x70] sm:$0xff]  ;;  %v1052_v33 = vld [vmem:[%s7032_s2 + $0x168] sm:$0xff] }
  0x27   : > { %333 = vxpose.xlu0.b32.cont [2/4] (short) %v310_v3, 128  ;;  %365 = vxpose.xlu1.b32.cont [2/4] (short) %v311_v4, 128  ;;  %v1053_v30 = vld [vmem:[%s7032_s2 + $0x170] sm:$0xff]  ;;  %v1019_v35 = vld [vmem:[%s7032_s2 + $0x60] sm:$0xff]  ;;  %v1018_v38 = vld [vmem:[%s7032_s2 + $0x58] sm:$0xff] }
  0x28   : > { %524 = vmatpush1.msra.mxu0 %v316_v21  ;;  %781 = vmatpush1.msra.mxu1 %v318_v23  ;;  %v1051_v36 = vld [vmem:[%s7032_s2 + $0x160] sm:$0xff]  ;;  %v1050_v39 = vld [vmem:[%s7032_s2 + $0x158] sm:$0xff]  ;;  %v1017_v41 = vld [vmem:[%s7032_s2 + $0x50] sm:$0xff] }
  0x29   : > { %1071 = vmatprep.subr.mxu0 %v7037_v0  ;;  %1296 = vmatprep.subr.mxu1 %v7037_v0  ;;  %v1049_v42 = vld [vmem:[%s7032_s2 + $0x150] sm:$0xff]  ;;  %v1016_v44 = vld [vmem:[%s7032_s2 + $0x48] sm:$0xff]  ;;  %v1015_v47 = vld [vmem:[%s7032_s2 + $0x40] sm:$0xff] }
  0x2a   : > { %v1048_v45 = vld [vmem:[%s7032_s2 + $0x148] sm:$0xff]  ;;  %v1047_v48 = vld [vmem:[%s7032_s2 + $0x140] sm:$0xff]  ;;  %v1014_v51 = vld [vmem:[%s7032_s2 + $0x38] sm:$0xff] }
  0x2b   : > { %334 = vxpose.xlu0.b32.cont [3/4] (short) %v312_v14, 128  ;;  %366 = vxpose.xlu1.b32.cont [3/4] (short) %v313_v16, 128  ;;  %v1046_v52 = vld [vmem:[%s7032_s2 + $0x138] sm:$0xff]  ;;  %v1013_v54 = vld [vmem:[%s7032_s2 + $0x30] sm:$0xff]  ;;  %v1012_v58 = vld [vmem:[%s7032_s2 + $0x28] sm:$0xff] }
  0x2c   : > { %v1045_v55 = vld [vmem:[%s7032_s2 + $0x130] sm:$0xff]  ;;  %v1044_v59 = vld [vmem:[%s7032_s2 + $0x128] sm:$0xff]  ;;  %v1011_v62 = vld [vmem:[%s7032_s2 + $0x20] sm:$0xff] }
  0x2d   : > { %v1043_v63 = vld [vmem:[%s7032_s2 + $0x120] sm:$0xff]  ;;  %v1010_v2 = vld [vmem:[%s7032_s2 + $0x18] sm:$0xff]  ;;  %v1009_v6 = vld [vmem:[%s7032_s2 + $0x10] sm:$0xff] }
  0x2e   : > { %v1042_v3 = vld [vmem:[%s7032_s2 + $0x118] sm:$0xff]  ;;  %v1041_v7 = vld [vmem:[%s7032_s2 + $0x110] sm:$0xff]  ;;  %v1008_v10 = vld [vmem:[%s7032_s2 + $0x8] sm:$0xff] }
  0x2f   : > { %335 = vxpose.xlu0.b32.end [4/4] (short) %v314_v22, 128  ;;  %367 = vxpose.xlu1.b32.end [4/4] (short) %v315_v24, 128  ;;  %v1040_v11 = vld [vmem:[%s7032_s2 + $0x108] sm:$0xff]  ;;  %v1007_v13 = vld [vmem:[%s7032_s2] sm:$0xff]  ;;  %v1038_v16 = vld [vmem:[%s7032_s2 + $0xf8] sm:$0xff] }
  0x30   : > { %v1039_v14 = vld [vmem:[%s7032_s2 + $0x100] sm:$0xff]  ;;  %v1070_v17 = vld [vmem:[%s7032_s2 + $0x1f8] sm:$0xff]  ;;  %v1037_v19 = vld [vmem:[%s7032_s2 + $0xf0] sm:$0xff] }
  0x31   : > { %v1069_v20 = vld [vmem:[%s7032_s2 + $0x1f0] sm:$0xff]  ;;  %v1036_v21 = vld [vmem:[%s7032_s2 + $0xe8] sm:$0xff]  ;;  %v1035_v24 = vld [vmem:[%s7032_s2 + $0xe0] sm:$0xff] }
  0x32   : > { %v1068_v22 = vld [vmem:[%s7032_s2 + $0x1e8] sm:$0xff] }
  0x9f   : > { %v348_v25 = vpop.trf.xlu0  ;;  %v4730_v50 = vpop.trf.xlu1 }
  0xa0   : > { %4021 = vmatmul.mubr.msk.f32.vlgmr.msra.gmra.mxu0 %vm396_vm0, %v348_v25  ;;  %4053 = vmatmul.mubr.msk.f32.vlgmr.msra.gmra.mxu1 %vm396_vm0, %v348_v25  ;;  %v1067_v25 = vld [vmem:[%s7032_s2 + $0x1e0] sm:$0xff] }
  0xa1   : > { %563 = vmatprep.mubr.f32.mxu0 %v7037_v0  ;;  %820 = vmatprep.mubr.f32.mxu1 %v7037_v0 }
  0xa2   : > { %1072 = vmatpush1.msra.mxu0 %v1022_v26  ;;  %1297 = vmatpush1.msra.mxu1 %v1054_v27  ;;  %v1034_v27 = vld [vmem:[%s7032_s2 + $0xd8] sm:$0xff] }
  0xa3   : > { %v349_v28 = vpop.trf.xlu0  ;;  %1073 = vmatprep.subr.mxu0 %v7037_v0  ;;  %1298 = vmatprep.subr.mxu1 %v7037_v0  ;;  %v4756_v56 = vpop.trf.xlu1 }
  0xa4   : > { %4022 = vmatmul.mubr.msk.f32.gmra.mxu0 %vm396_vm0, %v349_v28  ;;  %4054 = vmatmul.mubr.msk.f32.gmra.mxu1 %vm396_vm0, %v349_v28  ;;  %v1066_v28 = vld [vmem:[%s7032_s2 + $0x1d8] sm:$0xff] }
  0xa5   : > { %569 = vmatprep.mubr.f32.mxu0 %v7037_v0  ;;  %826 = vmatprep.mubr.f32.mxu1 %v7037_v0 }
  0xa6   : > { %1074 = vmatpush1.msra.mxu0 %v1021_v29  ;;  %1299 = vmatpush1.msra.mxu1 %v1053_v30  ;;  %v1033_v29 = vld [vmem:[%s7032_s2 + $0xd0] sm:$0xff] }
  0xa7   : > { %v350_v31 = vpop.trf.xlu0  ;;  %1075 = vmatprep.subr.mxu0 %v7037_v0  ;;  %1300 = vmatprep.subr.mxu1 %v7037_v0  ;;  %v4770_v61 = vpop.trf.xlu1  ;;  %v1065_v30 = vld [vmem:[%s7032_s2 + $0x1d0] sm:$0xff] }
  0xa8   : > { %4023 = vmatmul.mubr.msk.f32.gmra.mxu0 %vm396_vm0, %v350_v31  ;;  %4055 = vmatmul.mubr.msk.f32.gmra.mxu1 %vm396_vm0, %v350_v31 }
  0xa9   : > { %575 = vmatprep.mubr.f32.mxu0 %v7037_v0  ;;  %832 = vmatprep.mubr.f32.mxu1 %v7037_v0 }
  0xaa   : > { %1076 = vmatpush1.msra.mxu0 %v1020_v32  ;;  %1301 = vmatpush1.msra.mxu1 %v1052_v33  ;;  %v1032_v32 = vld [vmem:[%s7032_s2 + $0xc8] sm:$0xff] }
  0xab   : > { %v351_v34 = vpop.trf.xlu0  ;;  %1077 = vmatprep.subr.mxu0 %v7037_v0  ;;  %1302 = vmatprep.subr.mxu1 %v7037_v0  ;;  %v4796_v4 = vpop.trf.xlu1  ;;  %v1064_v33 = vld [vmem:[%s7032_s2 + $0x1c8] sm:$0xff] }
  0xac   : > { %4024 = vmatmul.mubr.msk.f32.gmra.mxu0 %vm396_vm0, %v351_v34  ;;  %4056 = vmatmul.mubr.msk.f32.gmra.mxu1 %vm396_vm0, %v351_v34 }
  0xad   : > { %581 = vmatprep.mubr.f32.mxu0 %v7037_v0  ;;  %838 = vmatprep.mubr.f32.mxu1 %v7037_v0 }
  0xae   : > { %1078 = vmatpush1.msra.mxu0 %v1019_v35  ;;  %1303 = vmatpush1.msra.mxu1 %v1051_v36  ;;  %v1031_v35 = vld [vmem:[%s7032_s2 + $0xc0] sm:$0xff] }
  0xaf   : > { %v352_v37 = vpop.trf.xlu0  ;;  %1079 = vmatprep.subr.mxu0 %v7037_v0  ;;  %1304 = vmatprep.subr.mxu1 %v7037_v0  ;;  %v4810_v9 = vpop.trf.xlu1  ;;  %v1063_v36 = vld [vmem:[%s7032_s2 + $0x1c0] sm:$0xff] }
  0xb0   : > { %4025 = vmatmul.mubr.msk.f32.gmra.mxu0 %vm396_vm0, %v352_v37  ;;  %4057 = vmatmul.mubr.msk.f32.gmra.mxu1 %vm396_vm0, %v352_v37  ;;  %v1030_v37 = vld [vmem:[%s7032_s2 + $0xb8] sm:$0xff] }
  0xb1   : > { %587 = vmatprep.mubr.f32.mxu0 %v7037_v0  ;;  %844 = vmatprep.mubr.f32.mxu1 %v7037_v0 }
  0xb2   : > { %1080 = vmatpush1.msra.mxu0 %v1018_v38  ;;  %1305 = vmatpush1.msra.mxu1 %v1050_v39  ;;  %v1062_v38 = vld [vmem:[%s7032_s2 + $0x1b8] sm:$0xff] }
  0xb3   : > { %v353_v40 = vpop.trf.xlu0  ;;  %1081 = vmatprep.subr.mxu0 %v7037_v0  ;;  %1306 = vmatprep.subr.mxu1 %v7037_v0  ;;  %v385_v15 = vpop.trf.xlu1 }
  0xb4   : > { %4026 = vmatmul.mubr.msk.f32.gmra.mxu0 %vm396_vm0, %v353_v40  ;;  %4058 = vmatmul.mubr.msk.f32.gmra.mxu1 %vm396_vm0, %v353_v40  ;;  %v1029_v40 = vld [vmem:[%s7032_s2 + $0xb0] sm:$0xff] }
  0xb5   : > { %593 = vmatprep.mubr.f32.mxu0 %v7037_v0  ;;  %850 = vmatprep.mubr.f32.mxu1 %v7037_v0 }
  0xb6   : > { %1082 = vmatpush1.msra.mxu0 %v1017_v41  ;;  %1307 = vmatpush1.msra.mxu1 %v1049_v42  ;;  %v1061_v41 = vld [vmem:[%s7032_s2 + $0x1b0] sm:$0xff] }
  0xb7   : > { %v354_v43 = vpop.trf.xlu0  ;;  %1083 = vmatprep.subr.mxu0 %v7037_v0  ;;  %1308 = vmatprep.subr.mxu1 %v7037_v0  ;;  %v386_v18 = vpop.trf.xlu1 }
  0xb8   : > { %4027 = vmatmul.mubr.msk.f32.gmra.mxu0 %vm396_vm0, %v354_v43  ;;  %4059 = vmatmul.mubr.msk.f32.gmra.mxu1 %vm396_vm0, %v354_v43  ;;  %v1028_v43 = vld [vmem:[%s7032_s2 + $0xa8] sm:$0xff] }
  0xb9   : > { %599 = vmatprep.mubr.f32.mxu0 %v7037_v0  ;;  %856 = vmatprep.mubr.f32.mxu1 %v7037_v0 }
  0xba   : > { %1084 = vmatpush1.msra.mxu0 %v1016_v44  ;;  %1309 = vmatpush1.msra.mxu1 %v1048_v45  ;;  %v1060_v44 = vld [vmem:[%s7032_s2 + $0x1a8] sm:$0xff]  ;;  %v1027_v45 = vld [vmem:[%s7032_s2 + $0xa0] sm:$0xff] }
  0xbb   : > { %v355_v46 = vpop.trf.xlu0  ;;  %1085 = vmatprep.subr.mxu0 %v7037_v0  ;;  %1310 = vmatprep.subr.mxu1 %v7037_v0  ;;  %v387_v23 = vpop.trf.xlu1 }
  0xbc   : > { %4028 = vmatmul.mubr.msk.f32.gmra.mxu0 %vm396_vm0, %v355_v46  ;;  %4060 = vmatmul.mubr.msk.f32.gmra.mxu1 %vm396_vm0, %v355_v46  ;;  %v1059_v46 = vld [vmem:[%s7032_s2 + $0x1a0] sm:$0xff] }
  0xbd   : > { %605 = vmatprep.mubr.f32.mxu0 %v7037_v0  ;;  %862 = vmatprep.mubr.f32.mxu1 %v7037_v0 }
  0xbe   : > { %1086 = vmatpush1.msra.mxu0 %v1015_v47  ;;  %1311 = vmatpush1.msra.mxu1 %v1047_v48  ;;  %v1026_v48 = vld [vmem:[%s7032_s2 + $0x98] sm:$0xff] }
  0xbf   : > { %v356_v49 = vpop.trf.xlu0  ;;  %1087 = vmatprep.subr.mxu0 %v7037_v0  ;;  %1312 = vmatprep.subr.mxu1 %v7037_v0  ;;  %v388_v26 = vpop.trf.xlu1 }
  0xc0   : > { %4029 = vmatmul.mubr.msk.f32.gmra.mxu0 %vm396_vm0, %v356_v49  ;;  %4061 = vmatmul.mubr.msk.f32.gmra.mxu1 %vm396_vm0, %v356_v49  ;;  %v1058_v49 = vld [vmem:[%s7032_s2 + $0x198] sm:$0xff] }
  0xc1   : > { %611 = vmatprep.mubr.f32.mxu0 %v7037_v0  ;;  %868 = vmatprep.mubr.f32.mxu1 %v7037_v0 }
  0xc2   : > { %1088 = vmatpush1.msra.mxu0 %v1014_v51  ;;  %1313 = vmatpush1.msra.mxu1 %v1046_v52  ;;  %v1025_v51 = vld [vmem:[%s7032_s2 + $0x90] sm:$0xff] }
  0xc3   : > { %v357_v53 = vpop.trf.xlu0  ;;  %1089 = vmatprep.subr.mxu0 %v7037_v0  ;;  %1314 = vmatprep.subr.mxu1 %v7037_v0  ;;  %v389_v31 = vpop.trf.xlu1  ;;  %v1057_v52 = vld [vmem:[%s7032_s2 + $0x190] sm:$0xff] }
  0xc4   : > { %4030 = vmatmul.mubr.msk.f32.gmra.mxu0 %vm396_vm0, %v357_v53  ;;  %4062 = vmatmul.mubr.msk.f32.gmra.mxu1 %vm396_vm0, %v357_v53  ;;  %v1024_v53 = vld [vmem:[%s7032_s2 + $0x88] sm:$0xff] }
  0xc5   : > { %617 = vmatprep.mubr.f32.mxu0 %v7037_v0  ;;  %874 = vmatprep.mubr.f32.mxu1 %v7037_v0 }
  0xc6   : > { %1090 = vmatpush1.msra.mxu0 %v1013_v54  ;;  %1315 = vmatpush1.msra.mxu1 %v1045_v55  ;;  %v1056_v54 = vld [vmem:[%s7032_s2 + $0x188] sm:$0xff] }
  0xc7   : > { %v358_v57 = vpop.trf.xlu0  ;;  %1091 = vmatprep.subr.mxu0 %v7037_v0  ;;  %1316 = vmatprep.subr.mxu1 %v7037_v0  ;;  %v390_v34 = vpop.trf.xlu1 }
  0xc8   : > { %4031 = vmatmul.mubr.msk.f32.gmra.mxu0 %vm396_vm0, %v358_v57  ;;  %4063 = vmatmul.mubr.msk.f32.gmra.mxu1 %vm396_vm0, %v358_v57  ;;  %v1055_v57 = vld [vmem:[%s7032_s2 + $0x180] sm:$0xff] }
  0xc9   : > { %623 = vmatprep.mubr.f32.mxu0 %v7037_v0  ;;  %880 = vmatprep.mubr.f32.mxu1 %v7037_v0 }
  0xca   : > { %1092 = vmatpush1.msra.mxu0 %v1012_v58  ;;  %1317 = vmatpush1.msra.mxu1 %v1044_v59  ;;  %v1526_v58 = vld [vmem:[%s7033_s3 + $0x28] sm:$0xff]  ;;  %v1528_v59 = vld [vmem:[%s7033_s3 + $0x38] sm:$0xff] }
  0xcb   : > { %v359_v60 = vpop.trf.xlu0  ;;  %1093 = vmatprep.subr.mxu0 %v7037_v0  ;;  %1318 = vmatprep.subr.mxu1 %v7037_v0  ;;  %v391_v39 = vpop.trf.xlu1 }
  0xcc   : > { %4032 = vmatmul.mubr.msk.f32.gmra.mxu0 %vm396_vm0, %v359_v60  ;;  %4064 = vmatmul.mubr.msk.f32.gmra.mxu1 %vm396_vm0, %v359_v60 }
  0xcd   : > { %629 = vmatprep.mubr.f32.mxu0 %v7037_v0  ;;  %886 = vmatprep.mubr.f32.mxu1 %v7037_v0 }
  0xce   : > { %1094 = vmatpush1.msra.mxu0 %v1011_v62  ;;  %1319 = vmatpush1.msra.mxu1 %v1043_v63 }
  0xcf   : > { %v360_v1 = vpop.trf.xlu0  ;;  %1095 = vmatprep.subr.mxu0 %v7037_v0  ;;  %1320 = vmatprep.subr.mxu1 %v7037_v0  ;;  %v392_v42 = vpop.trf.xlu1 }
  0xd0   : > { %4033 = vmatmul.mubr.msk.f32.gmra.mxu0 %vm396_vm0, %v360_v1  ;;  %4065 = vmatmul.mubr.msk.f32.gmra.mxu1 %vm396_vm0, %v360_v1  ;;  %v1525_v1 = vld [vmem:[%s7033_s3 + $0x20] sm:$0xff] }
  0xd1   : > { %635 = vmatprep.mubr.f32.mxu0 %v7037_v0  ;;  %892 = vmatprep.mubr.f32.mxu1 %v7037_v0 }
  0xd2   : > { %1096 = vmatpush1.msra.mxu0 %v1010_v2  ;;  %1321 = vmatpush1.msra.mxu1 %v1042_v3  ;;  %v1527_v2 = vld [vmem:[%s7033_s3 + $0x30] sm:$0xff]  ;;  %v1522_v3 = vld [vmem:[%s7033_s3 + $0x8] sm:$0xff] }
  0xd3   : > { %v361_v5 = vpop.trf.xlu0  ;;  %1097 = vmatprep.subr.mxu0 %v7037_v0  ;;  %1322 = vmatprep.subr.mxu1 %v7037_v0  ;;  %v393_v47 = vpop.trf.xlu1 }
  0xd4   : > { %4034 = vmatmul.mubr.msk.f32.gmra.mxu0 %vm396_vm0, %v361_v5  ;;  %4066 = vmatmul.mubr.msk.f32.gmra.mxu1 %vm396_vm0, %v361_v5 }
  0xd5   : > { %641 = vmatprep.mubr.f32.mxu0 %v7037_v0  ;;  %898 = vmatprep.mubr.f32.mxu1 %v7037_v0 }
  0xd6   : > { %1098 = vmatpush1.msra.mxu0 %v1009_v6  ;;  %1323 = vmatpush1.msra.mxu1 %v1041_v7 }
  0xd7   : > { %v362_v8 = vpop.trf.xlu0  ;;  %1099 = vmatprep.subr.mxu0 %v7037_v0  ;;  %1324 = vmatprep.subr.mxu1 %v7037_v0 }
  0xd8   : > { %4035 = vmatmul.mubr.msk.f32.gmra.mxu0 %vm396_vm0, %v362_v8  ;;  %4067 = vmatmul.mubr.msk.f32.gmra.mxu1 %vm396_vm0, %v362_v8 }
  0xd9   : > { %647 = vmatprep.mubr.f32.mxu0 %v7037_v0  ;;  %904 = vmatprep.mubr.f32.mxu1 %v7037_v0 }
  0xda   : > { %1100 = vmatpush1.msra.mxu0 %v1008_v10  ;;  %1325 = vmatpush1.msra.mxu1 %v1040_v11  ;;  %v1523_v10 = vld [vmem:[%s7033_s3 + $0x10] sm:$0xff] }
  0xdb   : > { %v363_v12 = vpop.trf.xlu0  ;;  %1101 = vmatprep.subr.mxu0 %v7037_v0  ;;  %1326 = vmatprep.subr.mxu1 %v7037_v0 }
  0xdc   : > { %4036 = vmatmul.mubr.msk.f32.gmra.mxu0 %vm396_vm0, %v363_v12  ;;  %4068 = vmatmul.mubr.msk.f32.gmra.mxu1 %vm396_vm0, %v363_v12 }
  0xdd   : > { %653 = vmatprep.mubr.f32.mxu0 %v7037_v0  ;;  %910 = vmatprep.mubr.f32.mxu1 %v7037_v0 }
  0xde   : > { %1102 = vmatpush1.msra.mxu0 %v1007_v13  ;;  %1327 = vmatpush1.msra.mxu1 %v1039_v14 }
  0xdf   : > { %1103 = vmatprep.subr.mxu0 %v7037_v0  ;;  %1328 = vmatprep.subr.mxu1 %v7037_v0 }
  0xe0   : > { %4037 = vmatmul.mubr.msk.f32.gmra.mxu0 %vm396_vm0, %v4730_v50  ;;  %4069 = vmatmul.mubr.msk.f32.gmra.mxu1 %vm396_vm0, %v4730_v50  ;;  %v394_v50 = vpop.trf.xlu1 }
  0xe1   : > { %659 = vmatprep.mubr.f32.mxu0 %v7037_v0  ;;  %916 = vmatprep.mubr.f32.mxu1 %v7037_v0 }
  0xe2   : > { %1104 = vmatpush2.msra.mxu0 %v1038_v16  ;;  %1329 = vmatpush2.msra.mxu1 %v1070_v17 }
  0xe3   : > { %1105 = vmatprep.subr.mxu0 %v7037_v0  ;;  %1330 = vmatprep.subr.mxu1 %v7037_v0 }
  0xe4   : > { %4038 = vmatmul.mubr.msk.f32.gmra.mxu0 %vm396_vm0, %v4756_v56  ;;  %4070 = vmatmul.mubr.msk.f32.gmra.mxu1 %vm396_vm0, %v4756_v56  ;;  %v395_v55 = vpop.trf.xlu1  ;;  %v1023_v56 = vld [vmem:[%s7032_s2 + $0x80] sm:$0xff] }
  0xe5   : > { %665 = vmatprep.mubr.f32.mxu0 %v7037_v0  ;;  %922 = vmatprep.mubr.f32.mxu1 %v7037_v0 }
  0xe6   : > { %1106 = vmatpush2.msra.mxu0 %v1037_v19  ;;  %1331 = vmatpush2.msra.mxu1 %v1069_v20 }
  0xe7   : > { %1107 = vmatprep.subr.mxu0 %v7037_v0  ;;  %1332 = vmatprep.subr.mxu1 %v7037_v0 }
  0xe8   : > { %4039 = vmatmul.mubr.msk.f32.gmra.mxu0 %vm396_vm0, %v4770_v61  ;;  %4071 = vmatmul.mubr.msk.f32.gmra.mxu1 %vm396_vm0, %v4770_v61 }
  0xe9   : > { %671 = vmatprep.mubr.f32.mxu0 %v7037_v0  ;;  %928 = vmatprep.mubr.f32.mxu1 %v7037_v0 }
  0xea   : > { %1108 = vmatpush2.msra.mxu0 %v1036_v21  ;;  %1333 = vmatpush2.msra.mxu1 %v1068_v22 }
  0xeb   : > { %1109 = vmatprep.subr.mxu0 %v7037_v0  ;;  %1334 = vmatprep.subr.mxu1 %v7037_v0 }
  0xec   : > { %4040 = vmatmul.mubr.msk.f32.gmra.mxu0 %vm396_vm0, %v4796_v4  ;;  %4072 = vmatmul.mubr.msk.f32.gmra.mxu1 %vm396_vm0, %v4796_v4  ;;  %v1524_v4 = vld [vmem:[%s7033_s3 + $0x18] sm:$0xff] }
  0xed   : > { %677 = vmatprep.mubr.f32.mxu0 %v7037_v0  ;;  %934 = vmatprep.mubr.f32.mxu1 %v7037_v0 }
  0xee   : > { %1110 = vmatpush2.msra.mxu0 %v1035_v24  ;;  %1335 = vmatpush2.msra.mxu1 %v1067_v25 }
  0xef   : > { %1111 = vmatprep.subr.mxu0 %v7037_v0  ;;  %1336 = vmatprep.subr.mxu1 %v7037_v0 }
  0xf0   : > { %4041 = vmatmul.mubr.msk.f32.gmra.mxu0 %vm396_vm0, %v4810_v9  ;;  %4073 = vmatmul.mubr.msk.f32.gmra.mxu1 %vm396_vm0, %v4810_v9  ;;  %v1521_v9 = vld [vmem:[%s7033_s3] sm:$0xff] }
  0xf1   : > { %683 = vmatprep.mubr.f32.mxu0 %v7037_v0  ;;  %940 = vmatprep.mubr.f32.mxu1 %v7037_v0 }
  0xf2   : > { %1112 = vmatpush2.msra.mxu0 %v1034_v27  ;;  %1337 = vmatpush2.msra.mxu1 %v1066_v28 }
  0xf3   : > { %1113 = vmatprep.subr.mxu0 %v7037_v0  ;;  %1338 = vmatprep.subr.mxu1 %v7037_v0 }
  0xf4   : > { %4042 = vmatmul.mubr.msk.f32.gmra.mxu0 %vm396_vm0, %v385_v15  ;;  %4074 = vmatmul.mubr.msk.f32.gmra.mxu1 %vm396_vm0, %v385_v15 }
  0xf5   : > { %689 = vmatprep.mubr.f32.mxu0 %v7037_v0  ;;  %946 = vmatprep.mubr.f32.mxu1 %v7037_v0 }
  0xf6   : > { %1114 = vmatpush2.msra.mxu0 %v1033_v29  ;;  %1339 = vmatpush2.msra.mxu1 %v1065_v30 }
  0xf7   : > { %1115 = vmatprep.subr.mxu0 %v7037_v0  ;;  %1340 = vmatprep.subr.mxu1 %v7037_v0 }
  0xf8   : > { %4043 = vmatmul.mubr.msk.f32.gmra.mxu0 %vm396_vm0, %v386_v18  ;;  %4075 = vmatmul.mubr.msk.f32.gmra.mxu1 %vm396_vm0, %v386_v18 }
  0xf9   : > { %695 = vmatprep.mubr.f32.mxu0 %v7037_v0  ;;  %952 = vmatprep.mubr.f32.mxu1 %v7037_v0 }
  0xfa   : > { %1116 = vmatpush2.msra.mxu0 %v1032_v32  ;;  %1341 = vmatpush2.msra.mxu1 %v1064_v33 }
  0xfb   : > { %1117 = vmatprep.subr.mxu0 %v7037_v0  ;;  %1342 = vmatprep.subr.mxu1 %v7037_v0 }
  0xfc   : > { %4044 = vmatmul.mubr.msk.f32.gmra.mxu0 %vm396_vm0, %v387_v23  ;;  %4076 = vmatmul.mubr.msk.f32.gmra.mxu1 %vm396_vm0, %v387_v23 }
  0xfd   : > { %701 = vmatprep.mubr.f32.mxu0 %v7037_v0  ;;  %958 = vmatprep.mubr.f32.mxu1 %v7037_v0 }
  0xfe   : > { %1118 = vmatpush2.msra.mxu0 %v1031_v35  ;;  %1343 = vmatpush2.msra.mxu1 %v1063_v36 }
  0xff   : > { %1119 = vmatprep.subr.mxu0 %v7037_v0  ;;  %1344 = vmatprep.subr.mxu1 %v7037_v0 }
 0x100   : > { %4045 = vmatmul.mubr.msk.f32.gmra.mxu0 %vm396_vm0, %v388_v26  ;;  %4077 = vmatmul.mubr.msk.f32.gmra.mxu1 %vm396_vm0, %v388_v26 }
 0x101   : > { %707 = vmatprep.mubr.f32.mxu0 %v7037_v0  ;;  %964 = vmatprep.mubr.f32.mxu1 %v7037_v0 }
 0x102   : > { %1120 = vmatpush2.msra.mxu0 %v1030_v37  ;;  %1345 = vmatpush2.msra.mxu1 %v1062_v38 }
 0x103   : > { %1121 = vmatprep.subr.mxu0 %v7037_v0  ;;  %1346 = vmatprep.subr.mxu1 %v7037_v0 }
 0x104   : > { %4046 = vmatmul.mubr.msk.f32.gmra.mxu0 %vm396_vm0, %v389_v31  ;;  %4078 = vmatmul.mubr.msk.f32.gmra.mxu1 %vm396_vm0, %v389_v31 }
 0x105   : > { %713 = vmatprep.mubr.f32.mxu0 %v7037_v0  ;;  %970 = vmatprep.mubr.f32.mxu1 %v7037_v0 }
 0x106   : > { %1122 = vmatpush2.msra.mxu0 %v1029_v40  ;;  %1347 = vmatpush2.msra.mxu1 %v1061_v41 }
 0x107   : > { %1123 = vmatprep.subr.mxu0 %v7037_v0  ;;  %1348 = vmatprep.subr.mxu1 %v7037_v0 }
 0x108   : > { %4047 = vmatmul.mubr.msk.f32.gmra.mxu0 %vm396_vm0, %v390_v34  ;;  %4079 = vmatmul.mubr.msk.f32.gmra.mxu1 %vm396_vm0, %v390_v34 }
 0x109   : > { %719 = vmatprep.mubr.f32.mxu0 %v7037_v0  ;;  %976 = vmatprep.mubr.f32.mxu1 %v7037_v0 }
 0x10a   : > { %1124 = vmatpush2.msra.mxu0 %v1028_v43  ;;  %1349 = vmatpush2.msra.mxu1 %v1060_v44 }
 0x10b   : > { %1125 = vmatprep.subr.mxu0 %v7037_v0  ;;  %1350 = vmatprep.subr.mxu1 %v7037_v0 }
 0x10c   : > { %4048 = vmatmul.mubr.msk.f32.gmra.mxu0 %vm396_vm0, %v391_v39  ;;  %4080 = vmatmul.mubr.msk.f32.gmra.mxu1 %vm396_vm0, %v391_v39 }
 0x10d   : > { %725 = vmatprep.mubr.f32.mxu0 %v7037_v0  ;;  %982 = vmatprep.mubr.f32.mxu1 %v7037_v0 }
 0x10e   : > { %1126 = vmatpush2.msra.mxu0 %v1027_v45  ;;  %1351 = vmatpush2.msra.mxu1 %v1059_v46 }
 0x10f   : > { %1127 = vmatprep.subr.mxu0 %v7037_v0  ;;  %1352 = vmatprep.subr.mxu1 %v7037_v0 }
 0x110   : > { %4049 = vmatmul.mubr.msk.f32.gmra.mxu0 %vm396_vm0, %v392_v42  ;;  %4081 = vmatmul.mubr.msk.f32.gmra.mxu1 %vm396_vm0, %v392_v42 }
 0x111   : > { %731 = vmatprep.mubr.f32.mxu0 %v7037_v0  ;;  %988 = vmatprep.mubr.f32.mxu1 %v7037_v0 }
 0x112   : > { %1128 = vmatpush2.msra.mxu0 %v1026_v48  ;;  %1353 = vmatpush2.msra.mxu1 %v1058_v49 }
 0x113   : > { %1129 = vmatprep.subr.mxu0 %v7037_v0  ;;  %1354 = vmatprep.subr.mxu1 %v7037_v0 }
 0x114   : > { %4050 = vmatmul.mubr.msk.f32.gmra.mxu0 %vm396_vm0, %v393_v47  ;;  %4082 = vmatmul.mubr.msk.f32.gmra.mxu1 %vm396_vm0, %v393_v47 }
 0x115   : > { %737 = vmatprep.mubr.f32.mxu0 %v7037_v0  ;;  %994 = vmatprep.mubr.f32.mxu1 %v7037_v0 }
 0x116   : > { %1130 = vmatpush2.msra.mxu0 %v1025_v51  ;;  %1355 = vmatpush2.msra.mxu1 %v1057_v52 }
 0x117   : > { %1131 = vmatprep.subr.mxu0 %v7037_v0  ;;  %1356 = vmatprep.subr.mxu1 %v7037_v0 }
 0x118   : > { %4051 = vmatmul.mubr.msk.f32.gmra.mxu0 %vm396_vm0, %v394_v50  ;;  %4083 = vmatmul.mubr.msk.f32.gmra.mxu1 %vm396_vm0, %v394_v50 }
 0x119   : > { %743 = vmatprep.mubr.f32.mxu0 %v7037_v0  ;;  %1000 = vmatprep.mubr.f32.mxu1 %v7037_v0 }
 0x11a   : > { %1132 = vmatpush2.msra.mxu0 %v1024_v53  ;;  %1357 = vmatpush2.msra.mxu1 %v1056_v54 }
 0x11b   : > { %1133 = vmatprep.subr.mxu0 %v7037_v0  ;;  %1358 = vmatprep.subr.mxu1 %v7037_v0 }
 0x11c   : > { %4052 = vmatmul.mubr.msk.f32.gmra.mxu0 %vm396_vm0, %v395_v55  ;;  %4084 = vmatmul.mubr.msk.f32.gmra.mxu1 %vm396_vm0, %v395_v55 }
 0x11d   : > { %1134 = vmatpush2.msra.mxu0 %v1023_v56  ;;  %1359 = vmatpush2.msra.mxu1 %v1055_v57 }
 0x11e   : > { %1654 = vmatprep.subr.mxu0 %v1526_v58  ;;  %1911 = vmatprep.subr.mxu1 %v1528_v59 }
 0x160   : > { %v5042_v60 = vpop.f32.mrf.mxu0  ;;  %v5044_v61 = vpop.f32.mrf.mxu1 }
 0x162   : > { %v5046_v62 = vpop.f32.mrf.mxu0  ;;  %v5048_v63 = vpop.f32.mrf.mxu1 }
 0x163   : > { %1135 = vmatprep.mubr.f32.mxu0 %v5046_v62  ;;  %1360 = vmatprep.mubr.f32.mxu1 %v5048_v63 }
 0x164   : > { %v5064_v5 = vpop.f32.mrf.mxu0  ;;  %v5066_v6 = vpop.f32.mrf.mxu1  ;;  %1136 = vmatmul.mubr.f32.vlgmr.msra.gmra.mxu0 %v5042_v60  ;;  %1361 = vmatmul.mubr.f32.vlgmr.msra.gmra.mxu1 %v5044_v61 }
 0x165   : > { %1655 = vmatpush1.msra.mxu0 %v1525_v1  ;;  %1912 = vmatpush1.msra.mxu1 %v1527_v2 }
 0x166   : > { %v5070_v7 = vpop.f32.mrf.mxu0  ;;  %v5072_v8 = vpop.f32.mrf.mxu1  ;;  %1656 = vmatprep.subr.mxu0 %v1522_v3  ;;  %1913 = vmatprep.subr.mxu1 %v1524_v4 }
 0x167   : > { %1140 = vmatprep.mubr.f32.mxu0 %v5070_v7  ;;  %1365 = vmatprep.mubr.f32.mxu1 %v5072_v8 }
 0x168   : > { %v5082_v11 = vpop.f32.mrf.mxu0  ;;  %v5084_v12 = vpop.f32.mrf.mxu1  ;;  %1141 = vmatmul.mubr.f32.gmra.mxu0 %v5064_v5  ;;  %1366 = vmatmul.mubr.f32.gmra.mxu1 %v5066_v6 }
 0x169   : > { %1657 = vmatpush1.msra.mxu0 %v1521_v9  ;;  %1914 = vmatpush1.msra.mxu1 %v1523_v10 }
 0x16a   : > { %v5088_v13 = vpop.f32.mrf.mxu0  ;;  %v5090_v14 = vpop.f32.mrf.mxu1  ;;  %2396 = vmatprep.subr.mxu0 %v7037_v0  ;;  %2621 = vmatprep.subr.mxu1 %v7037_v0 }
 0x16b   : > { %1145 = vmatprep.mubr.f32.mxu0 %v5088_v13  ;;  %1370 = vmatprep.mubr.f32.mxu1 %v5090_v14 }
 0x16c   : > { %v5096_v15 = vpop.f32.mrf.mxu0  ;;  %v5098_v16 = vpop.f32.mrf.mxu1  ;;  %1146 = vmatmul.mubr.f32.gmra.mxu0 %v5082_v11  ;;  %1371 = vmatmul.mubr.f32.gmra.mxu1 %v5084_v12 }
 0x16e   : > { %v5102_v17 = vpop.f32.mrf.mxu0  ;;  %v5104_v18 = vpop.f32.mrf.mxu1 }
 0x16f   : > { %1150 = vmatprep.mubr.f32.mxu0 %v5102_v17  ;;  %1375 = vmatprep.mubr.f32.mxu1 %v5104_v18 }
 0x170   : > { %v5108_v19 = vpop.f32.mrf.mxu0  ;;  %v5110_v20 = vpop.f32.mrf.mxu1  ;;  %1151 = vmatmul.mubr.f32.gmra.mxu0 %v5096_v15  ;;  %1376 = vmatmul.mubr.f32.gmra.mxu1 %v5098_v16 }
 0x172   : > { %v5114_v21 = vpop.f32.mrf.mxu0  ;;  %v5116_v22 = vpop.f32.mrf.mxu1 }
 0x173   : > { %1155 = vmatprep.mubr.f32.mxu0 %v5114_v21  ;;  %1380 = vmatprep.mubr.f32.mxu1 %v5116_v22 }
 0x174   : > { %v5120_v23 = vpop.f32.mrf.mxu0  ;;  %v5122_v24 = vpop.f32.mrf.mxu1  ;;  %1156 = vmatmul.mubr.f32.gmra.mxu0 %v5108_v19  ;;  %1381 = vmatmul.mubr.f32.gmra.mxu1 %v5110_v20 }
 0x176   : > { %v5126_v25 = vpop.f32.mrf.mxu0  ;;  %v5128_v26 = vpop.f32.mrf.mxu1 }
 0x177   : > { %1160 = vmatprep.mubr.f32.mxu0 %v5126_v25  ;;  %1385 = vmatprep.mubr.f32.mxu1 %v5128_v26 }
 0x178   : > { %v5132_v27 = vpop.f32.mrf.mxu0  ;;  %v5134_v28 = vpop.f32.mrf.mxu1  ;;  %1161 = vmatmul.mubr.f32.gmra.mxu0 %v5120_v23  ;;  %1386 = vmatmul.mubr.f32.gmra.mxu1 %v5122_v24 }
 0x17a   : > { %v5138_v29 = vpop.f32.mrf.mxu0  ;;  %v5140_v30 = vpop.f32.mrf.mxu1 }
 0x17b   : > { %1165 = vmatprep.mubr.f32.mxu0 %v5138_v29  ;;  %1390 = vmatprep.mubr.f32.mxu1 %v5140_v30 }
 0x17c   : > { %v5144_v31 = vpop.f32.mrf.mxu0  ;;  %v5146_v32 = vpop.f32.mrf.mxu1  ;;  %1166 = vmatmul.mubr.f32.gmra.mxu0 %v5132_v27  ;;  %1391 = vmatmul.mubr.f32.gmra.mxu1 %v5134_v28 }
 0x17e   : > { %v5150_v33 = vpop.f32.mrf.mxu0  ;;  %v5152_v34 = vpop.f32.mrf.mxu1 }
 0x17f   : > { %1170 = vmatprep.mubr.f32.mxu0 %v5150_v33  ;;  %1395 = vmatprep.mubr.f32.mxu1 %v5152_v34 }
 0x180   : > { %v5156_v35 = vpop.f32.mrf.mxu0  ;;  %v5158_v36 = vpop.f32.mrf.mxu1  ;;  %1171 = vmatmul.mubr.f32.gmra.mxu0 %v5144_v31  ;;  %1396 = vmatmul.mubr.f32.gmra.mxu1 %v5146_v32 }
 0x182   : > { %v5162_v37 = vpop.f32.mrf.mxu0  ;;  %v5164_v38 = vpop.f32.mrf.mxu1 }
 0x183   : > { %1175 = vmatprep.mubr.f32.mxu0 %v5162_v37  ;;  %1400 = vmatprep.mubr.f32.mxu1 %v5164_v38 }
 0x184   : > { %v5168_v39 = vpop.f32.mrf.mxu0  ;;  %v5170_v40 = vpop.f32.mrf.mxu1  ;;  %1176 = vmatmul.mubr.f32.gmra.mxu0 %v5156_v35  ;;  %1401 = vmatmul.mubr.f32.gmra.mxu1 %v5158_v36 }
 0x186   : > { %v5174_v41 = vpop.f32.mrf.mxu0  ;;  %v5176_v42 = vpop.f32.mrf.mxu1 }
 0x187   : > { %1180 = vmatprep.mubr.f32.mxu0 %v5174_v41  ;;  %1405 = vmatprep.mubr.f32.mxu1 %v5176_v42 }
 0x188   : > { %v5180_v43 = vpop.f32.mrf.mxu0  ;;  %v5182_v44 = vpop.f32.mrf.mxu1  ;;  %1181 = vmatmul.mubr.f32.gmra.mxu0 %v5168_v39  ;;  %1406 = vmatmul.mubr.f32.gmra.mxu1 %v5170_v40 }
 0x18a   : > { %v5186_v45 = vpop.f32.mrf.mxu0  ;;  %v5188_v46 = vpop.f32.mrf.mxu1 }
 0x18b   : > { %1185 = vmatprep.mubr.f32.mxu0 %v5186_v45  ;;  %1410 = vmatprep.mubr.f32.mxu1 %v5188_v46 }
 0x18c   : > { %v5192_v47 = vpop.f32.mrf.mxu0  ;;  %v5194_v48 = vpop.f32.mrf.mxu1  ;;  %1186 = vmatmul.mubr.f32.gmra.mxu0 %v5180_v43  ;;  %1411 = vmatmul.mubr.f32.gmra.mxu1 %v5182_v44 }
 0x18e   : > { %v5198_v49 = vpop.f32.mrf.mxu0  ;;  %v5200_v50 = vpop.f32.mrf.mxu1 }
 0x18f   : > { %1190 = vmatprep.mubr.f32.mxu0 %v5198_v49  ;;  %1415 = vmatprep.mubr.f32.mxu1 %v5200_v50 }
 0x190   : > { %v5204_v51 = vpop.f32.mrf.mxu0  ;;  %v5206_v52 = vpop.f32.mrf.mxu1  ;;  %1191 = vmatmul.mubr.f32.gmra.mxu0 %v5192_v47  ;;  %1416 = vmatmul.mubr.f32.gmra.mxu1 %v5194_v48 }
 0x192   : > { %v5210_v53 = vpop.f32.mrf.mxu0  ;;  %v5212_v54 = vpop.f32.mrf.mxu1 }
 0x193   : > { %1195 = vmatprep.mubr.f32.mxu0 %v5210_v53  ;;  %1420 = vmatprep.mubr.f32.mxu1 %v5212_v54 }
 0x194   : > { %v5216_v55 = vpop.f32.mrf.mxu0  ;;  %v5218_v56 = vpop.f32.mrf.mxu1  ;;  %1196 = vmatmul.mubr.f32.gmra.mxu0 %v5204_v51  ;;  %1421 = vmatmul.mubr.f32.gmra.mxu1 %v5206_v52 }
 0x195   : > { %7202 = vst [vmem:[#allocation5_spill] sm:$0xff] %v5216_v55  ;;  %7203 = vst [vmem:[#allocation6_spill] sm:$0xff] %v5218_v56 }
 0x196   : > { %v5222_v57 = vpop.f32.mrf.mxu0  ;;  %v5224_v58 = vpop.f32.mrf.mxu1 }
 0x197   : > { %7204 = vst [vmem:[#allocation7_spill] sm:$0xff] %v5222_v57  ;;  %7205 = vst [vmem:[#allocation8_spill] sm:$0xff] %v5224_v58  ;;  %1200 = vmatprep.mubr.f32.mxu0 %v5222_v57  ;;  %1425 = vmatprep.mubr.f32.mxu1 %v5224_v58 }
 0x198   : > { %v5228_v59 = vpop.f32.mrf.mxu0  ;;  %v5230_v1 = vpop.f32.mrf.mxu1  ;;  %1201 = vmatmul.mubr.f32.gmra.mxu0 %v5216_v55  ;;  %1426 = vmatmul.mubr.f32.gmra.mxu1 %v5218_v56 }
 0x199   : > { %7206 = vst [vmem:[#allocation9_spill] sm:$0xff] %v5228_v59  ;;  %7207 = vst [vmem:[#allocation10_spill] sm:$0xff] %v5230_v1 }
 0x19a   : > { %v5234_v2 = vpop.f32.mrf.mxu0  ;;  %v5236_v3 = vpop.f32.mrf.mxu1 }
 0x19b   : > { %7208 = vst [vmem:[#allocation11_spill] sm:$0xff] %v5234_v2  ;;  %7209 = vst [vmem:[#allocation12_spill] sm:$0xff] %v5236_v3  ;;  %1205 = vmatprep.mubr.f32.mxu0 %v5234_v2  ;;  %1430 = vmatprep.mubr.f32.mxu1 %v5236_v3 }
 0x19c   : > { %v5240_v4 = vpop.f32.mrf.mxu0  ;;  %v5242_v9 = vpop.f32.mrf.mxu1  ;;  %1206 = vmatmul.mubr.f32.gmra.mxu0 %v5228_v59  ;;  %1431 = vmatmul.mubr.f32.gmra.mxu1 %v5230_v1 }
 0x19d   : > { %7210 = vst [vmem:[#allocation13_spill] sm:$0xff] %v5240_v4  ;;  %7211 = vst [vmem:[#allocation14_spill] sm:$0xff] %v5242_v9 }
 0x19e   : > { %v5246_v10 = vpop.f32.mrf.mxu0  ;;  %v5248_v0 = vpop.f32.mrf.mxu1 }
 0x19f   : > { %7212 = vst [vmem:[#allocation15_spill] sm:$0xff] %v5246_v10  ;;  %7213 = vst [vmem:[#allocation16_spill] sm:$0xff] %v5248_v0  ;;  %1210 = vmatprep.mubr.f32.mxu0 %v5246_v10  ;;  %1435 = vmatprep.mubr.f32.mxu1 %v5248_v0 }
 0x1a0   : > { %v5252_v58 = vpop.f32.mrf.mxu0  ;;  %v5254_v2 = vpop.f32.mrf.mxu1  ;;  %1211 = vmatmul.mubr.f32.gmra.mxu0 %v5240_v4  ;;  %1436 = vmatmul.mubr.f32.gmra.mxu1 %v5242_v9 }
 0x1a1   : > { %7214 = vst [vmem:[#allocation17_spill] sm:$0xff] %v5252_v58  ;;  %7215 = vst [vmem:[#allocation18_spill] sm:$0xff] %v5254_v2 }
 0x1a2   : > { %v5258_v3 = vpop.f32.mrf.mxu0  ;;  %v5260_v59 = vpop.f32.mrf.mxu1 }
 0x1a3   : > { %7216 = vst [vmem:[#allocation19_spill] sm:$0xff] %v5258_v3  ;;  %7217 = vst [vmem:[#allocation20_spill] sm:$0xff] %v5260_v59  ;;  %1215 = vmatprep.mubr.f32.mxu0 %v5258_v3  ;;  %1440 = vmatprep.mubr.f32.mxu1 %v5260_v59 }
 0x1a4   : > { %v5264_v1 = vpop.f32.mrf.mxu0  ;;  %v5266_v10 = vpop.f32.mrf.mxu1  ;;  %1216 = vmatmul.mubr.f32.gmra.mxu0 %v5252_v58  ;;  %1441 = vmatmul.mubr.f32.gmra.mxu1 %v5254_v2 }
 0x1a5   : > { %7218 = vst [vmem:[#allocation21_spill] sm:$0xff] %v5264_v1  ;;  %7219 = vst [vmem:[#allocation22_spill] sm:$0xff] %v5266_v10 }
 0x1a6   : > { %v5270_v0 = vpop.f32.mrf.mxu0  ;;  %v5272_v4 = vpop.f32.mrf.mxu1 }
 0x1a7   : > { %7220 = vst [vmem:[#allocation23_spill] sm:$0xff] %v5270_v0  ;;  %7221 = vst [vmem:[#allocation24_spill] sm:$0xff] %v5272_v4  ;;  %1220 = vmatprep.mubr.f32.mxu0 %v5270_v0  ;;  %1445 = vmatprep.mubr.f32.mxu1 %v5272_v4 }
 0x1a8   : > { %v5276_v9 = vpop.f32.mrf.mxu0  ;;  %v5278_v3 = vpop.f32.mrf.mxu1  ;;  %1221 = vmatmul.mubr.f32.gmra.mxu0 %v5264_v1  ;;  %1446 = vmatmul.mubr.f32.gmra.mxu1 %v5266_v10 }
 0x1a9   : > { %7222 = vst [vmem:[#allocation25_spill] sm:$0xff] %v5276_v9  ;;  %7223 = vst [vmem:[#allocation26_spill] sm:$0xff] %v5278_v3 }
 0x1aa   : > { %v5282_v59 = vpop.f32.mrf.mxu0  ;;  %v5284_v58 = vpop.f32.mrf.mxu1 }
 0x1ab   : > { %7224 = vst [vmem:[#allocation27_spill] sm:$0xff] %v5282_v59  ;;  %7225 = vst [vmem:[#allocation28_spill] sm:$0xff] %v5284_v58  ;;  %1225 = vmatprep.mubr.f32.mxu0 %v5282_v59  ;;  %1450 = vmatprep.mubr.f32.mxu1 %v5284_v58 }
 0x1ac   : > { %v5288_v2 = vpop.f32.mrf.mxu0  ;;  %v5290_v0 = vpop.f32.mrf.mxu1  ;;  %1226 = vmatmul.mubr.f32.gmra.mxu0 %v5276_v9  ;;  %1451 = vmatmul.mubr.f32.gmra.mxu1 %v5278_v3 }
 0x1ad   : > { %7226 = vst [vmem:[#allocation29_spill] sm:$0xff] %v5288_v2  ;;  %7227 = vst [vmem:[#allocation30_spill] sm:$0xff] %v5290_v0 }
 0x1ae   : > { %v5294_v4 = vpop.f32.mrf.mxu0  ;;  %v5296_v1 = vpop.f32.mrf.mxu1 }
 0x1af   : > { %7228 = vst [vmem:[#allocation31_spill] sm:$0xff] %v5294_v4  ;;  %7229 = vst [vmem:[#allocation32_spill] sm:$0xff] %v5296_v1  ;;  %1230 = vmatprep.mubr.f32.mxu0 %v5294_v4  ;;  %1455 = vmatprep.mubr.f32.mxu1 %v5296_v1 }
 0x1b0   : > { %v5300_v10 = vpop.f32.mrf.mxu0  ;;  %v5302_v59 = vpop.f32.mrf.mxu1  ;;  %1231 = vmatmul.mubr.f32.gmra.mxu0 %v5288_v2  ;;  %1456 = vmatmul.mubr.f32.gmra.mxu1 %v5290_v0 }
 0x1b1   : > { %7230 = vst [vmem:[#allocation33_spill] sm:$0xff] %v5300_v10  ;;  %7231 = vst [vmem:[#allocation34_spill] sm:$0xff] %v5302_v59 }
 0x1b2   : > { %v5306_v58 = vpop.f32.mrf.mxu0  ;;  %v5308_v9 = vpop.f32.mrf.mxu1 }
 0x1b3   : > { %7232 = vst [vmem:[#allocation35_spill] sm:$0xff] %v5306_v58  ;;  %7233 = vst [vmem:[#allocation36_spill] sm:$0xff] %v5308_v9  ;;  %1235 = vmatprep.mubr.f32.mxu0 %v5306_v58  ;;  %1460 = vmatprep.mubr.f32.mxu1 %v5308_v9 }
 0x1b4   : > { %v5312_v3 = vpop.f32.mrf.mxu0  ;;  %v5314_v4 = vpop.f32.mrf.mxu1  ;;  %1236 = vmatmul.mubr.f32.gmra.mxu0 %v5300_v10  ;;  %1461 = vmatmul.mubr.f32.gmra.mxu1 %v5302_v59 }
 0x1b5   : > { %7234 = vst [vmem:[#allocation37_spill] sm:$0xff] %v5312_v3  ;;  %7235 = vst [vmem:[#allocation38_spill] sm:$0xff] %v5314_v4 }
 0x1b6   : > { %v5318_v1 = vpop.f32.mrf.mxu0  ;;  %v5320_v2 = vpop.f32.mrf.mxu1 }
 0x1b7   : > { %7236 = vst [vmem:[#allocation39_spill] sm:$0xff] %v5318_v1  ;;  %7237 = vst [vmem:[#allocation40_spill] sm:$0xff] %v5320_v2  ;;  %1240 = vmatprep.mubr.f32.mxu0 %v5318_v1  ;;  %1465 = vmatprep.mubr.f32.mxu1 %v5320_v2 }
 0x1b8   : > { %v5324_v0 = vpop.f32.mrf.mxu0  ;;  %v5326_v58 = vpop.f32.mrf.mxu1  ;;  %1241 = vmatmul.mubr.f32.gmra.mxu0 %v5312_v3  ;;  %1466 = vmatmul.mubr.f32.gmra.mxu1 %v5314_v4 }
 0x1b9   : > { %7238 = vst [vmem:[#allocation41_spill] sm:$0xff] %v5324_v0  ;;  %7239 = vst [vmem:[#allocation42_spill] sm:$0xff] %v5326_v58 }
 0x1ba   : > { %v5330_v9 = vpop.f32.mrf.mxu0  ;;  %v5332_v10 = vpop.f32.mrf.mxu1 }
 0x1bb   : > { %7240 = vst [vmem:[#allocation43_spill] sm:$0xff] %v5330_v9  ;;  %7241 = vst [vmem:[#allocation44_spill] sm:$0xff] %v5332_v10  ;;  %1245 = vmatprep.mubr.f32.mxu0 %v5330_v9  ;;  %1470 = vmatprep.mubr.f32.mxu1 %v5332_v10 }
 0x1bc   : > { %v5336_v59 = vpop.f32.mrf.mxu0  ;;  %v5338_v1 = vpop.f32.mrf.mxu1  ;;  %1246 = vmatmul.mubr.f32.gmra.mxu0 %v5324_v0  ;;  %1471 = vmatmul.mubr.f32.gmra.mxu1 %v5326_v58 }
 0x1bd   : > { %7242 = vst [vmem:[#allocation45_spill] sm:$0xff] %v5336_v59  ;;  %7243 = vst [vmem:[#allocation46_spill] sm:$0xff] %v5338_v1 }
 0x1be   : > { %v5342_v2 = vpop.f32.mrf.mxu0  ;;  %v5344_v3 = vpop.f32.mrf.mxu1 }
 0x1bf   : > { %7244 = vst [vmem:[#allocation47_spill] sm:$0xff] %v5342_v2  ;;  %7245 = vst [vmem:[#allocation48_spill] sm:$0xff] %v5344_v3  ;;  %1250 = vmatprep.mubr.f32.mxu0 %v5342_v2  ;;  %1475 = vmatprep.mubr.f32.mxu1 %v5344_v3 }
 0x1c0   : > { %v5348_v4 = vpop.f32.mrf.mxu0  ;;  %v5350_v9 = vpop.f32.mrf.mxu1  ;;  %1251 = vmatmul.mubr.f32.gmra.mxu0 %v5336_v59  ;;  %1476 = vmatmul.mubr.f32.gmra.mxu1 %v5338_v1 }
 0x1c1   : > { %7246 = vst [vmem:[#allocation49_spill] sm:$0xff] %v5348_v4  ;;  %7247 = vst [vmem:[#allocation50_spill] sm:$0xff] %v5350_v9 }
 0x1c2   : > { %v5354_v10 = vpop.f32.mrf.mxu0  ;;  %v5356_v0 = vpop.f32.mrf.mxu1 }
 0x1c3   : > { %7248 = vst [vmem:[#allocation51_spill] sm:$0xff] %v5354_v10  ;;  %7249 = vst [vmem:[#allocation52_spill] sm:$0xff] %v5356_v0  ;;  %1255 = vmatprep.mubr.f32.mxu0 %v5354_v10  ;;  %1480 = vmatprep.mubr.f32.mxu1 %v5356_v0 }
 0x1c4   : > { %v5360_v58 = vpop.f32.mrf.mxu0  ;;  %v5362_v2 = vpop.f32.mrf.mxu1  ;;  %1256 = vmatmul.mubr.f32.gmra.mxu0 %v5348_v4  ;;  %1481 = vmatmul.mubr.f32.gmra.mxu1 %v5350_v9 }
 0x1c5   : > { %7250 = vst [vmem:[#allocation53_spill] sm:$0xff] %v5360_v58  ;;  %7251 = vst [vmem:[#allocation54_spill] sm:$0xff] %v5362_v2 }
 0x1c6   : > { %v5366_v3 = vpop.f32.mrf.mxu0  ;;  %v5368_v59 = vpop.f32.mrf.mxu1 }
 0x1c7   : > { %7252 = vst [vmem:[#allocation55_spill] sm:$0xff] %v5366_v3  ;;  %7253 = vst [vmem:[#allocation56_spill] sm:$0xff] %v5368_v59  ;;  %1260 = vmatprep.mubr.f32.mxu0 %v5366_v3  ;;  %1485 = vmatprep.mubr.f32.mxu1 %v5368_v59 }
 0x1c8   : > { %v5372_v1 = vpop.f32.mrf.mxu0  ;;  %v5374_v10 = vpop.f32.mrf.mxu1  ;;  %1261 = vmatmul.mubr.f32.gmra.mxu0 %v5360_v58  ;;  %1486 = vmatmul.mubr.f32.gmra.mxu1 %v5362_v2 }
 0x1c9   : > { %7254 = vst [vmem:[#allocation57_spill] sm:$0xff] %v5372_v1  ;;  %7255 = vst [vmem:[#allocation58_spill] sm:$0xff] %v5374_v10 }
 0x1ca   : > { %v5378_v0 = vpop.f32.mrf.mxu0  ;;  %v5380_v4 = vpop.f32.mrf.mxu1 }
 0x1cb   : > { %7256 = vst [vmem:[#allocation59_spill] sm:$0xff] %v5378_v0  ;;  %7257 = vst [vmem:[#allocation60_spill] sm:$0xff] %v5380_v4  ;;  %1265 = vmatprep.mubr.f32.mxu0 %v5378_v0  ;;  %1490 = vmatprep.mubr.f32.mxu1 %v5380_v4 }
 0x1cc   : > { %v5384_v9 = vpop.f32.mrf.mxu0  ;;  %v5386_v3 = vpop.f32.mrf.mxu1  ;;  %1266 = vmatmul.mubr.f32.gmra.mxu0 %v5372_v1  ;;  %1491 = vmatmul.mubr.f32.gmra.mxu1 %v5374_v10 }
 0x1cd   : > { %7258 = vst [vmem:[#allocation61_spill] sm:$0xff] %v5384_v9  ;;  %7259 = vst [vmem:[#allocation62_spill] sm:$0xff] %v5386_v3 }
 0x1ce   : > { %v5390_v59 = vpop.f32.mrf.mxu0  ;;  %v5392_v58 = vpop.f32.mrf.mxu1 }
 0x1cf   : > { %7260 = vst [vmem:[#allocation63_spill] sm:$0xff] %v5390_v59  ;;  %7261 = vst [vmem:[#allocation64_spill] sm:$0xff] %v5392_v58  ;;  %1270 = vmatprep.mubr.f32.mxu0 %v5390_v59  ;;  %1495 = vmatprep.mubr.f32.mxu1 %v5392_v58 }
 0x1d0   : > { %v5396_v2 = vpop.f32.mrf.mxu0  ;;  %v5398_v0 = vpop.f32.mrf.mxu1  ;;  %1271 = vmatmul.mubr.f32.gmra.mxu0 %v5384_v9  ;;  %1496 = vmatmul.mubr.f32.gmra.mxu1 %v5386_v3 }
 0x1d1   : > { %7262 = vst [vmem:[#allocation65_spill] sm:$0xff] %v5396_v2  ;;  %7263 = vst [vmem:[#allocation66_spill] sm:$0xff] %v5398_v0 }
 0x1d2   : > { %v5402_v4 = vpop.f32.mrf.mxu0  ;;  %v5404_v1 = vpop.f32.mrf.mxu1 }
 0x1d3   : > { %7264 = vst [vmem:[#allocation67_spill] sm:$0xff] %v5402_v4  ;;  %7265 = vst [vmem:[#allocation68_spill] sm:$0xff] %v5404_v1  ;;  %1275 = vmatprep.mubr.f32.mxu0 %v5402_v4  ;;  %1500 = vmatprep.mubr.f32.mxu1 %v5404_v1 }
 0x1d4   : > { %v5408_v10 = vpop.f32.mrf.mxu0  ;;  %v5410_v59 = vpop.f32.mrf.mxu1  ;;  %1276 = vmatmul.mubr.f32.gmra.mxu0 %v5396_v2  ;;  %1501 = vmatmul.mubr.f32.gmra.mxu1 %v5398_v0 }
 0x1d5   : > { %7266 = vst [vmem:[#allocation69_spill] sm:$0xff] %v5408_v10  ;;  %7267 = vst [vmem:[#allocation70_spill] sm:$0xff] %v5410_v59 }
 0x1d6   : > { %v5414_v58 = vpop.f32.mrf.mxu0  ;;  %v5416_v9 = vpop.f32.mrf.mxu1 }
 0x1d7   : > { %7268 = vst [vmem:[#allocation71_spill] sm:$0xff] %v5414_v58  ;;  %7269 = vst [vmem:[#allocation72_spill] sm:$0xff] %v5416_v9  ;;  %1280 = vmatprep.mubr.f32.mxu0 %v5414_v58  ;;  %1505 = vmatprep.mubr.f32.mxu1 %v5416_v9 }
 0x1d8   : > { %v5420_v3 = vpop.f32.mrf.mxu0  ;;  %v5422_v4 = vpop.f32.mrf.mxu1  ;;  %1281 = vmatmul.mubr.f32.gmra.mxu0 %v5408_v10  ;;  %1506 = vmatmul.mubr.f32.gmra.mxu1 %v5410_v59 }
 0x1d9   : > { %7270 = vst [vmem:[#allocation73_spill] sm:$0xff] %v5420_v3  ;;  %7271 = vst [vmem:[#allocation74_spill] sm:$0xff] %v5422_v4 }
 0x1da   : > { %v5426_v1 = vpop.f32.mrf.mxu0  ;;  %v5428_v2 = vpop.f32.mrf.mxu1 }
 0x1db   : > { %7272 = vst [vmem:[#allocation75_spill] sm:$0xff] %v5426_v1  ;;  %7273 = vst [vmem:[#allocation76_spill] sm:$0xff] %v5428_v2  ;;  %1285 = vmatprep.mubr.f32.mxu0 %v5426_v1  ;;  %1510 = vmatprep.mubr.f32.mxu1 %v5428_v2  ;;  %v7278_v2 = vmov 0.0  }
 0x1dc   : > { %v5432_v0 = vpop.f32.mrf.mxu0  ;;  %v5434_v58 = vpop.f32.mrf.mxu1  ;;  %1286 = vmatmul.mubr.f32.gmra.mxu0 %v5420_v3  ;;  %1511 = vmatmul.mubr.f32.gmra.mxu1 %v5422_v4 }
 0x1dd   : > { %7274 = vst [vmem:[#allocation77_spill] sm:$0xff] %v5432_v0  ;;  %7275 = vst [vmem:[#allocation78_spill] sm:$0xff] %v5434_v58 }
 0x1de   : > { %v5438_v9 = vpop.f32.mrf.mxu0  ;;  %v5440_v10 = vpop.f32.mrf.mxu1 }
 0x1df   : > { %7276 = vst [vmem:[#allocation79_spill] sm:$0xff] %v5438_v9  ;;  %7277 = vst [vmem:[#allocation80_spill] sm:$0xff] %v5440_v10  ;;  %1290 = vmatprep.mubr.f32.mxu0 %v5438_v9  ;;  %1515 = vmatprep.mubr.f32.mxu1 %v5440_v10 }
 0x1e0   : > { %1291 = vmatmul.mubr.f32.gmra.mxu0 %v5432_v0  ;;  %1516 = vmatmul.mubr.f32.gmra.mxu1 %v5434_v58  ;;  %v4415_v0 = vld [vmem:[%s7032_s2 + $0x78] sm:$0xff] }
 0x1e1   : > { %1690 = vmatprep.mubr.f32.mxu0 %v7278_v2  ;;  %1947 = vmatprep.mubr.f32.mxu1 %v7278_v2 }
 0x224   : > { %v1137_v1 = vpop.f32.mrf.mxu0  ;;  %v1362_v3 = vpop.f32.mrf.mxu1 }
 0x225   : > { %v1363_v4 = vadd.f32 %v1362_v3, %v1137_v1 }
 0x226   : > { %v1139_v59 = vpop.f32.mrf.mxu0  ;;  %v1364_v57 = vpop.f32.mrf.mxu1 }
 0x227   : > { %4085 = vmatmul.mubr.msk.f32.vlgmr.msra.gmra.mxu0 %vm1529_vm1, %v1363_v4  ;;  %4117 = vmatmul.mubr.msk.f32.vlgmr.msra.gmra.mxu1 %vm1529_vm1, %v1363_v4  ;;  %v4416_v57 = vld [vmem:[%s7032_s2 + $0x178] sm:$0xff] }
 0x228   : > { %v1142_v9 = vpop.f32.mrf.mxu0  ;;  %v1367_v10 = vpop.f32.mrf.mxu1  ;;  %1696 = vmatprep.mubr.f32.mxu0 %v7278_v2  ;;  %1953 = vmatprep.mubr.f32.mxu1 %v7278_v2 }
 0x229   : > { %v1368_v58 = vadd.f32 %v1367_v10, %v1142_v9  ;;  %2397 = vmatpush1.msra.mxu0 %v4415_v0  ;;  %2622 = vmatpush1.msra.mxu1 %v4416_v57  ;;  %v4417_v9 = vld [vmem:[%s7032_s2 + $0x70] sm:$0xff] }
 0x22a   : > { %v1144_v59 = vpop.f32.mrf.mxu0  ;;  %v1369_v1 = vpop.f32.mrf.mxu1  ;;  %2398 = vmatprep.subr.mxu0 %v7278_v2  ;;  %2623 = vmatprep.subr.mxu1 %v7278_v2  ;;  %v4418_v10 = vld [vmem:[%s7032_s2 + $0x170] sm:$0xff] }
 0x22b   : > { %4086 = vmatmul.mubr.msk.f32.gmra.mxu0 %vm1529_vm1, %v1368_v58  ;;  %4118 = vmatmul.mubr.msk.f32.gmra.mxu1 %vm1529_vm1, %v1368_v58 }
 0x22c   : > { %v1147_v3 = vpop.f32.mrf.mxu0  ;;  %v1372_v4 = vpop.f32.mrf.mxu1  ;;  %1702 = vmatprep.mubr.f32.mxu0 %v7278_v2  ;;  %1959 = vmatprep.mubr.f32.mxu1 %v7278_v2 }
 0x22d   : > { %v1373_v0 = vadd.f32 %v1372_v4, %v1147_v3  ;;  %2399 = vmatpush1.msra.mxu0 %v4417_v9  ;;  %2624 = vmatpush1.msra.mxu1 %v4418_v10  ;;  %v4419_v4 = vld [vmem:[%s7032_s2 + $0x68] sm:$0xff] }
 0x22e   : > { %v1149_v57 = vpop.f32.mrf.mxu0  ;;  %v1374_v59 = vpop.f32.mrf.mxu1  ;;  %2400 = vmatprep.subr.mxu0 %v7278_v2  ;;  %2625 = vmatprep.subr.mxu1 %v7278_v2  ;;  %v4420_v9 = vld [vmem:[%s7032_s2 + $0x168] sm:$0xff] }
 0x22f   : > { %4087 = vmatmul.mubr.msk.f32.gmra.mxu0 %vm1529_vm1, %v1373_v0  ;;  %4119 = vmatmul.mubr.msk.f32.gmra.mxu1 %vm1529_vm1, %v1373_v0 }
 0x230   : > { %v1152_v58 = vpop.f32.mrf.mxu0  ;;  %v1377_v1 = vpop.f32.mrf.mxu1  ;;  %1708 = vmatprep.mubr.f32.mxu0 %v7278_v2  ;;  %1965 = vmatprep.mubr.f32.mxu1 %v7278_v2 }
 0x231   : > { %v1378_v3 = vadd.f32 %v1377_v1, %v1152_v58  ;;  %2401 = vmatpush1.msra.mxu0 %v4419_v4  ;;  %2626 = vmatpush1.msra.mxu1 %v4420_v9  ;;  %v4421_v1 = vld [vmem:[%s7032_s2 + $0x60] sm:$0xff] }
 0x232   : > { %v1154_v10 = vpop.f32.mrf.mxu0  ;;  %v1379_v57 = vpop.f32.mrf.mxu1  ;;  %2402 = vmatprep.subr.mxu0 %v7278_v2  ;;  %2627 = vmatprep.subr.mxu1 %v7278_v2  ;;  %v4422_v4 = vld [vmem:[%s7032_s2 + $0x160] sm:$0xff] }
 0x233   : > { %4088 = vmatmul.mubr.msk.f32.gmra.mxu0 %vm1529_vm1, %v1378_v3  ;;  %4120 = vmatmul.mubr.msk.f32.gmra.mxu1 %vm1529_vm1, %v1378_v3 }
 0x234   : > { %v1157_v0 = vpop.f32.mrf.mxu0  ;;  %v1382_v59 = vpop.f32.mrf.mxu1  ;;  %1714 = vmatprep.mubr.f32.mxu0 %v7278_v2  ;;  %1971 = vmatprep.mubr.f32.mxu1 %v7278_v2 }
 0x235   : > { %v1383_v58 = vadd.f32 %v1382_v59, %v1157_v0  ;;  %2403 = vmatpush1.msra.mxu0 %v4421_v1  ;;  %2628 = vmatpush1.msra.mxu1 %v4422_v4  ;;  %v4423_v59 = vld [vmem:[%s7032_s2 + $0x58] sm:$0xff] }
 0x236   : > { %v1159_v9 = vpop.f32.mrf.mxu0  ;;  %v1384_v10 = vpop.f32.mrf.mxu1  ;;  %2404 = vmatprep.subr.mxu0 %v7278_v2  ;;  %2629 = vmatprep.subr.mxu1 %v7278_v2  ;;  %v4424_v1 = vld [vmem:[%s7032_s2 + $0x158] sm:$0xff] }
 0x237   : > { %4089 = vmatmul.mubr.msk.f32.gmra.mxu0 %vm1529_vm1, %v1383_v58  ;;  %4121 = vmatmul.mubr.msk.f32.gmra.mxu1 %vm1529_vm1, %v1383_v58 }
 0x238   : > { %v1162_v3 = vpop.f32.mrf.mxu0  ;;  %v1387_v57 = vpop.f32.mrf.mxu1  ;;  %1720 = vmatprep.mubr.f32.mxu0 %v7278_v2  ;;  %1977 = vmatprep.mubr.f32.mxu1 %v7278_v2 }
 0x239   : > { %v1388_v0 = vadd.f32 %v1387_v57, %v1162_v3  ;;  %2405 = vmatpush1.msra.mxu0 %v4423_v59  ;;  %2630 = vmatpush1.msra.mxu1 %v4424_v1  ;;  %v4425_v57 = vld [vmem:[%s7032_s2 + $0x50] sm:$0xff] }
 0x23a   : > { %v1164_v4 = vpop.f32.mrf.mxu0  ;;  %v1389_v9 = vpop.f32.mrf.mxu1  ;;  %2406 = vmatprep.subr.mxu0 %v7278_v2  ;;  %2631 = vmatprep.subr.mxu1 %v7278_v2  ;;  %v4426_v59 = vld [vmem:[%s7032_s2 + $0x150] sm:$0xff] }
 0x23b   : > { %4090 = vmatmul.mubr.msk.f32.gmra.mxu0 %vm1529_vm1, %v1388_v0  ;;  %4122 = vmatmul.mubr.msk.f32.gmra.mxu1 %vm1529_vm1, %v1388_v0 }
 0x23c   : > { %v1167_v58 = vpop.f32.mrf.mxu0  ;;  %v1392_v10 = vpop.f32.mrf.mxu1  ;;  %1726 = vmatprep.mubr.f32.mxu0 %v7278_v2  ;;  %1983 = vmatprep.mubr.f32.mxu1 %v7278_v2 }
 0x23d   : > { %v1393_v3 = vadd.f32 %v1392_v10, %v1167_v58  ;;  %2407 = vmatpush1.msra.mxu0 %v4425_v57  ;;  %2632 = vmatpush1.msra.mxu1 %v4426_v59  ;;  %v4427_v10 = vld [vmem:[%s7032_s2 + $0x48] sm:$0xff] }
 0x23e   : > { %v1169_v1 = vpop.f32.mrf.mxu0  ;;  %v1394_v4 = vpop.f32.mrf.mxu1  ;;  %2408 = vmatprep.subr.mxu0 %v7278_v2  ;;  %2633 = vmatprep.subr.mxu1 %v7278_v2  ;;  %v4428_v57 = vld [vmem:[%s7032_s2 + $0x148] sm:$0xff] }
 0x23f   : > { %4091 = vmatmul.mubr.msk.f32.gmra.mxu0 %vm1529_vm1, %v1393_v3  ;;  %4123 = vmatmul.mubr.msk.f32.gmra.mxu1 %vm1529_vm1, %v1393_v3 }
 0x240   : > { %v1172_v0 = vpop.f32.mrf.mxu0  ;;  %v1397_v9 = vpop.f32.mrf.mxu1  ;;  %1732 = vmatprep.mubr.f32.mxu0 %v7278_v2  ;;  %1989 = vmatprep.mubr.f32.mxu1 %v7278_v2 }
 0x241   : > { %v1398_v58 = vadd.f32 %v1397_v9, %v1172_v0  ;;  %2409 = vmatpush1.msra.mxu0 %v4427_v10  ;;  %2634 = vmatpush1.msra.mxu1 %v4428_v57  ;;  %v4429_v9 = vld [vmem:[%s7032_s2 + $0x40] sm:$0xff] }
 0x242   : > { %v1174_v59 = vpop.f32.mrf.mxu0  ;;  %v1399_v1 = vpop.f32.mrf.mxu1  ;;  %2410 = vmatprep.subr.mxu0 %v7278_v2  ;;  %2635 = vmatprep.subr.mxu1 %v7278_v2  ;;  %v4430_v10 = vld [vmem:[%s7032_s2 + $0x140] sm:$0xff] }
 0x243   : > { %4092 = vmatmul.mubr.msk.f32.gmra.mxu0 %vm1529_vm1, %v1398_v58  ;;  %4124 = vmatmul.mubr.msk.f32.gmra.mxu1 %vm1529_vm1, %v1398_v58 }
 0x244   : > { %v1177_v3 = vpop.f32.mrf.mxu0  ;;  %v1402_v4 = vpop.f32.mrf.mxu1  ;;  %1738 = vmatprep.mubr.f32.mxu0 %v7278_v2  ;;  %1995 = vmatprep.mubr.f32.mxu1 %v7278_v2 }
 0x245   : > { %v1403_v0 = vadd.f32 %v1402_v4, %v1177_v3  ;;  %2411 = vmatpush1.msra.mxu0 %v4429_v9  ;;  %2636 = vmatpush1.msra.mxu1 %v4430_v10  ;;  %v4431_v4 = vld [vmem:[%s7032_s2 + $0x38] sm:$0xff] }
 0x246   : > { %v1179_v57 = vpop.f32.mrf.mxu0  ;;  %v1404_v59 = vpop.f32.mrf.mxu1  ;;  %2412 = vmatprep.subr.mxu0 %v7278_v2  ;;  %2637 = vmatprep.subr.mxu1 %v7278_v2  ;;  %v4432_v9 = vld [vmem:[%s7032_s2 + $0x138] sm:$0xff] }
 0x247   : > { %4093 = vmatmul.mubr.msk.f32.gmra.mxu0 %vm1529_vm1, %v1403_v0  ;;  %4125 = vmatmul.mubr.msk.f32.gmra.mxu1 %vm1529_vm1, %v1403_v0 }
 0x248   : > { %v1182_v58 = vpop.f32.mrf.mxu0  ;;  %v1407_v1 = vpop.f32.mrf.mxu1  ;;  %1744 = vmatprep.mubr.f32.mxu0 %v7278_v2  ;;  %2001 = vmatprep.mubr.f32.mxu1 %v7278_v2 }
 0x249   : > { %v1408_v3 = vadd.f32 %v1407_v1, %v1182_v58  ;;  %2413 = vmatpush1.msra.mxu0 %v4431_v4  ;;  %2638 = vmatpush1.msra.mxu1 %v4432_v9  ;;  %v4433_v1 = vld [vmem:[%s7032_s2 + $0x30] sm:$0xff] }
 0x24a   : > { %v1184_v10 = vpop.f32.mrf.mxu0  ;;  %v1409_v57 = vpop.f32.mrf.mxu1  ;;  %2414 = vmatprep.subr.mxu0 %v7278_v2  ;;  %2639 = vmatprep.subr.mxu1 %v7278_v2  ;;  %v4434_v4 = vld [vmem:[%s7032_s2 + $0x130] sm:$0xff] }
 0x24b   : > { %4094 = vmatmul.mubr.msk.f32.gmra.mxu0 %vm1529_vm1, %v1408_v3  ;;  %4126 = vmatmul.mubr.msk.f32.gmra.mxu1 %vm1529_vm1, %v1408_v3 }
 0x24c   : > { %v1187_v0 = vpop.f32.mrf.mxu0  ;;  %v1412_v59 = vpop.f32.mrf.mxu1  ;;  %1750 = vmatprep.mubr.f32.mxu0 %v7278_v2  ;;  %2007 = vmatprep.mubr.f32.mxu1 %v7278_v2 }
 0x24d   : > { %v1413_v58 = vadd.f32 %v1412_v59, %v1187_v0  ;;  %2415 = vmatpush1.msra.mxu0 %v4433_v1  ;;  %2640 = vmatpush1.msra.mxu1 %v4434_v4  ;;  %v4435_v59 = vld [vmem:[%s7032_s2 + $0x28] sm:$0xff] }
 0x24e   : > { %v1189_v9 = vpop.f32.mrf.mxu0  ;;  %v1414_v10 = vpop.f32.mrf.mxu1  ;;  %2416 = vmatprep.subr.mxu0 %v7278_v2  ;;  %2641 = vmatprep.subr.mxu1 %v7278_v2  ;;  %v4436_v1 = vld [vmem:[%s7032_s2 + $0x128] sm:$0xff] }
 0x24f   : > { %4095 = vmatmul.mubr.msk.f32.gmra.mxu0 %vm1529_vm1, %v1413_v58  ;;  %4127 = vmatmul.mubr.msk.f32.gmra.mxu1 %vm1529_vm1, %v1413_v58 }
 0x250   : > { %v1192_v3 = vpop.f32.mrf.mxu0  ;;  %v1417_v57 = vpop.f32.mrf.mxu1  ;;  %1756 = vmatprep.mubr.f32.mxu0 %v7278_v2  ;;  %2013 = vmatprep.mubr.f32.mxu1 %v7278_v2 }
 0x251   : > { %v1418_v0 = vadd.f32 %v1417_v57, %v1192_v3  ;;  %2417 = vmatpush1.msra.mxu0 %v4435_v59  ;;  %2642 = vmatpush1.msra.mxu1 %v4436_v1  ;;  %v4437_v57 = vld [vmem:[%s7032_s2 + $0x20] sm:$0xff] }
 0x252   : > { %v1194_v4 = vpop.f32.mrf.mxu0  ;;  %v1419_v9 = vpop.f32.mrf.mxu1  ;;  %2418 = vmatprep.subr.mxu0 %v7278_v2  ;;  %2643 = vmatprep.subr.mxu1 %v7278_v2  ;;  %v4438_v59 = vld [vmem:[%s7032_s2 + $0x120] sm:$0xff] }
 0x253   : > { %4096 = vmatmul.mubr.msk.f32.gmra.mxu0 %vm1529_vm1, %v1418_v0  ;;  %4128 = vmatmul.mubr.msk.f32.gmra.mxu1 %vm1529_vm1, %v1418_v0 }
 0x254   : > { %v1197_v58 = vpop.f32.mrf.mxu0  ;;  %v1422_v10 = vpop.f32.mrf.mxu1  ;;  %1762 = vmatprep.mubr.f32.mxu0 %v7278_v2  ;;  %2019 = vmatprep.mubr.f32.mxu1 %v7278_v2 }
 0x255   : > { %v1423_v3 = vadd.f32 %v1422_v10, %v1197_v58  ;;  %2419 = vmatpush1.msra.mxu0 %v4437_v57  ;;  %2644 = vmatpush1.msra.mxu1 %v4438_v59  ;;  %v4439_v10 = vld [vmem:[%s7032_s2 + $0x18] sm:$0xff] }
 0x256   : > { %v1199_v1 = vpop.f32.mrf.mxu0  ;;  %v1424_v4 = vpop.f32.mrf.mxu1  ;;  %2420 = vmatprep.subr.mxu0 %v7278_v2  ;;  %2645 = vmatprep.subr.mxu1 %v7278_v2  ;;  %v4440_v57 = vld [vmem:[%s7032_s2 + $0x118] sm:$0xff] }
 0x257   : > { %4097 = vmatmul.mubr.msk.f32.gmra.mxu0 %vm1529_vm1, %v1423_v3  ;;  %4129 = vmatmul.mubr.msk.f32.gmra.mxu1 %vm1529_vm1, %v1423_v3 }
 0x258   : > { %v1202_v0 = vpop.f32.mrf.mxu0  ;;  %v1427_v9 = vpop.f32.mrf.mxu1  ;;  %1768 = vmatprep.mubr.f32.mxu0 %v7278_v2  ;;  %2025 = vmatprep.mubr.f32.mxu1 %v7278_v2 }
 0x259   : > { %v1428_v58 = vadd.f32 %v1427_v9, %v1202_v0  ;;  %2421 = vmatpush1.msra.mxu0 %v4439_v10  ;;  %2646 = vmatpush1.msra.mxu1 %v4440_v57  ;;  %v4441_v9 = vld [vmem:[%s7032_s2 + $0x10] sm:$0xff] }
 0x25a   : > { %v1204_v59 = vpop.f32.mrf.mxu0  ;;  %v1429_v1 = vpop.f32.mrf.mxu1  ;;  %2422 = vmatprep.subr.mxu0 %v7278_v2  ;;  %2647 = vmatprep.subr.mxu1 %v7278_v2  ;;  %v4442_v10 = vld [vmem:[%s7032_s2 + $0x110] sm:$0xff] }
 0x25b   : > { %4098 = vmatmul.mubr.msk.f32.gmra.mxu0 %vm1529_vm1, %v1428_v58  ;;  %4130 = vmatmul.mubr.msk.f32.gmra.mxu1 %vm1529_vm1, %v1428_v58 }
 0x25c   : > { %v1207_v3 = vpop.f32.mrf.mxu0  ;;  %v1432_v4 = vpop.f32.mrf.mxu1  ;;  %1774 = vmatprep.mubr.f32.mxu0 %v7278_v2  ;;  %2031 = vmatprep.mubr.f32.mxu1 %v7278_v2 }
 0x25d   : > { %v1433_v0 = vadd.f32 %v1432_v4, %v1207_v3  ;;  %2423 = vmatpush1.msra.mxu0 %v4441_v9  ;;  %2648 = vmatpush1.msra.mxu1 %v4442_v10  ;;  %v4443_v4 = vld [vmem:[%s7032_s2 + $0x8] sm:$0xff] }
 0x25e   : > { %v1209_v57 = vpop.f32.mrf.mxu0  ;;  %v1434_v59 = vpop.f32.mrf.mxu1  ;;  %2424 = vmatprep.subr.mxu0 %v7278_v2  ;;  %2649 = vmatprep.subr.mxu1 %v7278_v2  ;;  %v4444_v9 = vld [vmem:[%s7032_s2 + $0x108] sm:$0xff] }
 0x25f   : > { %4099 = vmatmul.mubr.msk.f32.gmra.mxu0 %vm1529_vm1, %v1433_v0  ;;  %4131 = vmatmul.mubr.msk.f32.gmra.mxu1 %vm1529_vm1, %v1433_v0 }
 0x260   : > { %v1212_v58 = vpop.f32.mrf.mxu0  ;;  %v1437_v1 = vpop.f32.mrf.mxu1  ;;  %1780 = vmatprep.mubr.f32.mxu0 %v7278_v2  ;;  %2037 = vmatprep.mubr.f32.mxu1 %v7278_v2 }
 0x261   : > { %v1438_v3 = vadd.f32 %v1437_v1, %v1212_v58  ;;  %2425 = vmatpush1.msra.mxu0 %v4443_v4  ;;  %2650 = vmatpush1.msra.mxu1 %v4444_v9  ;;  %v4445_v1 = vld [vmem:[%s7032_s2] sm:$0xff] }
 0x262   : > { %v1214_v10 = vpop.f32.mrf.mxu0  ;;  %v1439_v57 = vpop.f32.mrf.mxu1  ;;  %2426 = vmatprep.subr.mxu0 %v7278_v2  ;;  %2651 = vmatprep.subr.mxu1 %v7278_v2  ;;  %v4446_v4 = vld [vmem:[%s7032_s2 + $0x100] sm:$0xff] }
 0x263   : > { %4100 = vmatmul.mubr.msk.f32.gmra.mxu0 %vm1529_vm1, %v1438_v3  ;;  %4132 = vmatmul.mubr.msk.f32.gmra.mxu1 %vm1529_vm1, %v1438_v3 }
 0x264   : > { %v1217_v0 = vpop.f32.mrf.mxu0  ;;  %v1442_v59 = vpop.f32.mrf.mxu1  ;;  %1786 = vmatprep.mubr.f32.mxu0 %v7278_v2  ;;  %2043 = vmatprep.mubr.f32.mxu1 %v7278_v2 }
 0x265   : > { %v1443_v58 = vadd.f32 %v1442_v59, %v1217_v0  ;;  %2427 = vmatpush1.msra.mxu0 %v4445_v1  ;;  %2652 = vmatpush1.msra.mxu1 %v4446_v4  ;;  %v4447_v59 = vld [vmem:[%s7032_s2 + $0xf8] sm:$0xff] }
 0x266   : > { %v1219_v9 = vpop.f32.mrf.mxu0  ;;  %v1444_v10 = vpop.f32.mrf.mxu1  ;;  %2428 = vmatprep.subr.mxu0 %v7278_v2  ;;  %2653 = vmatprep.subr.mxu1 %v7278_v2  ;;  %v4448_v1 = vld [vmem:[%s7032_s2 + $0x1f8] sm:$0xff] }
 0x267   : > { %4101 = vmatmul.mubr.msk.f32.gmra.mxu0 %vm1529_vm1, %v1443_v58  ;;  %4133 = vmatmul.mubr.msk.f32.gmra.mxu1 %vm1529_vm1, %v1443_v58 }
 0x268   : > { %v1222_v3 = vpop.f32.mrf.mxu0  ;;  %v1447_v57 = vpop.f32.mrf.mxu1  ;;  %1792 = vmatprep.mubr.f32.mxu0 %v7278_v2  ;;  %2049 = vmatprep.mubr.f32.mxu1 %v7278_v2 }
 0x269   : > { %v1448_v0 = vadd.f32 %v1447_v57, %v1222_v3  ;;  %2429 = vmatpush2.msra.mxu0 %v4447_v59  ;;  %2654 = vmatpush2.msra.mxu1 %v4448_v1  ;;  %v4449_v57 = vld [vmem:[%s7032_s2 + $0xf0] sm:$0xff] }
 0x26a   : > { %v1224_v4 = vpop.f32.mrf.mxu0  ;;  %v1449_v9 = vpop.f32.mrf.mxu1  ;;  %2430 = vmatprep.subr.mxu0 %v7278_v2  ;;  %2655 = vmatprep.subr.mxu1 %v7278_v2  ;;  %v4450_v59 = vld [vmem:[%s7032_s2 + $0x1f0] sm:$0xff] }
 0x26b   : > { %4102 = vmatmul.mubr.msk.f32.gmra.mxu0 %vm1529_vm1, %v1448_v0  ;;  %4134 = vmatmul.mubr.msk.f32.gmra.mxu1 %vm1529_vm1, %v1448_v0 }
 0x26c   : > { %v1227_v58 = vpop.f32.mrf.mxu0  ;;  %v1452_v10 = vpop.f32.mrf.mxu1  ;;  %1798 = vmatprep.mubr.f32.mxu0 %v7278_v2  ;;  %2055 = vmatprep.mubr.f32.mxu1 %v7278_v2 }
 0x26d   : > { %v1453_v3 = vadd.f32 %v1452_v10, %v1227_v58  ;;  %2431 = vmatpush2.msra.mxu0 %v4449_v57  ;;  %2656 = vmatpush2.msra.mxu1 %v4450_v59  ;;  %v4451_v10 = vld [vmem:[%s7032_s2 + $0xe8] sm:$0xff] }
 0x26e   : > { %v1229_v1 = vpop.f32.mrf.mxu0  ;;  %v1454_v4 = vpop.f32.mrf.mxu1  ;;  %2432 = vmatprep.subr.mxu0 %v7278_v2  ;;  %2657 = vmatprep.subr.mxu1 %v7278_v2  ;;  %v4452_v57 = vld [vmem:[%s7032_s2 + $0x1e8] sm:$0xff] }
 0x26f   : > { %4103 = vmatmul.mubr.msk.f32.gmra.mxu0 %vm1529_vm1, %v1453_v3  ;;  %4135 = vmatmul.mubr.msk.f32.gmra.mxu1 %vm1529_vm1, %v1453_v3 }
 0x270   : > { %v1232_v0 = vpop.f32.mrf.mxu0  ;;  %v1457_v9 = vpop.f32.mrf.mxu1  ;;  %1804 = vmatprep.mubr.f32.mxu0 %v7278_v2  ;;  %2061 = vmatprep.mubr.f32.mxu1 %v7278_v2 }
 0x271   : > { %v1458_v58 = vadd.f32 %v1457_v9, %v1232_v0  ;;  %2433 = vmatpush2.msra.mxu0 %v4451_v10  ;;  %2658 = vmatpush2.msra.mxu1 %v4452_v57  ;;  %v4453_v9 = vld [vmem:[%s7032_s2 + $0xe0] sm:$0xff] }
 0x272   : > { %v1234_v59 = vpop.f32.mrf.mxu0  ;;  %v1459_v1 = vpop.f32.mrf.mxu1  ;;  %2434 = vmatprep.subr.mxu0 %v7278_v2  ;;  %2659 = vmatprep.subr.mxu1 %v7278_v2  ;;  %v4454_v10 = vld [vmem:[%s7032_s2 + $0x1e0] sm:$0xff] }
 0x273   : > { %4104 = vmatmul.mubr.msk.f32.gmra.mxu0 %vm1529_vm1, %v1458_v58  ;;  %4136 = vmatmul.mubr.msk.f32.gmra.mxu1 %vm1529_vm1, %v1458_v58 }
 0x274   : > { %v1237_v3 = vpop.f32.mrf.mxu0  ;;  %v1462_v4 = vpop.f32.mrf.mxu1  ;;  %1810 = vmatprep.mubr.f32.mxu0 %v7278_v2  ;;  %2067 = vmatprep.mubr.f32.mxu1 %v7278_v2 }
 0x275   : > { %v1463_v0 = vadd.f32 %v1462_v4, %v1237_v3  ;;  %2435 = vmatpush2.msra.mxu0 %v4453_v9  ;;  %2660 = vmatpush2.msra.mxu1 %v4454_v10  ;;  %v4455_v4 = vld [vmem:[%s7032_s2 + $0xd8] sm:$0xff] }
 0x276   : > { %v1239_v57 = vpop.f32.mrf.mxu0  ;;  %v1464_v59 = vpop.f32.mrf.mxu1  ;;  %2436 = vmatprep.subr.mxu0 %v7278_v2  ;;  %2661 = vmatprep.subr.mxu1 %v7278_v2  ;;  %v4456_v9 = vld [vmem:[%s7032_s2 + $0x1d8] sm:$0xff] }
 0x277   : > { %4105 = vmatmul.mubr.msk.f32.gmra.mxu0 %vm1529_vm1, %v1463_v0  ;;  %4137 = vmatmul.mubr.msk.f32.gmra.mxu1 %vm1529_vm1, %v1463_v0 }
 0x278   : > { %v1242_v58 = vpop.f32.mrf.mxu0  ;;  %v1467_v1 = vpop.f32.mrf.mxu1  ;;  %1816 = vmatprep.mubr.f32.mxu0 %v7278_v2  ;;  %2073 = vmatprep.mubr.f32.mxu1 %v7278_v2 }
 0x279   : > { %v1468_v3 = vadd.f32 %v1467_v1, %v1242_v58  ;;  %2437 = vmatpush2.msra.mxu0 %v4455_v4  ;;  %2662 = vmatpush2.msra.mxu1 %v4456_v9  ;;  %v4457_v1 = vld [vmem:[%s7032_s2 + $0xd0] sm:$0xff] }
 0x27a   : > { %v1244_v10 = vpop.f32.mrf.mxu0  ;;  %v1469_v57 = vpop.f32.mrf.mxu1  ;;  %2438 = vmatprep.subr.mxu0 %v7278_v2  ;;  %2663 = vmatprep.subr.mxu1 %v7278_v2  ;;  %v4458_v4 = vld [vmem:[%s7032_s2 + $0x1d0] sm:$0xff] }
 0x27b   : > { %4106 = vmatmul.mubr.msk.f32.gmra.mxu0 %vm1529_vm1, %v1468_v3  ;;  %4138 = vmatmul.mubr.msk.f32.gmra.mxu1 %vm1529_vm1, %v1468_v3 }
 0x27c   : > { %v1247_v0 = vpop.f32.mrf.mxu0  ;;  %v1472_v59 = vpop.f32.mrf.mxu1  ;;  %1822 = vmatprep.mubr.f32.mxu0 %v7278_v2  ;;  %2079 = vmatprep.mubr.f32.mxu1 %v7278_v2 }
 0x27d   : > { %v1473_v58 = vadd.f32 %v1472_v59, %v1247_v0  ;;  %2439 = vmatpush2.msra.mxu0 %v4457_v1  ;;  %2664 = vmatpush2.msra.mxu1 %v4458_v4  ;;  %v4459_v59 = vld [vmem:[%s7032_s2 + $0xc8] sm:$0xff] }
 0x27e   : > { %v1249_v9 = vpop.f32.mrf.mxu0  ;;  %v1474_v10 = vpop.f32.mrf.mxu1  ;;  %2440 = vmatprep.subr.mxu0 %v7278_v2  ;;  %2665 = vmatprep.subr.mxu1 %v7278_v2  ;;  %v4460_v1 = vld [vmem:[%s7032_s2 + $0x1c8] sm:$0xff] }
 0x27f   : > { %4107 = vmatmul.mubr.msk.f32.gmra.mxu0 %vm1529_vm1, %v1473_v58  ;;  %4139 = vmatmul.mubr.msk.f32.gmra.mxu1 %vm1529_vm1, %v1473_v58 }
 0x280   : > { %v1252_v3 = vpop.f32.mrf.mxu0  ;;  %v1477_v57 = vpop.f32.mrf.mxu1  ;;  %1828 = vmatprep.mubr.f32.mxu0 %v7278_v2  ;;  %2085 = vmatprep.mubr.f32.mxu1 %v7278_v2 }
 0x281   : > { %v1478_v0 = vadd.f32 %v1477_v57, %v1252_v3  ;;  %2441 = vmatpush2.msra.mxu0 %v4459_v59  ;;  %2666 = vmatpush2.msra.mxu1 %v4460_v1  ;;  %v4461_v57 = vld [vmem:[%s7032_s2 + $0xc0] sm:$0xff] }
 0x282   : > { %v1254_v4 = vpop.f32.mrf.mxu0  ;;  %v1479_v9 = vpop.f32.mrf.mxu1  ;;  %2442 = vmatprep.subr.mxu0 %v7278_v2  ;;  %2667 = vmatprep.subr.mxu1 %v7278_v2  ;;  %v4462_v59 = vld [vmem:[%s7032_s2 + $0x1c0] sm:$0xff] }
 0x283   : > { %4108 = vmatmul.mubr.msk.f32.gmra.mxu0 %vm1529_vm1, %v1478_v0  ;;  %4140 = vmatmul.mubr.msk.f32.gmra.mxu1 %vm1529_vm1, %v1478_v0 }
 0x284   : > { %v1257_v58 = vpop.f32.mrf.mxu0  ;;  %v1482_v10 = vpop.f32.mrf.mxu1  ;;  %1834 = vmatprep.mubr.f32.mxu0 %v7278_v2  ;;  %2091 = vmatprep.mubr.f32.mxu1 %v7278_v2 }
 0x285   : > { %v1483_v3 = vadd.f32 %v1482_v10, %v1257_v58  ;;  %2443 = vmatpush2.msra.mxu0 %v4461_v57  ;;  %2668 = vmatpush2.msra.mxu1 %v4462_v59  ;;  %v4463_v10 = vld [vmem:[%s7032_s2 + $0xb8] sm:$0xff] }
 0x286   : > { %v1259_v1 = vpop.f32.mrf.mxu0  ;;  %v1484_v4 = vpop.f32.mrf.mxu1  ;;  %2444 = vmatprep.subr.mxu0 %v7278_v2  ;;  %2669 = vmatprep.subr.mxu1 %v7278_v2  ;;  %v4464_v57 = vld [vmem:[%s7032_s2 + $0x1b8] sm:$0xff] }
 0x287   : > { %4109 = vmatmul.mubr.msk.f32.gmra.mxu0 %vm1529_vm1, %v1483_v3  ;;  %4141 = vmatmul.mubr.msk.f32.gmra.mxu1 %vm1529_vm1, %v1483_v3 }
 0x288   : > { %v1262_v0 = vpop.f32.mrf.mxu0  ;;  %v1487_v9 = vpop.f32.mrf.mxu1  ;;  %1840 = vmatprep.mubr.f32.mxu0 %v7278_v2  ;;  %2097 = vmatprep.mubr.f32.mxu1 %v7278_v2 }
 0x289   : > { %v1488_v58 = vadd.f32 %v1487_v9, %v1262_v0  ;;  %2445 = vmatpush2.msra.mxu0 %v4463_v10  ;;  %2670 = vmatpush2.msra.mxu1 %v4464_v57  ;;  %v4465_v9 = vld [vmem:[%s7032_s2 + $0xb0] sm:$0xff] }
 0x28a   : > { %v1264_v59 = vpop.f32.mrf.mxu0  ;;  %v1489_v1 = vpop.f32.mrf.mxu1  ;;  %2446 = vmatprep.subr.mxu0 %v7278_v2  ;;  %2671 = vmatprep.subr.mxu1 %v7278_v2  ;;  %v4466_v10 = vld [vmem:[%s7032_s2 + $0x1b0] sm:$0xff] }
 0x28b   : > { %4110 = vmatmul.mubr.msk.f32.gmra.mxu0 %vm1529_vm1, %v1488_v58  ;;  %4142 = vmatmul.mubr.msk.f32.gmra.mxu1 %vm1529_vm1, %v1488_v58 }
 0x28c   : > { %v1267_v3 = vpop.f32.mrf.mxu0  ;;  %v1492_v4 = vpop.f32.mrf.mxu1  ;;  %1846 = vmatprep.mubr.f32.mxu0 %v7278_v2  ;;  %2103 = vmatprep.mubr.f32.mxu1 %v7278_v2 }
 0x28d   : > { %v1493_v0 = vadd.f32 %v1492_v4, %v1267_v3  ;;  %2447 = vmatpush2.msra.mxu0 %v4465_v9  ;;  %2672 = vmatpush2.msra.mxu1 %v4466_v10  ;;  %v4467_v4 = vld [vmem:[%s7032_s2 + $0xa8] sm:$0xff] }
 0x28e   : > { %v1269_v57 = vpop.f32.mrf.mxu0  ;;  %v1494_v59 = vpop.f32.mrf.mxu1  ;;  %2448 = vmatprep.subr.mxu0 %v7278_v2  ;;  %2673 = vmatprep.subr.mxu1 %v7278_v2  ;;  %v4468_v9 = vld [vmem:[%s7032_s2 + $0x1a8] sm:$0xff] }
 0x28f   : > { %4111 = vmatmul.mubr.msk.f32.gmra.mxu0 %vm1529_vm1, %v1493_v0  ;;  %4143 = vmatmul.mubr.msk.f32.gmra.mxu1 %vm1529_vm1, %v1493_v0 }
 0x290   : > { %v1272_v58 = vpop.f32.mrf.mxu0  ;;  %v1497_v1 = vpop.f32.mrf.mxu1  ;;  %1852 = vmatprep.mubr.f32.mxu0 %v7278_v2  ;;  %2109 = vmatprep.mubr.f32.mxu1 %v7278_v2 }
 0x291   : > { %v1498_v3 = vadd.f32 %v1497_v1, %v1272_v58  ;;  %2449 = vmatpush2.msra.mxu0 %v4467_v4  ;;  %2674 = vmatpush2.msra.mxu1 %v4468_v9  ;;  %v4469_v1 = vld [vmem:[%s7032_s2 + $0xa0] sm:$0xff] }
 0x292   : > { %v1274_v10 = vpop.f32.mrf.mxu0  ;;  %v1499_v57 = vpop.f32.mrf.mxu1  ;;  %2450 = vmatprep.subr.mxu0 %v7278_v2  ;;  %2675 = vmatprep.subr.mxu1 %v7278_v2  ;;  %v4470_v4 = vld [vmem:[%s7032_s2 + $0x1a0] sm:$0xff] }
 0x293   : > { %4112 = vmatmul.mubr.msk.f32.gmra.mxu0 %vm1529_vm1, %v1498_v3  ;;  %4144 = vmatmul.mubr.msk.f32.gmra.mxu1 %vm1529_vm1, %v1498_v3 }
 0x294   : > { %v1277_v0 = vpop.f32.mrf.mxu0  ;;  %v1502_v59 = vpop.f32.mrf.mxu1  ;;  %1858 = vmatprep.mubr.f32.mxu0 %v7278_v2  ;;  %2115 = vmatprep.mubr.f32.mxu1 %v7278_v2 }
 0x295   : > { %v1503_v58 = vadd.f32 %v1502_v59, %v1277_v0  ;;  %2451 = vmatpush2.msra.mxu0 %v4469_v1  ;;  %2676 = vmatpush2.msra.mxu1 %v4470_v4  ;;  %v4471_v59 = vld [vmem:[%s7032_s2 + $0x98] sm:$0xff] }
 0x296   : > { %v1279_v9 = vpop.f32.mrf.mxu0  ;;  %v1504_v10 = vpop.f32.mrf.mxu1  ;;  %2452 = vmatprep.subr.mxu0 %v7278_v2  ;;  %2677 = vmatprep.subr.mxu1 %v7278_v2  ;;  %v4472_v1 = vld [vmem:[%s7032_s2 + $0x198] sm:$0xff] }
 0x297   : > { %4113 = vmatmul.mubr.msk.f32.gmra.mxu0 %vm1529_vm1, %v1503_v58  ;;  %4145 = vmatmul.mubr.msk.f32.gmra.mxu1 %vm1529_vm1, %v1503_v58 }
 0x298   : > { %v1282_v3 = vpop.f32.mrf.mxu0  ;;  %v1507_v57 = vpop.f32.mrf.mxu1  ;;  %1864 = vmatprep.mubr.f32.mxu0 %v7278_v2  ;;  %2121 = vmatprep.mubr.f32.mxu1 %v7278_v2 }
 0x299   : > { %v1508_v0 = vadd.f32 %v1507_v57, %v1282_v3  ;;  %2453 = vmatpush2.msra.mxu0 %v4471_v59  ;;  %2678 = vmatpush2.msra.mxu1 %v4472_v1  ;;  %v4473_v57 = vld [vmem:[%s7032_s2 + $0x90] sm:$0xff] }
 0x29a   : > { %v1284_v4 = vpop.f32.mrf.mxu0  ;;  %v1509_v9 = vpop.f32.mrf.mxu1  ;;  %2454 = vmatprep.subr.mxu0 %v7278_v2  ;;  %2679 = vmatprep.subr.mxu1 %v7278_v2  ;;  %v4474_v59 = vld [vmem:[%s7032_s2 + $0x190] sm:$0xff] }
 0x29b   : > { %4114 = vmatmul.mubr.msk.f32.gmra.mxu0 %vm1529_vm1, %v1508_v0  ;;  %4146 = vmatmul.mubr.msk.f32.gmra.mxu1 %vm1529_vm1, %v1508_v0 }
 0x29c   : > { %v1287_v58 = vpop.f32.mrf.mxu0  ;;  %v1512_v10 = vpop.f32.mrf.mxu1  ;;  %1870 = vmatprep.mubr.f32.mxu0 %v7278_v2  ;;  %2127 = vmatprep.mubr.f32.mxu1 %v7278_v2 }
 0x29d   : > { %v1513_v3 = vadd.f32 %v1512_v10, %v1287_v58  ;;  %2455 = vmatpush2.msra.mxu0 %v4473_v57  ;;  %2680 = vmatpush2.msra.mxu1 %v4474_v59  ;;  %v4475_v10 = vld [vmem:[%s7032_s2 + $0x88] sm:$0xff] }
 0x29e   : > { %v1289_v1 = vpop.f32.mrf.mxu0  ;;  %v1514_v4 = vpop.f32.mrf.mxu1  ;;  %2456 = vmatprep.subr.mxu0 %v7278_v2  ;;  %2681 = vmatprep.subr.mxu1 %v7278_v2  ;;  %v4476_v57 = vld [vmem:[%s7032_s2 + $0x188] sm:$0xff] }
 0x29f   : > { %4115 = vmatmul.mubr.msk.f32.gmra.mxu0 %vm1529_vm1, %v1513_v3  ;;  %4147 = vmatmul.mubr.msk.f32.gmra.mxu1 %vm1529_vm1, %v1513_v3  ;;  %v4477_v3 = vld [vmem:[%s7032_s2 + $0x80] sm:$0xff] }
 0x2a0   : > { %v1292_v0 = vpop.f32.mrf.mxu0  ;;  %v1517_v9 = vpop.f32.mrf.mxu1  ;;  %1876 = vmatprep.mubr.f32.mxu0 %v7278_v2  ;;  %2133 = vmatprep.mubr.f32.mxu1 %v7278_v2  ;;  %v4478_v4 = vld [vmem:[%s7032_s2 + $0x180] sm:$0xff] }
 0x2a1   : > { %v1518_v58 = vadd.f32 %v1517_v9, %v1292_v0  ;;  %2457 = vmatpush2.msra.mxu0 %v4475_v10  ;;  %2682 = vmatpush2.msra.mxu1 %v4476_v57  ;;  %v2883_v0 = vld [vmem:[%s7034_s4 + $0x28] sm:$0xff]  ;;  %v2885_v9 = vld [vmem:[%s7034_s4 + $0x38] sm:$0xff] }
 0x2a2   : > { %v1294_v59 = vpop.f32.mrf.mxu0  ;;  %v1519_v1 = vpop.f32.mrf.mxu1  ;;  %2458 = vmatprep.subr.mxu0 %v7278_v2  ;;  %2683 = vmatprep.subr.mxu1 %v7278_v2 }
 0x2a3   : > { %4116 = vmatmul.mubr.msk.f32.gmra.mxu0 %vm1529_vm1, %v1518_v58  ;;  %4148 = vmatmul.mubr.msk.f32.gmra.mxu1 %vm1529_vm1, %v1518_v58 }
 0x2a4   : > { %2459 = vmatpush2.msra.mxu0 %v4477_v3  ;;  %2684 = vmatpush2.msra.mxu1 %v4478_v4 }
 0x2a5   : > { %3010 = vmatprep.subr.mxu0 %v2883_v0  ;;  %3267 = vmatprep.subr.mxu1 %v2885_v9 }
 0x2e7   : > { %v1692_v58 = vpop.f32.mrf.mxu0  ;;  %v1949_v10 = vpop.f32.mrf.mxu1 }
 0x2e8   : > { %v5835_v57 = vsub.f32 %v5042_v60, %v1692_v58  ;;  %v5838_v3 = vsub.f32 %v5044_v61, %v1949_v10 }
 0x2e9   : > { %v1694_v59 = vpop.f32.mrf.mxu0  ;;  %v1951_v1 = vpop.f32.mrf.mxu1 }
 0x2ea   : > { %v5841_v4 = vsub.f32 %v5046_v62, %v1694_v59  ;;  %v5844_v2 = vsub.f32 %v5048_v63, %v1951_v1  ;;  %v2268_v9 = vmul.f32 %v5835_v57, %v5835_v57  ;;  %v2270_v63 = vmul.f32 %v5838_v3, %v5838_v3 }
 0x2eb   : > { %v1698_v56 = vpop.f32.mrf.mxu0  ;;  %v1955_v55 = vpop.f32.mrf.mxu1 }
 0x2ec   : > { %7279 = vst [vmem:[#allocation81_spill] sm:$0xff] %v5841_v4  ;;  %7280 = vst [vmem:[#allocation82_spill] sm:$0xff] %v5844_v2  ;;  %v2269_v0 = vmul.f32 %v5841_v4, %v5841_v4  ;;  %v2271_v60 = vmul.f32 %v5844_v2, %v5844_v2  ;;  %v5853_v61 = vsub.f32 %v5064_v5, %v1698_v56  ;;  %v2882_v5 = vld [vmem:[%s7034_s4 + $0x20] sm:$0xff]  ;;  %v2884_v56 = vld [vmem:[%s7034_s4 + $0x30] sm:$0xff] }
 0x2ed   : > { %v1700_v58 = vpop.f32.mrf.mxu0  ;;  %v1957_v62 = vpop.f32.mrf.mxu1  ;;  %v5858_v10 = vsub.f32 %v5066_v6, %v1955_v55 }
 0x2ee   : > { %v5861_v59 = vsub.f32 %v5070_v7, %v1700_v58  ;;  %v5864_v1 = vsub.f32 %v5072_v8, %v1957_v62  ;;  %2460 = vmatprep.mubr.f32.mxu0 %v2269_v0  ;;  %2685 = vmatprep.mubr.f32.mxu1 %v2271_v60  ;;  %v2272_v8 = vmul.f32 %v5853_v61, %v5853_v61 }
 0x2ef   : > { %v1704_v2 = vpop.f32.mrf.mxu0  ;;  %v1961_v4 = vpop.f32.mrf.mxu1  ;;  %2461 = vmatmul.mubr.f32.vlgmr.msra.gmra.mxu0 %v2268_v9  ;;  %2686 = vmatmul.mubr.f32.vlgmr.msra.gmra.mxu1 %v2270_v63  ;;  %v2274_v60 = vmul.f32 %v5858_v10, %v5858_v10 }
 0x2f0   : > { %v2273_v6 = vmul.f32 %v5861_v59, %v5861_v59  ;;  %v2275_v7 = vmul.f32 %v5864_v1, %v5864_v1  ;;  %v5879_v55 = vsub.f32 %v5082_v11, %v1704_v2  ;;  %3011 = vmatpush1.msra.mxu0 %v2882_v5  ;;  %3268 = vmatpush1.msra.mxu1 %v2884_v56  ;;  %v2879_v11 = vld [vmem:[%s7034_s4 + $0x8] sm:$0xff]  ;;  %v2881_v2 = vld [vmem:[%s7034_s4 + $0x18] sm:$0xff] }
 0x2f1   : > { %v1706_v0 = vpop.f32.mrf.mxu0  ;;  %v1963_v58 = vpop.f32.mrf.mxu1  ;;  %v5884_v9 = vsub.f32 %v5084_v12, %v1961_v4  ;;  %3012 = vmatprep.subr.mxu0 %v2879_v11  ;;  %3269 = vmatprep.subr.mxu1 %v2881_v2  ;;  %v2880_v11 = vld [vmem:[%s7034_s4 + $0x10] sm:$0xff] }
 0x2f2   : > { %v5887_v62 = vsub.f32 %v5088_v13, %v1706_v0  ;;  %v5890_v63 = vsub.f32 %v5090_v14, %v1963_v58  ;;  %2465 = vmatprep.mubr.f32.mxu0 %v2273_v6  ;;  %2690 = vmatprep.mubr.f32.mxu1 %v2275_v7  ;;  %v2276_v14 = vmul.f32 %v5879_v55, %v5879_v55 }
 0x2f3   : > { %v1710_v5 = vpop.f32.mrf.mxu0  ;;  %v1967_v56 = vpop.f32.mrf.mxu1  ;;  %2466 = vmatmul.mubr.f32.gmra.mxu0 %v2272_v8  ;;  %2691 = vmatmul.mubr.f32.gmra.mxu1 %v2274_v60  ;;  %v2278_v7 = vmul.f32 %v5884_v9, %v5884_v9 }
 0x2f4   : > { %v2277_v12 = vmul.f32 %v5887_v62, %v5887_v62  ;;  %v2279_v13 = vmul.f32 %v5890_v63, %v5890_v63  ;;  %v5905_v4 = vsub.f32 %v5096_v15, %v1710_v5  ;;  %v5910_v8 = vsub.f32 %v5098_v16, %v1967_v56  ;;  %v2878_v15 = vld [vmem:[%s7034_s4] sm:$0xff]  ;;  %3270 = vmatpush1.msra.mxu1 %v2880_v11 }
 0x2f5   : > { %v1712_v6 = vpop.f32.mrf.mxu0  ;;  %v1969_v0 = vpop.f32.mrf.mxu1  ;;  %3013 = vmatpush1.msra.mxu0 %v2878_v15 }
 0x2f6   : > { %v5913_v58 = vsub.f32 %v5102_v17, %v1712_v6  ;;  %v5916_v60 = vsub.f32 %v5104_v18, %v1969_v0  ;;  %2470 = vmatprep.mubr.f32.mxu0 %v2277_v12  ;;  %2695 = vmatprep.mubr.f32.mxu1 %v2279_v13  ;;  %v2280_v18 = vmul.f32 %v5905_v4, %v5905_v4 }
 0x2f7   : > { %v1716_v2 = vpop.f32.mrf.mxu0  ;;  %v1973_v5 = vpop.f32.mrf.mxu1  ;;  %2471 = vmatmul.mubr.f32.gmra.mxu0 %v2276_v14  ;;  %2696 = vmatmul.mubr.f32.gmra.mxu1 %v2278_v7  ;;  %v2282_v13 = vmul.f32 %v5910_v8, %v5910_v8 }
 0x2f8   : > { %v2281_v16 = vmul.f32 %v5913_v58, %v5913_v58  ;;  %v2283_v17 = vmul.f32 %v5916_v60, %v5916_v60  ;;  %v5931_v56 = vsub.f32 %v5108_v19, %v1716_v2  ;;  %v5936_v14 = vsub.f32 %v5110_v20, %v1973_v5 }
 0x2f9   : > { %v1718_v12 = vpop.f32.mrf.mxu0  ;;  %v1975_v6 = vpop.f32.mrf.mxu1 }
 0x2fa   : > { %v5939_v0 = vsub.f32 %v5114_v21, %v1718_v12  ;;  %v5942_v7 = vsub.f32 %v5116_v22, %v1975_v6  ;;  %2475 = vmatprep.mubr.f32.mxu0 %v2281_v16  ;;  %2700 = vmatprep.mubr.f32.mxu1 %v2283_v17  ;;  %v2284_v20 = vmul.f32 %v5931_v56, %v5931_v56 }
 0x2fb   : > { %v1722_v19 = vpop.f32.mrf.mxu0  ;;  %v1979_v2 = vpop.f32.mrf.mxu1  ;;  %2476 = vmatmul.mubr.f32.gmra.mxu0 %v2280_v18  ;;  %2701 = vmatmul.mubr.f32.gmra.mxu1 %v2282_v13  ;;  %v2286_v16 = vmul.f32 %v5936_v14, %v5936_v14 }
 0x2fc   : > { %v2285_v15 = vmul.f32 %v5939_v0, %v5939_v0  ;;  %v2287_v11 = vmul.f32 %v5942_v7, %v5942_v7  ;;  %v5951_v21 = vsub.f32 %v5120_v23, %v1722_v19  ;;  %v5956_v17 = vsub.f32 %v5122_v24, %v1979_v2 }
 0x2fd   : > { %v1724_v22 = vpop.f32.mrf.mxu0  ;;  %v1981_v5 = vpop.f32.mrf.mxu1 }
 0x2fe   : > { %v5959_v18 = vsub.f32 %v5126_v25, %v1724_v22  ;;  %v5962_v12 = vsub.f32 %v5128_v26, %v1981_v5  ;;  %2480 = vmatprep.mubr.f32.mxu0 %v2285_v15  ;;  %2705 = vmatprep.mubr.f32.mxu1 %v2287_v11  ;;  %v2288_v24 = vmul.f32 %v5951_v21, %v5951_v21 }
 0x2ff   : > { %v1728_v6 = vpop.f32.mrf.mxu0  ;;  %v1985_v13 = vpop.f32.mrf.mxu1  ;;  %2481 = vmatmul.mubr.f32.gmra.mxu0 %v2284_v20  ;;  %2706 = vmatmul.mubr.f32.gmra.mxu1 %v2286_v16  ;;  %v2290_v15 = vmul.f32 %v5956_v17, %v5956_v17 }
 0x300   : > { %v2289_v23 = vmul.f32 %v5959_v18, %v5959_v18  ;;  %v2291_v19 = vmul.f32 %v5962_v12, %v5962_v12  ;;  %v5971_v25 = vsub.f32 %v5132_v27, %v1728_v6  ;;  %v5976_v11 = vsub.f32 %v5134_v28, %v1985_v13 }
 0x301   : > { %v1730_v26 = vpop.f32.mrf.mxu0  ;;  %v1987_v2 = vpop.f32.mrf.mxu1 }
 0x302   : > { %v5979_v20 = vsub.f32 %v5138_v29, %v1730_v26  ;;  %v5982_v22 = vsub.f32 %v5140_v30, %v1987_v2  ;;  %2485 = vmatprep.mubr.f32.mxu0 %v2289_v23  ;;  %2710 = vmatprep.mubr.f32.mxu1 %v2291_v19  ;;  %v2292_v28 = vmul.f32 %v5971_v25, %v5971_v25 }
 0x303   : > { %v1734_v5 = vpop.f32.mrf.mxu0  ;;  %v1991_v16 = vpop.f32.mrf.mxu1  ;;  %2486 = vmatmul.mubr.f32.gmra.mxu0 %v2288_v24  ;;  %2711 = vmatmul.mubr.f32.gmra.mxu1 %v2290_v15  ;;  %v2294_v23 = vmul.f32 %v5976_v11, %v5976_v11 }
 0x304   : > { %v2293_v27 = vmul.f32 %v5979_v20, %v5979_v20  ;;  %v2295_v6 = vmul.f32 %v5982_v22, %v5982_v22  ;;  %v5991_v29 = vsub.f32 %v5144_v31, %v1734_v5  ;;  %v5996_v19 = vsub.f32 %v5146_v32, %v1991_v16 }
 0x305   : > { %v1736_v30 = vpop.f32.mrf.mxu0  ;;  %v1993_v13 = vpop.f32.mrf.mxu1 }
 0x306   : > { %v5999_v24 = vsub.f32 %v5150_v33, %v1736_v30  ;;  %v6002_v26 = vsub.f32 %v5152_v34, %v1993_v13  ;;  %2490 = vmatprep.mubr.f32.mxu0 %v2293_v27  ;;  %2715 = vmatprep.mubr.f32.mxu1 %v2295_v6  ;;  %v2296_v32 = vmul.f32 %v5991_v29, %v5991_v29 }
 0x307   : > { %v1740_v2 = vpop.f32.mrf.mxu0  ;;  %v1997_v15 = vpop.f32.mrf.mxu1  ;;  %2491 = vmatmul.mubr.f32.gmra.mxu0 %v2292_v28  ;;  %2716 = vmatmul.mubr.f32.gmra.mxu1 %v2294_v23  ;;  %v2298_v27 = vmul.f32 %v5996_v19, %v5996_v19 }
 0x308   : > { %v2297_v31 = vmul.f32 %v5999_v24, %v5999_v24  ;;  %v2299_v5 = vmul.f32 %v6002_v26, %v6002_v26  ;;  %v6011_v33 = vsub.f32 %v5156_v35, %v1740_v2  ;;  %v6016_v6 = vsub.f32 %v5158_v36, %v1997_v15 }
 0x309   : > { %v1742_v34 = vpop.f32.mrf.mxu0  ;;  %v1999_v16 = vpop.f32.mrf.mxu1 }
 0x30a   : > { %v6019_v28 = vsub.f32 %v5162_v37, %v1742_v34  ;;  %v6022_v30 = vsub.f32 %v5164_v38, %v1999_v16  ;;  %2495 = vmatprep.mubr.f32.mxu0 %v2297_v31  ;;  %2720 = vmatprep.mubr.f32.mxu1 %v2299_v5  ;;  %v2300_v36 = vmul.f32 %v6011_v33, %v6011_v33 }
 0x30b   : > { %v1746_v13 = vpop.f32.mrf.mxu0  ;;  %v2003_v23 = vpop.f32.mrf.mxu1  ;;  %2496 = vmatmul.mubr.f32.gmra.mxu0 %v2296_v32  ;;  %2721 = vmatmul.mubr.f32.gmra.mxu1 %v2298_v27  ;;  %v2302_v31 = vmul.f32 %v6016_v6, %v6016_v6 }
 0x30c   : > { %v2301_v35 = vmul.f32 %v6019_v28, %v6019_v28  ;;  %v2303_v2 = vmul.f32 %v6022_v30, %v6022_v30  ;;  %v6031_v37 = vsub.f32 %v5168_v39, %v1746_v13  ;;  %v6036_v5 = vsub.f32 %v5170_v40, %v2003_v23 }
 0x30d   : > { %v1748_v38 = vpop.f32.mrf.mxu0  ;;  %v2005_v15 = vpop.f32.mrf.mxu1 }
 0x30e   : > { %v6039_v32 = vsub.f32 %v5174_v41, %v1748_v38  ;;  %v6042_v34 = vsub.f32 %v5176_v42, %v2005_v15  ;;  %2500 = vmatprep.mubr.f32.mxu0 %v2301_v35  ;;  %2725 = vmatprep.mubr.f32.mxu1 %v2303_v2  ;;  %v2304_v40 = vmul.f32 %v6031_v37, %v6031_v37 }
 0x30f   : > { %v1752_v16 = vpop.f32.mrf.mxu0  ;;  %v2009_v27 = vpop.f32.mrf.mxu1  ;;  %2501 = vmatmul.mubr.f32.gmra.mxu0 %v2300_v36  ;;  %2726 = vmatmul.mubr.f32.gmra.mxu1 %v2302_v31  ;;  %v2306_v35 = vmul.f32 %v6036_v5, %v6036_v5 }
 0x310   : > { %v2305_v39 = vmul.f32 %v6039_v32, %v6039_v32  ;;  %v2307_v13 = vmul.f32 %v6042_v34, %v6042_v34  ;;  %v6051_v41 = vsub.f32 %v5180_v43, %v1752_v16  ;;  %v6056_v2 = vsub.f32 %v5182_v44, %v2009_v27 }
 0x311   : > { %v1754_v42 = vpop.f32.mrf.mxu0  ;;  %v2011_v23 = vpop.f32.mrf.mxu1 }
 0x312   : > { %v6059_v36 = vsub.f32 %v5186_v45, %v1754_v42  ;;  %v6062_v38 = vsub.f32 %v5188_v46, %v2011_v23  ;;  %2505 = vmatprep.mubr.f32.mxu0 %v2305_v39  ;;  %2730 = vmatprep.mubr.f32.mxu1 %v2307_v13  ;;  %v2308_v44 = vmul.f32 %v6051_v41, %v6051_v41 }
 0x313   : > { %v1758_v15 = vpop.f32.mrf.mxu0  ;;  %v2015_v31 = vpop.f32.mrf.mxu1  ;;  %2506 = vmatmul.mubr.f32.gmra.mxu0 %v2304_v40  ;;  %2731 = vmatmul.mubr.f32.gmra.mxu1 %v2306_v35  ;;  %v2310_v39 = vmul.f32 %v6056_v2, %v6056_v2 }
 0x314   : > { %v2309_v43 = vmul.f32 %v6059_v36, %v6059_v36  ;;  %v2311_v16 = vmul.f32 %v6062_v38, %v6062_v38  ;;  %v6071_v45 = vsub.f32 %v5192_v47, %v1758_v15  ;;  %v6076_v13 = vsub.f32 %v5194_v48, %v2015_v31 }
 0x315   : > { %v1760_v46 = vpop.f32.mrf.mxu0  ;;  %v2017_v27 = vpop.f32.mrf.mxu1 }
 0x316   : > { %v6079_v40 = vsub.f32 %v5198_v49, %v1760_v46  ;;  %v6082_v42 = vsub.f32 %v5200_v50, %v2017_v27  ;;  %2510 = vmatprep.mubr.f32.mxu0 %v2309_v43  ;;  %2735 = vmatprep.mubr.f32.mxu1 %v2311_v16  ;;  %v2312_v48 = vmul.f32 %v6071_v45, %v6071_v45 }
 0x317   : > { %v1764_v23 = vpop.f32.mrf.mxu0  ;;  %v2021_v35 = vpop.f32.mrf.mxu1  ;;  %2511 = vmatmul.mubr.f32.gmra.mxu0 %v2308_v44  ;;  %2736 = vmatmul.mubr.f32.gmra.mxu1 %v2310_v39  ;;  %v2314_v43 = vmul.f32 %v6076_v13, %v6076_v13 }
 0x318   : > { %7281 = vst [vmem:[#allocation83_spill] sm:$0xff] %v6079_v40  ;;  %7282 = vst [vmem:[#allocation84_spill] sm:$0xff] %v6082_v42  ;;  %v2313_v47 = vmul.f32 %v6079_v40, %v6079_v40  ;;  %v2315_v15 = vmul.f32 %v6082_v42, %v6082_v42  ;;  %v6091_v49 = vsub.f32 %v5204_v51, %v1764_v23  ;;  %v7293_v42 = vld [vmem:[#allocation8_spill] sm:$0xff] }
 0x319   : > { %v1766_v50 = vpop.f32.mrf.mxu0  ;;  %v2023_v31 = vpop.f32.mrf.mxu1  ;;  %v6096_v16 = vsub.f32 %v5206_v52, %v2021_v35 }
 0x31a   : > { %7283 = vst [vmem:[#allocation85_spill] sm:$0xff] %v6091_v49  ;;  %v6099_v44 = vsub.f32 %v5210_v53, %v1766_v50  ;;  %v6102_v46 = vsub.f32 %v5212_v54, %v2023_v31  ;;  %2515 = vmatprep.mubr.f32.mxu0 %v2313_v47  ;;  %2740 = vmatprep.mubr.f32.mxu1 %v2315_v15  ;;  %v7287_v53 = vld [vmem:[#allocation5_spill] sm:$0xff]  ;;  %v7289_v15 = vld [vmem:[#allocation6_spill] sm:$0xff]  ;;  %v7291_v31 = vld [vmem:[#allocation7_spill] sm:$0xff] }
 0x31b   : > { %7284 = vst [vmem:[#allocation86_spill] sm:$0xff] %v6096_v16  ;;  %v1770_v27 = vpop.f32.mrf.mxu0  ;;  %v2027_v39 = vpop.f32.mrf.mxu1  ;;  %2516 = vmatmul.mubr.f32.gmra.mxu0 %v2312_v48  ;;  %2741 = vmatmul.mubr.f32.gmra.mxu1 %v2314_v43  ;;  %v2316_v52 = vmul.f32 %v6091_v49, %v6091_v49  ;;  %v2318_v47 = vmul.f32 %v6096_v16, %v6096_v16  ;;  %v7301_v16 = vld [vmem:[#allocation12_spill] sm:$0xff] }
 0x31c   : > { %7285 = vst [vmem:[#allocation87_spill] sm:$0xff] %v6099_v44  ;;  %7286 = vst [vmem:[#allocation88_spill] sm:$0xff] %v6102_v46  ;;  %v2317_v51 = vmul.f32 %v6099_v44, %v6099_v44  ;;  %v2319_v23 = vmul.f32 %v6102_v46, %v6102_v46  ;;  %v6111_v35 = vsub.f32 %v7287_v53, %v1770_v27 }
 0x31d   : > { %v1772_v54 = vpop.f32.mrf.mxu0  ;;  %v2029_v50 = vpop.f32.mrf.mxu1  ;;  %v6116_v48 = vsub.f32 %v7289_v15, %v2027_v39 }
 0x31e   : > { %7288 = vst [vmem:[#allocation5_spill] sm:$0xff] %v6111_v35  ;;  %v6119_v44 = vsub.f32 %v7291_v31, %v1772_v54  ;;  %v6122_v46 = vsub.f32 %v7293_v42, %v2029_v50  ;;  %2520 = vmatprep.mubr.f32.mxu0 %v2317_v51  ;;  %2745 = vmatprep.mubr.f32.mxu1 %v2319_v23  ;;  %v7295_v54 = vld [vmem:[#allocation9_spill] sm:$0xff]  ;;  %v7297_v23 = vld [vmem:[#allocation10_spill] sm:$0xff]  ;;  %v7299_v31 = vld [vmem:[#allocation11_spill] sm:$0xff] }
 0x31f   : > { %7290 = vst [vmem:[#allocation6_spill] sm:$0xff] %v6116_v48  ;;  %v1776_v43 = vpop.f32.mrf.mxu0  ;;  %v2033_v49 = vpop.f32.mrf.mxu1  ;;  %2521 = vmatmul.mubr.f32.gmra.mxu0 %v2316_v52  ;;  %2746 = vmatmul.mubr.f32.gmra.mxu1 %v2318_v47  ;;  %v2320_v39 = vmul.f32 %v6111_v35, %v6111_v35  ;;  %v2322_v51 = vmul.f32 %v6116_v48, %v6116_v48  ;;  %v7309_v48 = vld [vmem:[#allocation16_spill] sm:$0xff] }
 0x320   : > { %7292 = vst [vmem:[#allocation7_spill] sm:$0xff] %v6119_v44  ;;  %7294 = vst [vmem:[#allocation8_spill] sm:$0xff] %v6122_v46  ;;  %v2321_v27 = vmul.f32 %v6119_v44, %v6119_v44  ;;  %v2323_v53 = vmul.f32 %v6122_v46, %v6122_v46  ;;  %v6131_v15 = vsub.f32 %v7295_v54, %v1776_v43 }
 0x321   : > { %v1778_v42 = vpop.f32.mrf.mxu0  ;;  %v2035_v50 = vpop.f32.mrf.mxu1  ;;  %v6136_v52 = vsub.f32 %v7297_v23, %v2033_v49 }
 0x322   : > { %7296 = vst [vmem:[#allocation9_spill] sm:$0xff] %v6131_v15  ;;  %v6139_v44 = vsub.f32 %v7299_v31, %v1778_v42  ;;  %v6142_v46 = vsub.f32 %v7301_v16, %v2035_v50  ;;  %2525 = vmatprep.mubr.f32.mxu0 %v2321_v27  ;;  %2750 = vmatprep.mubr.f32.mxu1 %v2323_v53  ;;  %v7303_v42 = vld [vmem:[#allocation13_spill] sm:$0xff]  ;;  %v7305_v53 = vld [vmem:[#allocation14_spill] sm:$0xff]  ;;  %v7307_v31 = vld [vmem:[#allocation15_spill] sm:$0xff] }
 0x323   : > { %7298 = vst [vmem:[#allocation10_spill] sm:$0xff] %v6136_v52  ;;  %v1782_v47 = vpop.f32.mrf.mxu0  ;;  %v2039_v35 = vpop.f32.mrf.mxu1  ;;  %2526 = vmatmul.mubr.f32.gmra.mxu0 %v2320_v39  ;;  %2751 = vmatmul.mubr.f32.gmra.mxu1 %v2322_v51  ;;  %v2324_v49 = vmul.f32 %v6131_v15, %v6131_v15  ;;  %v2326_v27 = vmul.f32 %v6136_v52, %v6136_v52  ;;  %v7317_v52 = vld [vmem:[#allocation20_spill] sm:$0xff] }
 0x324   : > { %7300 = vst [vmem:[#allocation11_spill] sm:$0xff] %v6139_v44  ;;  %7302 = vst [vmem:[#allocation12_spill] sm:$0xff] %v6142_v46  ;;  %v2325_v43 = vmul.f32 %v6139_v44, %v6139_v44  ;;  %v2327_v54 = vmul.f32 %v6142_v46, %v6142_v46  ;;  %v6151_v23 = vsub.f32 %v7303_v42, %v1782_v47 }
 0x325   : > { %v1784_v16 = vpop.f32.mrf.mxu0  ;;  %v2041_v50 = vpop.f32.mrf.mxu1  ;;  %v6156_v39 = vsub.f32 %v7305_v53, %v2039_v35 }
 0x326   : > { %7304 = vst [vmem:[#allocation13_spill] sm:$0xff] %v6151_v23  ;;  %v6159_v44 = vsub.f32 %v7307_v31, %v1784_v16  ;;  %v6162_v46 = vsub.f32 %v7309_v48, %v2041_v50  ;;  %2530 = vmatprep.mubr.f32.mxu0 %v2325_v43  ;;  %2755 = vmatprep.mubr.f32.mxu1 %v2327_v54  ;;  %v7311_v16 = vld [vmem:[#allocation17_spill] sm:$0xff]  ;;  %v7313_v54 = vld [vmem:[#allocation18_spill] sm:$0xff]  ;;  %v7315_v31 = vld [vmem:[#allocation19_spill] sm:$0xff] }
 0x327   : > { %7306 = vst [vmem:[#allocation14_spill] sm:$0xff] %v6156_v39  ;;  %v1788_v51 = vpop.f32.mrf.mxu0  ;;  %v2045_v15 = vpop.f32.mrf.mxu1  ;;  %2531 = vmatmul.mubr.f32.gmra.mxu0 %v2324_v49  ;;  %2756 = vmatmul.mubr.f32.gmra.mxu1 %v2326_v27  ;;  %v2328_v35 = vmul.f32 %v6151_v23, %v6151_v23  ;;  %v2330_v43 = vmul.f32 %v6156_v39, %v6156_v39  ;;  %v7325_v39 = vld [vmem:[#allocation24_spill] sm:$0xff] }
 0x328   : > { %7308 = vst [vmem:[#allocation15_spill] sm:$0xff] %v6159_v44  ;;  %7310 = vst [vmem:[#allocation16_spill] sm:$0xff] %v6162_v46  ;;  %v2329_v47 = vmul.f32 %v6159_v44, %v6159_v44  ;;  %v2331_v42 = vmul.f32 %v6162_v46, %v6162_v46  ;;  %v6171_v53 = vsub.f32 %v7311_v16, %v1788_v51 }
 0x329   : > { %v1790_v48 = vpop.f32.mrf.mxu0  ;;  %v2047_v50 = vpop.f32.mrf.mxu1  ;;  %v6176_v49 = vsub.f32 %v7313_v54, %v2045_v15 }
 0x32a   : > { %7312 = vst [vmem:[#allocation17_spill] sm:$0xff] %v6171_v53  ;;  %v6179_v44 = vsub.f32 %v7315_v31, %v1790_v48  ;;  %v6182_v46 = vsub.f32 %v7317_v52, %v2047_v50  ;;  %2535 = vmatprep.mubr.f32.mxu0 %v2329_v47  ;;  %2760 = vmatprep.mubr.f32.mxu1 %v2331_v42  ;;  %v7319_v48 = vld [vmem:[#allocation21_spill] sm:$0xff]  ;;  %v7321_v42 = vld [vmem:[#allocation22_spill] sm:$0xff]  ;;  %v7323_v31 = vld [vmem:[#allocation23_spill] sm:$0xff] }
 0x32b   : > { %7314 = vst [vmem:[#allocation18_spill] sm:$0xff] %v6176_v49  ;;  %v1794_v27 = vpop.f32.mrf.mxu0  ;;  %v2051_v23 = vpop.f32.mrf.mxu1  ;;  %2536 = vmatmul.mubr.f32.gmra.mxu0 %v2328_v35  ;;  %2761 = vmatmul.mubr.f32.gmra.mxu1 %v2330_v43  ;;  %v2332_v15 = vmul.f32 %v6171_v53, %v6171_v53  ;;  %v2334_v47 = vmul.f32 %v6176_v49, %v6176_v49  ;;  %v7333_v49 = vld [vmem:[#allocation28_spill] sm:$0xff] }
 0x32c   : > { %7316 = vst [vmem:[#allocation19_spill] sm:$0xff] %v6179_v44  ;;  %7318 = vst [vmem:[#allocation20_spill] sm:$0xff] %v6182_v46  ;;  %v2333_v51 = vmul.f32 %v6179_v44, %v6179_v44  ;;  %v2335_v16 = vmul.f32 %v6182_v46, %v6182_v46  ;;  %v6191_v54 = vsub.f32 %v7319_v48, %v1794_v27 }
 0x32d   : > { %v1796_v52 = vpop.f32.mrf.mxu0  ;;  %v2053_v50 = vpop.f32.mrf.mxu1  ;;  %v6196_v35 = vsub.f32 %v7321_v42, %v2051_v23 }
 0x32e   : > { %7320 = vst [vmem:[#allocation21_spill] sm:$0xff] %v6191_v54  ;;  %v6199_v44 = vsub.f32 %v7323_v31, %v1796_v52  ;;  %v6202_v46 = vsub.f32 %v7325_v39, %v2053_v50  ;;  %2540 = vmatprep.mubr.f32.mxu0 %v2333_v51  ;;  %2765 = vmatprep.mubr.f32.mxu1 %v2335_v16  ;;  %v7327_v52 = vld [vmem:[#allocation25_spill] sm:$0xff]  ;;  %v7329_v16 = vld [vmem:[#allocation26_spill] sm:$0xff]  ;;  %v7331_v31 = vld [vmem:[#allocation27_spill] sm:$0xff] }
 0x32f   : > { %7322 = vst [vmem:[#allocation22_spill] sm:$0xff] %v6196_v35  ;;  %v1800_v43 = vpop.f32.mrf.mxu0  ;;  %v2057_v53 = vpop.f32.mrf.mxu1  ;;  %2541 = vmatmul.mubr.f32.gmra.mxu0 %v2332_v15  ;;  %2766 = vmatmul.mubr.f32.gmra.mxu1 %v2334_v47  ;;  %v2336_v23 = vmul.f32 %v6191_v54, %v6191_v54  ;;  %v2338_v51 = vmul.f32 %v6196_v35, %v6196_v35  ;;  %v7341_v35 = vld [vmem:[#allocation32_spill] sm:$0xff] }
 0x330   : > { %7324 = vst [vmem:[#allocation23_spill] sm:$0xff] %v6199_v44  ;;  %7326 = vst [vmem:[#allocation24_spill] sm:$0xff] %v6202_v46  ;;  %v2337_v27 = vmul.f32 %v6199_v44, %v6199_v44  ;;  %v2339_v48 = vmul.f32 %v6202_v46, %v6202_v46  ;;  %v6211_v42 = vsub.f32 %v7327_v52, %v1800_v43 }
 0x331   : > { %v1802_v39 = vpop.f32.mrf.mxu0  ;;  %v2059_v50 = vpop.f32.mrf.mxu1  ;;  %v6216_v15 = vsub.f32 %v7329_v16, %v2057_v53 }
 0x332   : > { %7328 = vst [vmem:[#allocation25_spill] sm:$0xff] %v6211_v42  ;;  %v6219_v44 = vsub.f32 %v7331_v31, %v1802_v39  ;;  %v6222_v46 = vsub.f32 %v7333_v49, %v2059_v50  ;;  %2545 = vmatprep.mubr.f32.mxu0 %v2337_v27  ;;  %2770 = vmatprep.mubr.f32.mxu1 %v2339_v48  ;;  %v7335_v39 = vld [vmem:[#allocation29_spill] sm:$0xff]  ;;  %v7337_v48 = vld [vmem:[#allocation30_spill] sm:$0xff]  ;;  %v7339_v31 = vld [vmem:[#allocation31_spill] sm:$0xff] }
 0x333   : > { %7330 = vst [vmem:[#allocation26_spill] sm:$0xff] %v6216_v15  ;;  %v1806_v47 = vpop.f32.mrf.mxu0  ;;  %v2063_v54 = vpop.f32.mrf.mxu1  ;;  %2546 = vmatmul.mubr.f32.gmra.mxu0 %v2336_v23  ;;  %2771 = vmatmul.mubr.f32.gmra.mxu1 %v2338_v51  ;;  %v2340_v53 = vmul.f32 %v6211_v42, %v6211_v42  ;;  %v2342_v27 = vmul.f32 %v6216_v15, %v6216_v15  ;;  %v7349_v15 = vld [vmem:[#allocation36_spill] sm:$0xff] }
 0x334   : > { %7332 = vst [vmem:[#allocation27_spill] sm:$0xff] %v6219_v44  ;;  %7334 = vst [vmem:[#allocation28_spill] sm:$0xff] %v6222_v46  ;;  %v2341_v43 = vmul.f32 %v6219_v44, %v6219_v44  ;;  %v2343_v52 = vmul.f32 %v6222_v46, %v6222_v46  ;;  %v6231_v16 = vsub.f32 %v7335_v39, %v1806_v47 }
 0x335   : > { %v1808_v49 = vpop.f32.mrf.mxu0  ;;  %v2065_v50 = vpop.f32.mrf.mxu1  ;;  %v6236_v23 = vsub.f32 %v7337_v48, %v2063_v54 }
 0x336   : > { %7336 = vst [vmem:[#allocation29_spill] sm:$0xff] %v6231_v16  ;;  %v6239_v44 = vsub.f32 %v7339_v31, %v1808_v49  ;;  %v6242_v46 = vsub.f32 %v7341_v35, %v2065_v50  ;;  %2550 = vmatprep.mubr.f32.mxu0 %v2341_v43  ;;  %2775 = vmatprep.mubr.f32.mxu1 %v2343_v52  ;;  %v7343_v49 = vld [vmem:[#allocation33_spill] sm:$0xff]  ;;  %v7345_v52 = vld [vmem:[#allocation34_spill] sm:$0xff]  ;;  %v7347_v31 = vld [vmem:[#allocation35_spill] sm:$0xff] }
 0x337   : > { %7338 = vst [vmem:[#allocation30_spill] sm:$0xff] %v6236_v23  ;;  %v1812_v51 = vpop.f32.mrf.mxu0  ;;  %v2069_v42 = vpop.f32.mrf.mxu1  ;;  %2551 = vmatmul.mubr.f32.gmra.mxu0 %v2340_v53  ;;  %2776 = vmatmul.mubr.f32.gmra.mxu1 %v2342_v27  ;;  %v2344_v54 = vmul.f32 %v6231_v16, %v6231_v16  ;;  %v2346_v43 = vmul.f32 %v6236_v23, %v6236_v23  ;;  %v7357_v23 = vld [vmem:[#allocation40_spill] sm:$0xff] }
 0x338   : > { %7340 = vst [vmem:[#allocation31_spill] sm:$0xff] %v6239_v44  ;;  %7342 = vst [vmem:[#allocation32_spill] sm:$0xff] %v6242_v46  ;;  %v2345_v47 = vmul.f32 %v6239_v44, %v6239_v44  ;;  %v2347_v39 = vmul.f32 %v6242_v46, %v6242_v46  ;;  %v6251_v48 = vsub.f32 %v7343_v49, %v1812_v51 }
 0x339   : > { %v1814_v35 = vpop.f32.mrf.mxu0  ;;  %v2071_v50 = vpop.f32.mrf.mxu1  ;;  %v6256_v53 = vsub.f32 %v7345_v52, %v2069_v42 }
 0x33a   : > { %7344 = vst [vmem:[#allocation33_spill] sm:$0xff] %v6251_v48  ;;  %v6259_v44 = vsub.f32 %v7347_v31, %v1814_v35  ;;  %v6262_v46 = vsub.f32 %v7349_v15, %v2071_v50  ;;  %2555 = vmatprep.mubr.f32.mxu0 %v2345_v47  ;;  %2780 = vmatprep.mubr.f32.mxu1 %v2347_v39  ;;  %v7351_v35 = vld [vmem:[#allocation37_spill] sm:$0xff]  ;;  %v7353_v39 = vld [vmem:[#allocation38_spill] sm:$0xff]  ;;  %v7355_v31 = vld [vmem:[#allocation39_spill] sm:$0xff] }
 0x33b   : > { %7346 = vst [vmem:[#allocation34_spill] sm:$0xff] %v6256_v53  ;;  %v1818_v27 = vpop.f32.mrf.mxu0  ;;  %v2075_v16 = vpop.f32.mrf.mxu1  ;;  %2556 = vmatmul.mubr.f32.gmra.mxu0 %v2344_v54  ;;  %2781 = vmatmul.mubr.f32.gmra.mxu1 %v2346_v43  ;;  %v2348_v42 = vmul.f32 %v6251_v48, %v6251_v48  ;;  %v2350_v47 = vmul.f32 %v6256_v53, %v6256_v53  ;;  %v7365_v53 = vld [vmem:[#allocation44_spill] sm:$0xff] }
 0x33c   : > { %7348 = vst [vmem:[#allocation35_spill] sm:$0xff] %v6259_v44  ;;  %7350 = vst [vmem:[#allocation36_spill] sm:$0xff] %v6262_v46  ;;  %v2349_v51 = vmul.f32 %v6259_v44, %v6259_v44  ;;  %v2351_v49 = vmul.f32 %v6262_v46, %v6262_v46  ;;  %v6271_v52 = vsub.f32 %v7351_v35, %v1818_v27 }
 0x33d   : > { %v1820_v15 = vpop.f32.mrf.mxu0  ;;  %v2077_v50 = vpop.f32.mrf.mxu1  ;;  %v6276_v54 = vsub.f32 %v7353_v39, %v2075_v16 }
 0x33e   : > { %7352 = vst [vmem:[#allocation37_spill] sm:$0xff] %v6271_v52  ;;  %v6279_v44 = vsub.f32 %v7355_v31, %v1820_v15  ;;  %v6282_v46 = vsub.f32 %v7357_v23, %v2077_v50  ;;  %2560 = vmatprep.mubr.f32.mxu0 %v2349_v51  ;;  %2785 = vmatprep.mubr.f32.mxu1 %v2351_v49  ;;  %v7359_v15 = vld [vmem:[#allocation41_spill] sm:$0xff]  ;;  %v7361_v49 = vld [vmem:[#allocation42_spill] sm:$0xff]  ;;  %v7363_v31 = vld [vmem:[#allocation43_spill] sm:$0xff] }
 0x33f   : > { %7354 = vst [vmem:[#allocation38_spill] sm:$0xff] %v6276_v54  ;;  %v1824_v43 = vpop.f32.mrf.mxu0  ;;  %v2081_v48 = vpop.f32.mrf.mxu1  ;;  %2561 = vmatmul.mubr.f32.gmra.mxu0 %v2348_v42  ;;  %2786 = vmatmul.mubr.f32.gmra.mxu1 %v2350_v47  ;;  %v2352_v16 = vmul.f32 %v6271_v52, %v6271_v52  ;;  %v2354_v51 = vmul.f32 %v6276_v54, %v6276_v54  ;;  %v7373_v54 = vld [vmem:[#allocation48_spill] sm:$0xff] }
 0x340   : > { %7356 = vst [vmem:[#allocation39_spill] sm:$0xff] %v6279_v44  ;;  %7358 = vst [vmem:[#allocation40_spill] sm:$0xff] %v6282_v46  ;;  %v2353_v27 = vmul.f32 %v6279_v44, %v6279_v44  ;;  %v2355_v35 = vmul.f32 %v6282_v46, %v6282_v46  ;;  %v6291_v39 = vsub.f32 %v7359_v15, %v1824_v43 }
 0x341   : > { %v1826_v23 = vpop.f32.mrf.mxu0  ;;  %v2083_v50 = vpop.f32.mrf.mxu1  ;;  %v6296_v42 = vsub.f32 %v7361_v49, %v2081_v48 }
 0x342   : > { %7360 = vst [vmem:[#allocation41_spill] sm:$0xff] %v6291_v39  ;;  %v6299_v44 = vsub.f32 %v7363_v31, %v1826_v23  ;;  %v6302_v46 = vsub.f32 %v7365_v53, %v2083_v50  ;;  %2565 = vmatprep.mubr.f32.mxu0 %v2353_v27  ;;  %2790 = vmatprep.mubr.f32.mxu1 %v2355_v35  ;;  %v7367_v23 = vld [vmem:[#allocation45_spill] sm:$0xff]  ;;  %v7369_v35 = vld [vmem:[#allocation46_spill] sm:$0xff]  ;;  %v7371_v31 = vld [vmem:[#allocation47_spill] sm:$0xff] }
 0x343   : > { %7362 = vst [vmem:[#allocation42_spill] sm:$0xff] %v6296_v42  ;;  %v1830_v47 = vpop.f32.mrf.mxu0  ;;  %v2087_v52 = vpop.f32.mrf.mxu1  ;;  %2566 = vmatmul.mubr.f32.gmra.mxu0 %v2352_v16  ;;  %2791 = vmatmul.mubr.f32.gmra.mxu1 %v2354_v51  ;;  %v2356_v48 = vmul.f32 %v6291_v39, %v6291_v39  ;;  %v2358_v27 = vmul.f32 %v6296_v42, %v6296_v42  ;;  %v7381_v42 = vld [vmem:[#allocation52_spill] sm:$0xff] }
 0x344   : > { %7364 = vst [vmem:[#allocation43_spill] sm:$0xff] %v6299_v44  ;;  %7366 = vst [vmem:[#allocation44_spill] sm:$0xff] %v6302_v46  ;;  %v2357_v43 = vmul.f32 %v6299_v44, %v6299_v44  ;;  %v2359_v15 = vmul.f32 %v6302_v46, %v6302_v46  ;;  %v6311_v49 = vsub.f32 %v7367_v23, %v1830_v47 }
 0x345   : > { %v1832_v53 = vpop.f32.mrf.mxu0  ;;  %v2089_v50 = vpop.f32.mrf.mxu1  ;;  %v6316_v16 = vsub.f32 %v7369_v35, %v2087_v52 }
 0x346   : > { %7368 = vst [vmem:[#allocation45_spill] sm:$0xff] %v6311_v49  ;;  %v6319_v44 = vsub.f32 %v7371_v31, %v1832_v53  ;;  %v6322_v46 = vsub.f32 %v7373_v54, %v2089_v50  ;;  %2570 = vmatprep.mubr.f32.mxu0 %v2357_v43  ;;  %2795 = vmatprep.mubr.f32.mxu1 %v2359_v15  ;;  %v7375_v53 = vld [vmem:[#allocation49_spill] sm:$0xff]  ;;  %v7377_v15 = vld [vmem:[#allocation50_spill] sm:$0xff]  ;;  %v7379_v31 = vld [vmem:[#allocation51_spill] sm:$0xff] }
 0x347   : > { %7370 = vst [vmem:[#allocation46_spill] sm:$0xff] %v6316_v16  ;;  %v1836_v51 = vpop.f32.mrf.mxu0  ;;  %v2093_v39 = vpop.f32.mrf.mxu1  ;;  %2571 = vmatmul.mubr.f32.gmra.mxu0 %v2356_v48  ;;  %2796 = vmatmul.mubr.f32.gmra.mxu1 %v2358_v27  ;;  %v2360_v52 = vmul.f32 %v6311_v49, %v6311_v49  ;;  %v2362_v43 = vmul.f32 %v6316_v16, %v6316_v16  ;;  %v7389_v16 = vld [vmem:[#allocation56_spill] sm:$0xff] }
 0x348   : > { %7372 = vst [vmem:[#allocation47_spill] sm:$0xff] %v6319_v44  ;;  %7374 = vst [vmem:[#allocation48_spill] sm:$0xff] %v6322_v46  ;;  %v2361_v47 = vmul.f32 %v6319_v44, %v6319_v44  ;;  %v2363_v23 = vmul.f32 %v6322_v46, %v6322_v46  ;;  %v6331_v35 = vsub.f32 %v7375_v53, %v1836_v51 }
 0x349   : > { %v1838_v54 = vpop.f32.mrf.mxu0  ;;  %v2095_v50 = vpop.f32.mrf.mxu1  ;;  %v6336_v48 = vsub.f32 %v7377_v15, %v2093_v39 }
 0x34a   : > { %7376 = vst [vmem:[#allocation49_spill] sm:$0xff] %v6331_v35  ;;  %v6339_v44 = vsub.f32 %v7379_v31, %v1838_v54  ;;  %v6342_v46 = vsub.f32 %v7381_v42, %v2095_v50  ;;  %2575 = vmatprep.mubr.f32.mxu0 %v2361_v47  ;;  %2800 = vmatprep.mubr.f32.mxu1 %v2363_v23  ;;  %v7383_v54 = vld [vmem:[#allocation53_spill] sm:$0xff]  ;;  %v7385_v23 = vld [vmem:[#allocation54_spill] sm:$0xff]  ;;  %v7387_v31 = vld [vmem:[#allocation55_spill] sm:$0xff] }
 0x34b   : > { %7378 = vst [vmem:[#allocation50_spill] sm:$0xff] %v6336_v48  ;;  %v1842_v27 = vpop.f32.mrf.mxu0  ;;  %v2099_v49 = vpop.f32.mrf.mxu1  ;;  %2576 = vmatmul.mubr.f32.gmra.mxu0 %v2360_v52  ;;  %2801 = vmatmul.mubr.f32.gmra.mxu1 %v2362_v43  ;;  %v2364_v39 = vmul.f32 %v6331_v35, %v6331_v35  ;;  %v2366_v47 = vmul.f32 %v6336_v48, %v6336_v48  ;;  %v7397_v48 = vld [vmem:[#allocation60_spill] sm:$0xff] }
 0x34c   : > { %7380 = vst [vmem:[#allocation51_spill] sm:$0xff] %v6339_v44  ;;  %7382 = vst [vmem:[#allocation52_spill] sm:$0xff] %v6342_v46  ;;  %v2365_v51 = vmul.f32 %v6339_v44, %v6339_v44  ;;  %v2367_v53 = vmul.f32 %v6342_v46, %v6342_v46  ;;  %v6351_v15 = vsub.f32 %v7383_v54, %v1842_v27 }
 0x34d   : > { %v1844_v42 = vpop.f32.mrf.mxu0  ;;  %v2101_v50 = vpop.f32.mrf.mxu1  ;;  %v6356_v52 = vsub.f32 %v7385_v23, %v2099_v49 }
 0x34e   : > { %7384 = vst [vmem:[#allocation53_spill] sm:$0xff] %v6351_v15  ;;  %v6359_v44 = vsub.f32 %v7387_v31, %v1844_v42  ;;  %v6362_v46 = vsub.f32 %v7389_v16, %v2101_v50  ;;  %2580 = vmatprep.mubr.f32.mxu0 %v2365_v51  ;;  %2805 = vmatprep.mubr.f32.mxu1 %v2367_v53  ;;  %v7391_v42 = vld [vmem:[#allocation57_spill] sm:$0xff]  ;;  %v7393_v53 = vld [vmem:[#allocation58_spill] sm:$0xff]  ;;  %v7395_v31 = vld [vmem:[#allocation59_spill] sm:$0xff] }
 0x34f   : > { %7386 = vst [vmem:[#allocation54_spill] sm:$0xff] %v6356_v52  ;;  %v1848_v43 = vpop.f32.mrf.mxu0  ;;  %v2105_v35 = vpop.f32.mrf.mxu1  ;;  %2581 = vmatmul.mubr.f32.gmra.mxu0 %v2364_v39  ;;  %2806 = vmatmul.mubr.f32.gmra.mxu1 %v2366_v47  ;;  %v2368_v49 = vmul.f32 %v6351_v15, %v6351_v15  ;;  %v2370_v51 = vmul.f32 %v6356_v52, %v6356_v52  ;;  %v7405_v52 = vld [vmem:[#allocation64_spill] sm:$0xff] }
 0x350   : > { %7388 = vst [vmem:[#allocation55_spill] sm:$0xff] %v6359_v44  ;;  %7390 = vst [vmem:[#allocation56_spill] sm:$0xff] %v6362_v46  ;;  %v2369_v27 = vmul.f32 %v6359_v44, %v6359_v44  ;;  %v2371_v54 = vmul.f32 %v6362_v46, %v6362_v46  ;;  %v6371_v23 = vsub.f32 %v7391_v42, %v1848_v43 }
 0x351   : > { %v1850_v16 = vpop.f32.mrf.mxu0  ;;  %v2107_v50 = vpop.f32.mrf.mxu1  ;;  %v6376_v39 = vsub.f32 %v7393_v53, %v2105_v35 }
 0x352   : > { %7392 = vst [vmem:[#allocation57_spill] sm:$0xff] %v6371_v23  ;;  %v6379_v44 = vsub.f32 %v7395_v31, %v1850_v16  ;;  %v6382_v46 = vsub.f32 %v7397_v48, %v2107_v50  ;;  %2585 = vmatprep.mubr.f32.mxu0 %v2369_v27  ;;  %2810 = vmatprep.mubr.f32.mxu1 %v2371_v54  ;;  %v7399_v16 = vld [vmem:[#allocation61_spill] sm:$0xff]  ;;  %v7401_v54 = vld [vmem:[#allocation62_spill] sm:$0xff]  ;;  %v7403_v31 = vld [vmem:[#allocation63_spill] sm:$0xff] }
 0x353   : > { %7394 = vst [vmem:[#allocation58_spill] sm:$0xff] %v6376_v39  ;;  %v1854_v47 = vpop.f32.mrf.mxu0  ;;  %v2111_v15 = vpop.f32.mrf.mxu1  ;;  %2586 = vmatmul.mubr.f32.gmra.mxu0 %v2368_v49  ;;  %2811 = vmatmul.mubr.f32.gmra.mxu1 %v2370_v51  ;;  %v2372_v35 = vmul.f32 %v6371_v23, %v6371_v23  ;;  %v2374_v27 = vmul.f32 %v6376_v39, %v6376_v39  ;;  %v7413_v39 = vld [vmem:[#allocation68_spill] sm:$0xff] }
 0x354   : > { %7396 = vst [vmem:[#allocation59_spill] sm:$0xff] %v6379_v44  ;;  %7398 = vst [vmem:[#allocation60_spill] sm:$0xff] %v6382_v46  ;;  %v2373_v43 = vmul.f32 %v6379_v44, %v6379_v44  ;;  %v2375_v42 = vmul.f32 %v6382_v46, %v6382_v46  ;;  %v6391_v53 = vsub.f32 %v7399_v16, %v1854_v47 }
 0x355   : > { %v1856_v48 = vpop.f32.mrf.mxu0  ;;  %v2113_v50 = vpop.f32.mrf.mxu1  ;;  %v6396_v49 = vsub.f32 %v7401_v54, %v2111_v15 }
 0x356   : > { %7400 = vst [vmem:[#allocation61_spill] sm:$0xff] %v6391_v53  ;;  %v6399_v44 = vsub.f32 %v7403_v31, %v1856_v48  ;;  %v6402_v46 = vsub.f32 %v7405_v52, %v2113_v50  ;;  %2590 = vmatprep.mubr.f32.mxu0 %v2373_v43  ;;  %2815 = vmatprep.mubr.f32.mxu1 %v2375_v42  ;;  %v7407_v48 = vld [vmem:[#allocation65_spill] sm:$0xff]  ;;  %v7409_v42 = vld [vmem:[#allocation66_spill] sm:$0xff]  ;;  %v7411_v31 = vld [vmem:[#allocation67_spill] sm:$0xff] }
 0x357   : > { %7402 = vst [vmem:[#allocation62_spill] sm:$0xff] %v6396_v49  ;;  %v1860_v51 = vpop.f32.mrf.mxu0  ;;  %v2117_v23 = vpop.f32.mrf.mxu1  ;;  %2591 = vmatmul.mubr.f32.gmra.mxu0 %v2372_v35  ;;  %2816 = vmatmul.mubr.f32.gmra.mxu1 %v2374_v27  ;;  %v2376_v15 = vmul.f32 %v6391_v53, %v6391_v53  ;;  %v2378_v43 = vmul.f32 %v6396_v49, %v6396_v49  ;;  %v7421_v49 = vld [vmem:[#allocation72_spill] sm:$0xff] }
 0x358   : > { %7404 = vst [vmem:[#allocation63_spill] sm:$0xff] %v6399_v44  ;;  %7406 = vst [vmem:[#allocation64_spill] sm:$0xff] %v6402_v46  ;;  %v2377_v47 = vmul.f32 %v6399_v44, %v6399_v44  ;;  %v2379_v16 = vmul.f32 %v6402_v46, %v6402_v46  ;;  %v6411_v54 = vsub.f32 %v7407_v48, %v1860_v51 }
 0x359   : > { %v1862_v52 = vpop.f32.mrf.mxu0  ;;  %v2119_v50 = vpop.f32.mrf.mxu1  ;;  %v6416_v35 = vsub.f32 %v7409_v42, %v2117_v23 }
 0x35a   : > { %7408 = vst [vmem:[#allocation65_spill] sm:$0xff] %v6411_v54  ;;  %v6419_v44 = vsub.f32 %v7411_v31, %v1862_v52  ;;  %v6422_v46 = vsub.f32 %v7413_v39, %v2119_v50  ;;  %2595 = vmatprep.mubr.f32.mxu0 %v2377_v47  ;;  %2820 = vmatprep.mubr.f32.mxu1 %v2379_v16  ;;  %v7415_v52 = vld [vmem:[#allocation69_spill] sm:$0xff]  ;;  %v7417_v16 = vld [vmem:[#allocation70_spill] sm:$0xff]  ;;  %v7419_v31 = vld [vmem:[#allocation71_spill] sm:$0xff] }
 0x35b   : > { %7410 = vst [vmem:[#allocation66_spill] sm:$0xff] %v6416_v35  ;;  %v1866_v27 = vpop.f32.mrf.mxu0  ;;  %v2123_v53 = vpop.f32.mrf.mxu1  ;;  %2596 = vmatmul.mubr.f32.gmra.mxu0 %v2376_v15  ;;  %2821 = vmatmul.mubr.f32.gmra.mxu1 %v2378_v43  ;;  %v2380_v23 = vmul.f32 %v6411_v54, %v6411_v54  ;;  %v2382_v47 = vmul.f32 %v6416_v35, %v6416_v35  ;;  %v7429_v35 = vld [vmem:[#allocation76_spill] sm:$0xff] }
 0x35c   : > { %7412 = vst [vmem:[#allocation67_spill] sm:$0xff] %v6419_v44  ;;  %7414 = vst [vmem:[#allocation68_spill] sm:$0xff] %v6422_v46  ;;  %v2381_v51 = vmul.f32 %v6419_v44, %v6419_v44  ;;  %v2383_v48 = vmul.f32 %v6422_v46, %v6422_v46  ;;  %v6431_v42 = vsub.f32 %v7415_v52, %v1866_v27 }
 0x35d   : > { %v1868_v39 = vpop.f32.mrf.mxu0  ;;  %v2125_v50 = vpop.f32.mrf.mxu1  ;;  %v6436_v15 = vsub.f32 %v7417_v16, %v2123_v53 }
 0x35e   : > { %7416 = vst [vmem:[#allocation69_spill] sm:$0xff] %v6431_v42  ;;  %v6439_v44 = vsub.f32 %v7419_v31, %v1868_v39  ;;  %v6442_v46 = vsub.f32 %v7421_v49, %v2125_v50  ;;  %2600 = vmatprep.mubr.f32.mxu0 %v2381_v51  ;;  %2825 = vmatprep.mubr.f32.mxu1 %v2383_v48  ;;  %v7423_v39 = vld [vmem:[#allocation73_spill] sm:$0xff]  ;;  %v7425_v48 = vld [vmem:[#allocation74_spill] sm:$0xff]  ;;  %v7427_v31 = vld [vmem:[#allocation75_spill] sm:$0xff] }
 0x35f   : > { %7418 = vst [vmem:[#allocation70_spill] sm:$0xff] %v6436_v15  ;;  %v1872_v43 = vpop.f32.mrf.mxu0  ;;  %v2129_v54 = vpop.f32.mrf.mxu1  ;;  %2601 = vmatmul.mubr.f32.gmra.mxu0 %v2380_v23  ;;  %2826 = vmatmul.mubr.f32.gmra.mxu1 %v2382_v47  ;;  %v2384_v53 = vmul.f32 %v6431_v42, %v6431_v42  ;;  %v2386_v51 = vmul.f32 %v6436_v15, %v6436_v15  ;;  %v7437_v15 = vld [vmem:[#allocation80_spill] sm:$0xff] }
 0x360   : > { %7420 = vst [vmem:[#allocation71_spill] sm:$0xff] %v6439_v44  ;;  %7422 = vst [vmem:[#allocation72_spill] sm:$0xff] %v6442_v46  ;;  %v2385_v27 = vmul.f32 %v6439_v44, %v6439_v44  ;;  %v2387_v52 = vmul.f32 %v6442_v46, %v6442_v46  ;;  %v6451_v16 = vsub.f32 %v7423_v39, %v1872_v43 }
 0x361   : > { %v1874_v49 = vpop.f32.mrf.mxu0  ;;  %v2131_v50 = vpop.f32.mrf.mxu1  ;;  %v6456_v23 = vsub.f32 %v7425_v48, %v2129_v54 }
 0x362   : > { %7424 = vst [vmem:[#allocation73_spill] sm:$0xff] %v6451_v16  ;;  %v6459_v44 = vsub.f32 %v7427_v31, %v1874_v49  ;;  %v6462_v46 = vsub.f32 %v7429_v35, %v2131_v50  ;;  %2605 = vmatprep.mubr.f32.mxu0 %v2385_v27  ;;  %2830 = vmatprep.mubr.f32.mxu1 %v2387_v52  ;;  %v7431_v49 = vld [vmem:[#allocation77_spill] sm:$0xff]  ;;  %v7433_v52 = vld [vmem:[#allocation78_spill] sm:$0xff]  ;;  %v7435_v31 = vld [vmem:[#allocation79_spill] sm:$0xff] }
 0x363   : > { %7426 = vst [vmem:[#allocation74_spill] sm:$0xff] %v6456_v23  ;;  %v1878_v47 = vpop.f32.mrf.mxu0  ;;  %v2135_v42 = vpop.f32.mrf.mxu1  ;;  %2606 = vmatmul.mubr.f32.gmra.mxu0 %v2384_v53  ;;  %2831 = vmatmul.mubr.f32.gmra.mxu1 %v2386_v51  ;;  %v2388_v54 = vmul.f32 %v6451_v16, %v6451_v16  ;;  %v2390_v27 = vmul.f32 %v6456_v23, %v6456_v23 }
 0x364   : > { %7428 = vst [vmem:[#allocation75_spill] sm:$0xff] %v6459_v44  ;;  %7430 = vst [vmem:[#allocation76_spill] sm:$0xff] %v6462_v46  ;;  %v2389_v43 = vmul.f32 %v6459_v44, %v6459_v44  ;;  %v2391_v39 = vmul.f32 %v6462_v46, %v6462_v46  ;;  %v6471_v48 = vsub.f32 %v7431_v49, %v1878_v47 }
 0x365   : > { %v1880_v35 = vpop.f32.mrf.mxu0  ;;  %v2137_v50 = vpop.f32.mrf.mxu1  ;;  %v6476_v53 = vsub.f32 %v7433_v52, %v2135_v42 }
 0x366   : > { %7432 = vst [vmem:[#allocation77_spill] sm:$0xff] %v6471_v48  ;;  %v6479_v44 = vsub.f32 %v7435_v31, %v1880_v35  ;;  %v6482_v46 = vsub.f32 %v7437_v15, %v2137_v50  ;;  %2610 = vmatprep.mubr.f32.mxu0 %v2389_v43  ;;  %2835 = vmatprep.mubr.f32.mxu1 %v2391_v39  ;;  %v7439_v15 = vmov 0.0  }
 0x367   : > { %7434 = vst [vmem:[#allocation78_spill] sm:$0xff] %v6476_v53  ;;  %2611 = vmatmul.mubr.f32.gmra.mxu0 %v2388_v54  ;;  %2836 = vmatmul.mubr.f32.gmra.mxu1 %v2390_v27  ;;  %v2392_v42 = vmul.f32 %v6471_v48, %v6471_v48  ;;  %v2394_v49 = vmul.f32 %v6476_v53, %v6476_v53 }
 0x368   : > { %7436 = vst [vmem:[#allocation79_spill] sm:$0xff] %v6479_v44  ;;  %7438 = vst [vmem:[#allocation80_spill] sm:$0xff] %v6482_v46  ;;  %v2393_v51 = vmul.f32 %v6479_v44, %v6479_v44  ;;  %v2395_v47 = vmul.f32 %v6482_v46, %v6482_v46 }
 0x36a   : > { %2615 = vmatprep.mubr.f32.mxu0 %v2393_v51  ;;  %2840 = vmatprep.mubr.f32.mxu1 %v2395_v47 }
 0x36b   : > { %2616 = vmatmul.mubr.f32.gmra.mxu0 %v2392_v42  ;;  %2841 = vmatmul.mubr.f32.gmra.mxu1 %v2394_v49 }
 0x36c   : > { %3046 = vmatprep.mubr.f32.mxu0 %v7439_v15  ;;  %3303 = vmatprep.mubr.f32.mxu1 %v7439_v15 }
 0x3af   : > { %v2462_v43 = vpop.f32.mrf.mxu0  ;;  %v2687_v54 = vpop.f32.mrf.mxu1 }
 0x3b0   : > { %v2463_v39 = vadd.f32 1e-05, %v2462_v43 }
 0x3b1   : > { %v2464_v35 = vpop.f32.mrf.mxu0  ;;  %v2689_v27 = vpop.f32.mrf.mxu1 }
 0x3b2   : > { %v2688_v50 = vadd.f32 %v2687_v54, %v2463_v39 }
 0x3b3   : > { %v2467_v52 = vpop.f32.mrf.mxu0  ;;  %v2692_v46 = vpop.f32.mrf.mxu1 }
 0x3b4   : > { %4351 = vrsqrt.f32 %v2688_v50  ;;  %v2468_v31 = vadd.f32 1e-05, %v2467_v52 }
 0x3b5   : > { %v2469_v44 = vpop.f32.mrf.mxu0  ;;  %v2694_v51 = vpop.f32.mrf.mxu1 }
 0x3b6   : > { %v2693_v53 = vadd.f32 %v2692_v46, %v2468_v31 }
 0x3b7   : > { %v2472_v47 = vpop.f32.mrf.mxu0  ;;  %v2697_v49 = vpop.f32.mrf.mxu1 }
 0x3b8   : > { %4353 = vrsqrt.f32 %v2693_v53  ;;  %v2473_v42 = vadd.f32 1e-05, %v2472_v47 }
 0x3b9   : > { %v2474_v48 = vpop.f32.mrf.mxu0  ;;  %v2699_v16 = vpop.f32.mrf.mxu1 }
 0x3ba   : > { %v2698_v23 = vadd.f32 %v2697_v49, %v2473_v42 }
 0x3bb   : > { %v2477_v40 = vpop.f32.mrf.mxu0  ;;  %v2702_v35 = vpop.f32.mrf.mxu1 }
 0x3bc   : > { %4355 = vrsqrt.f32 %v2698_v23  ;;  %v2478_v43 = vadd.f32 1e-05, %v2477_v40 }
 0x3bd   : > { %v2479_v39 = vpop.f32.mrf.mxu0  ;;  %v2704_v27 = vpop.f32.mrf.mxu1 }
 0x3be   : > { %v2703_v54 = vadd.f32 %v2702_v35, %v2478_v43 }
 0x3bf   : > { %v2482_v50 = vpop.f32.mrf.mxu0  ;;  %v2707_v44 = vpop.f32.mrf.mxu1 }
 0x3c0   : > { %4357 = vrsqrt.f32 %v2703_v54  ;;  %v2483_v52 = vadd.f32 1e-05, %v2482_v50 }
 0x3c1   : > { %v4352_v46 = vpop.eup %4351  ;;  %v2484_v31 = vpop.f32.mrf.mxu0 }
 0x3c2   : > { %v2708_v51 = vadd.f32 %v2707_v44, %v2483_v52  ;;  %v2709_v53 = vpop.f32.mrf.mxu1  ;;  %4149 = vmatmul.mubr.msk.f32.vlgmr.msra.gmra.mxu0 %vm1529_vm1, %v4352_v46  ;;  %4181 = vmatmul.mubr.msk.f32.vlgmr.msra.gmra.mxu1 %vm1529_vm1, %v4352_v46 }
 0x3c3   : > { %v2487_v16 = vpop.f32.mrf.mxu0  ;;  %3052 = vmatprep.mubr.f32.mxu0 %v7439_v15  ;;  %3309 = vmatprep.mubr.f32.mxu1 %v7439_v15 }
 0x3c4   : > { %4359 = vrsqrt.f32 %v2708_v51  ;;  %v2488_v40 = vadd.f32 1e-05, %v2487_v16  ;;  %v2712_v23 = vpop.f32.mrf.mxu1 }
 0x3c5   : > { %v4354_v48 = vpop.eup %4353  ;;  %v2489_v47 = vpop.f32.mrf.mxu0 }
 0x3c6   : > { %v2713_v42 = vadd.f32 %v2712_v23, %v2488_v40  ;;  %v2714_v49 = vpop.f32.mrf.mxu1  ;;  %4150 = vmatmul.mubr.msk.f32.gmra.mxu0 %vm1529_vm1, %v4354_v48  ;;  %4182 = vmatmul.mubr.msk.f32.gmra.mxu1 %vm1529_vm1, %v4354_v48 }
 0x3c7   : > { %v2492_v43 = vpop.f32.mrf.mxu0  ;;  %3058 = vmatprep.mubr.f32.mxu0 %v7439_v15  ;;  %3315 = vmatprep.mubr.f32.mxu1 %v7439_v15 }
 0x3c8   : > { %4361 = vrsqrt.f32 %v2713_v42  ;;  %v2493_v35 = vadd.f32 1e-05, %v2492_v43  ;;  %v2717_v39 = vpop.f32.mrf.mxu1 }
 0x3c9   : > { %v4356_v54 = vpop.eup %4355  ;;  %v2494_v27 = vpop.f32.mrf.mxu0 }
 0x3ca   : > { %v2718_v50 = vadd.f32 %v2717_v39, %v2493_v35  ;;  %v2719_v52 = vpop.f32.mrf.mxu1  ;;  %4151 = vmatmul.mubr.msk.f32.gmra.mxu0 %vm1529_vm1, %v4356_v54  ;;  %4183 = vmatmul.mubr.msk.f32.gmra.mxu1 %vm1529_vm1, %v4356_v54 }
 0x3cb   : > { %v2497_v44 = vpop.f32.mrf.mxu0  ;;  %3064 = vmatprep.mubr.f32.mxu0 %v7439_v15  ;;  %3321 = vmatprep.mubr.f32.mxu1 %v7439_v15 }
 0x3cc   : > { %4363 = vrsqrt.f32 %v2718_v50  ;;  %v2498_v46 = vadd.f32 1e-05, %v2497_v44  ;;  %v2722_v31 = vpop.f32.mrf.mxu1 }
 0x3cd   : > { %v4358_v51 = vpop.eup %4357  ;;  %v2499_v53 = vpop.f32.mrf.mxu0 }
 0x3ce   : > { %v2723_v16 = vadd.f32 %v2722_v31, %v2498_v46  ;;  %v2724_v40 = vpop.f32.mrf.mxu1  ;;  %4152 = vmatmul.mubr.msk.f32.gmra.mxu0 %vm1529_vm1, %v4358_v51  ;;  %4184 = vmatmul.mubr.msk.f32.gmra.mxu1 %vm1529_vm1, %v4358_v51 }
 0x3cf   : > { %v2502_v23 = vpop.f32.mrf.mxu0  ;;  %3070 = vmatprep.mubr.f32.mxu0 %v7439_v15  ;;  %3327 = vmatprep.mubr.f32.mxu1 %v7439_v15 }
 0x3d0   : > { %4365 = vrsqrt.f32 %v2723_v16  ;;  %v2503_v48 = vadd.f32 1e-05, %v2502_v23  ;;  %v2727_v47 = vpop.f32.mrf.mxu1 }
 0x3d1   : > { %v4360_v42 = vpop.eup %4359  ;;  %v2504_v49 = vpop.f32.mrf.mxu0 }
 0x3d2   : > { %v2728_v43 = vadd.f32 %v2727_v47, %v2503_v48  ;;  %v2729_v35 = vpop.f32.mrf.mxu1  ;;  %4153 = vmatmul.mubr.msk.f32.gmra.mxu0 %vm1529_vm1, %v4360_v42  ;;  %4185 = vmatmul.mubr.msk.f32.gmra.mxu1 %vm1529_vm1, %v4360_v42 }
 0x3d3   : > { %v2507_v39 = vpop.f32.mrf.mxu0  ;;  %3076 = vmatprep.mubr.f32.mxu0 %v7439_v15  ;;  %3333 = vmatprep.mubr.f32.mxu1 %v7439_v15 }
 0x3d4   : > { %4367 = vrsqrt.f32 %v2728_v43  ;;  %v2508_v54 = vadd.f32 1e-05, %v2507_v39  ;;  %v2732_v27 = vpop.f32.mrf.mxu1 }
 0x3d5   : > { %v4362_v50 = vpop.eup %4361  ;;  %v2509_v52 = vpop.f32.mrf.mxu0 }
 0x3d6   : > { %v2733_v44 = vadd.f32 %v2732_v27, %v2508_v54  ;;  %v2734_v46 = vpop.f32.mrf.mxu1  ;;  %4154 = vmatmul.mubr.msk.f32.gmra.mxu0 %vm1529_vm1, %v4362_v50  ;;  %4186 = vmatmul.mubr.msk.f32.gmra.mxu1 %vm1529_vm1, %v4362_v50 }
 0x3d7   : > { %v2512_v31 = vpop.f32.mrf.mxu0  ;;  %3082 = vmatprep.mubr.f32.mxu0 %v7439_v15  ;;  %3339 = vmatprep.mubr.f32.mxu1 %v7439_v15 }
 0x3d8   : > { %4369 = vrsqrt.f32 %v2733_v44  ;;  %v2513_v51 = vadd.f32 1e-05, %v2512_v31  ;;  %v2737_v53 = vpop.f32.mrf.mxu1 }
 0x3d9   : > { %v4364_v16 = vpop.eup %4363  ;;  %v2514_v40 = vpop.f32.mrf.mxu0 }
 0x3da   : > { %v2738_v23 = vadd.f32 %v2737_v53, %v2513_v51  ;;  %v2739_v48 = vpop.f32.mrf.mxu1  ;;  %4155 = vmatmul.mubr.msk.f32.gmra.mxu0 %vm1529_vm1, %v4364_v16  ;;  %4187 = vmatmul.mubr.msk.f32.gmra.mxu1 %vm1529_vm1, %v4364_v16 }
 0x3db   : > { %v2517_v47 = vpop.f32.mrf.mxu0  ;;  %3088 = vmatprep.mubr.f32.mxu0 %v7439_v15  ;;  %3345 = vmatprep.mubr.f32.mxu1 %v7439_v15 }
 0x3dc   : > { %4371 = vrsqrt.f32 %v2738_v23  ;;  %v2518_v42 = vadd.f32 1e-05, %v2517_v47  ;;  %v2742_v49 = vpop.f32.mrf.mxu1 }
 0x3dd   : > { %v4366_v43 = vpop.eup %4365  ;;  %v2519_v35 = vpop.f32.mrf.mxu0 }
 0x3de   : > { %v2743_v39 = vadd.f32 %v2742_v49, %v2518_v42  ;;  %v2744_v54 = vpop.f32.mrf.mxu1  ;;  %4156 = vmatmul.mubr.msk.f32.gmra.mxu0 %vm1529_vm1, %v4366_v43  ;;  %4188 = vmatmul.mubr.msk.f32.gmra.mxu1 %vm1529_vm1, %v4366_v43 }
 0x3df   : > { %v2522_v27 = vpop.f32.mrf.mxu0  ;;  %3094 = vmatprep.mubr.f32.mxu0 %v7439_v15  ;;  %3351 = vmatprep.mubr.f32.mxu1 %v7439_v15 }
 0x3e0   : > { %4373 = vrsqrt.f32 %v2743_v39  ;;  %v2523_v50 = vadd.f32 1e-05, %v2522_v27  ;;  %v2747_v52 = vpop.f32.mrf.mxu1 }
 0x3e1   : > { %v4368_v44 = vpop.eup %4367  ;;  %v2524_v46 = vpop.f32.mrf.mxu0 }
 0x3e2   : > { %v2748_v31 = vadd.f32 %v2747_v52, %v2523_v50  ;;  %v2749_v51 = vpop.f32.mrf.mxu1  ;;  %4157 = vmatmul.mubr.msk.f32.gmra.mxu0 %vm1529_vm1, %v4368_v44  ;;  %4189 = vmatmul.mubr.msk.f32.gmra.mxu1 %vm1529_vm1, %v4368_v44 }
 0x3e3   : > { %v2527_v53 = vpop.f32.mrf.mxu0  ;;  %3100 = vmatprep.mubr.f32.mxu0 %v7439_v15  ;;  %3357 = vmatprep.mubr.f32.mxu1 %v7439_v15 }
 0x3e4   : > { %4375 = vrsqrt.f32 %v2748_v31  ;;  %v2528_v16 = vadd.f32 1e-05, %v2527_v53  ;;  %v2752_v40 = vpop.f32.mrf.mxu1 }
 0x3e5   : > { %v4370_v23 = vpop.eup %4369  ;;  %v2529_v48 = vpop.f32.mrf.mxu0 }
 0x3e6   : > { %v2753_v47 = vadd.f32 %v2752_v40, %v2528_v16  ;;  %v2754_v42 = vpop.f32.mrf.mxu1  ;;  %4158 = vmatmul.mubr.msk.f32.gmra.mxu0 %vm1529_vm1, %v4370_v23  ;;  %4190 = vmatmul.mubr.msk.f32.gmra.mxu1 %vm1529_vm1, %v4370_v23 }
 0x3e7   : > { %v2532_v49 = vpop.f32.mrf.mxu0  ;;  %3106 = vmatprep.mubr.f32.mxu0 %v7439_v15  ;;  %3363 = vmatprep.mubr.f32.mxu1 %v7439_v15 }
 0x3e8   : > { %4377 = vrsqrt.f32 %v2753_v47  ;;  %v2533_v43 = vadd.f32 1e-05, %v2532_v49  ;;  %v2757_v35 = vpop.f32.mrf.mxu1 }
 0x3e9   : > { %v4372_v39 = vpop.eup %4371  ;;  %v2534_v54 = vpop.f32.mrf.mxu0 }
 0x3ea   : > { %v2758_v27 = vadd.f32 %v2757_v35, %v2533_v43  ;;  %v2759_v50 = vpop.f32.mrf.mxu1  ;;  %4159 = vmatmul.mubr.msk.f32.gmra.mxu0 %vm1529_vm1, %v4372_v39  ;;  %4191 = vmatmul.mubr.msk.f32.gmra.mxu1 %vm1529_vm1, %v4372_v39 }
 0x3eb   : > { %v2537_v52 = vpop.f32.mrf.mxu0  ;;  %3112 = vmatprep.mubr.f32.mxu0 %v7439_v15  ;;  %3369 = vmatprep.mubr.f32.mxu1 %v7439_v15 }
 0x3ec   : > { %4379 = vrsqrt.f32 %v2758_v27  ;;  %v2538_v44 = vadd.f32 1e-05, %v2537_v52  ;;  %v2762_v46 = vpop.f32.mrf.mxu1 }
 0x3ed   : > { %v4374_v31 = vpop.eup %4373  ;;  %v2539_v51 = vpop.f32.mrf.mxu0 }
 0x3ee   : > { %v2763_v53 = vadd.f32 %v2762_v46, %v2538_v44  ;;  %v2764_v16 = vpop.f32.mrf.mxu1  ;;  %4160 = vmatmul.mubr.msk.f32.gmra.mxu0 %vm1529_vm1, %v4374_v31  ;;  %4192 = vmatmul.mubr.msk.f32.gmra.mxu1 %vm1529_vm1, %v4374_v31 }
 0x3ef   : > { %v2542_v40 = vpop.f32.mrf.mxu0  ;;  %3118 = vmatprep.mubr.f32.mxu0 %v7439_v15  ;;  %3375 = vmatprep.mubr.f32.mxu1 %v7439_v15 }
 0x3f0   : > { %4381 = vrsqrt.f32 %v2763_v53  ;;  %v2543_v23 = vadd.f32 1e-05, %v2542_v40  ;;  %v2767_v48 = vpop.f32.mrf.mxu1 }
 0x3f1   : > { %v4376_v47 = vpop.eup %4375  ;;  %v2544_v42 = vpop.f32.mrf.mxu0 }
 0x3f2   : > { %v2768_v49 = vadd.f32 %v2767_v48, %v2543_v23  ;;  %v2769_v43 = vpop.f32.mrf.mxu1  ;;  %4161 = vmatmul.mubr.msk.f32.gmra.mxu0 %vm1529_vm1, %v4376_v47  ;;  %4193 = vmatmul.mubr.msk.f32.gmra.mxu1 %vm1529_vm1, %v4376_v47 }
 0x3f3   : > { %v2547_v35 = vpop.f32.mrf.mxu0  ;;  %3124 = vmatprep.mubr.f32.mxu0 %v7439_v15  ;;  %3381 = vmatprep.mubr.f32.mxu1 %v7439_v15 }
 0x3f4   : > { %4383 = vrsqrt.f32 %v2768_v49  ;;  %v2548_v39 = vadd.f32 1e-05, %v2547_v35  ;;  %v2772_v54 = vpop.f32.mrf.mxu1 }
 0x3f5   : > { %v4378_v27 = vpop.eup %4377  ;;  %v2549_v50 = vpop.f32.mrf.mxu0 }
 0x3f6   : > { %v2773_v52 = vadd.f32 %v2772_v54, %v2548_v39  ;;  %v2774_v44 = vpop.f32.mrf.mxu1  ;;  %4162 = vmatmul.mubr.msk.f32.gmra.mxu0 %vm1529_vm1, %v4378_v27  ;;  %4194 = vmatmul.mubr.msk.f32.gmra.mxu1 %vm1529_vm1, %v4378_v27 }
 0x3f7   : > { %v2552_v46 = vpop.f32.mrf.mxu0  ;;  %3130 = vmatprep.mubr.f32.mxu0 %v7439_v15  ;;  %3387 = vmatprep.mubr.f32.mxu1 %v7439_v15 }
 0x3f8   : > { %4385 = vrsqrt.f32 %v2773_v52  ;;  %v2553_v31 = vadd.f32 1e-05, %v2552_v46  ;;  %v2777_v51 = vpop.f32.mrf.mxu1 }
 0x3f9   : > { %v4380_v53 = vpop.eup %4379  ;;  %v2554_v16 = vpop.f32.mrf.mxu0 }
 0x3fa   : > { %v2778_v40 = vadd.f32 %v2777_v51, %v2553_v31  ;;  %v2779_v23 = vpop.f32.mrf.mxu1  ;;  %4163 = vmatmul.mubr.msk.f32.gmra.mxu0 %vm1529_vm1, %v4380_v53  ;;  %4195 = vmatmul.mubr.msk.f32.gmra.mxu1 %vm1529_vm1, %v4380_v53 }
 0x3fb   : > { %v2557_v48 = vpop.f32.mrf.mxu0  ;;  %3136 = vmatprep.mubr.f32.mxu0 %v7439_v15  ;;  %3393 = vmatprep.mubr.f32.mxu1 %v7439_v15 }
 0x3fc   : > { %4387 = vrsqrt.f32 %v2778_v40  ;;  %v2558_v47 = vadd.f32 1e-05, %v2557_v48  ;;  %v2782_v42 = vpop.f32.mrf.mxu1 }
 0x3fd   : > { %v4382_v49 = vpop.eup %4381  ;;  %v2559_v43 = vpop.f32.mrf.mxu0 }
 0x3fe   : > { %v2783_v35 = vadd.f32 %v2782_v42, %v2558_v47  ;;  %v2784_v39 = vpop.f32.mrf.mxu1  ;;  %4164 = vmatmul.mubr.msk.f32.gmra.mxu0 %vm1529_vm1, %v4382_v49  ;;  %4196 = vmatmul.mubr.msk.f32.gmra.mxu1 %vm1529_vm1, %v4382_v49 }
 0x3ff   : > { %v2562_v54 = vpop.f32.mrf.mxu0  ;;  %3142 = vmatprep.mubr.f32.mxu0 %v7439_v15  ;;  %3399 = vmatprep.mubr.f32.mxu1 %v7439_v15 }
 0x400   : > { %4389 = vrsqrt.f32 %v2783_v35  ;;  %v2563_v27 = vadd.f32 1e-05, %v2562_v54  ;;  %v2787_v50 = vpop.f32.mrf.mxu1 }
 0x401   : > { %v4384_v52 = vpop.eup %4383  ;;  %v2564_v44 = vpop.f32.mrf.mxu0 }
 0x402   : > { %v2788_v46 = vadd.f32 %v2787_v50, %v2563_v27  ;;  %v2789_v31 = vpop.f32.mrf.mxu1  ;;  %4165 = vmatmul.mubr.msk.f32.gmra.mxu0 %vm1529_vm1, %v4384_v52  ;;  %4197 = vmatmul.mubr.msk.f32.gmra.mxu1 %vm1529_vm1, %v4384_v52 }
 0x403   : > { %v2567_v51 = vpop.f32.mrf.mxu0  ;;  %3148 = vmatprep.mubr.f32.mxu0 %v7439_v15  ;;  %3405 = vmatprep.mubr.f32.mxu1 %v7439_v15 }
 0x404   : > { %4391 = vrsqrt.f32 %v2788_v46  ;;  %v2568_v53 = vadd.f32 1e-05, %v2567_v51  ;;  %v2792_v16 = vpop.f32.mrf.mxu1 }
 0x405   : > { %v4386_v40 = vpop.eup %4385  ;;  %v2569_v23 = vpop.f32.mrf.mxu0 }
 0x406   : > { %v2793_v48 = vadd.f32 %v2792_v16, %v2568_v53  ;;  %v2794_v47 = vpop.f32.mrf.mxu1  ;;  %4166 = vmatmul.mubr.msk.f32.gmra.mxu0 %vm1529_vm1, %v4386_v40  ;;  %4198 = vmatmul.mubr.msk.f32.gmra.mxu1 %vm1529_vm1, %v4386_v40 }
 0x407   : > { %v2572_v42 = vpop.f32.mrf.mxu0  ;;  %3154 = vmatprep.mubr.f32.mxu0 %v7439_v15  ;;  %3411 = vmatprep.mubr.f32.mxu1 %v7439_v15 }
 0x408   : > { %4393 = vrsqrt.f32 %v2793_v48  ;;  %v2573_v49 = vadd.f32 1e-05, %v2572_v42  ;;  %v2797_v43 = vpop.f32.mrf.mxu1 }
 0x409   : > { %v4388_v35 = vpop.eup %4387  ;;  %v2574_v39 = vpop.f32.mrf.mxu0 }
 0x40a   : > { %v2798_v54 = vadd.f32 %v2797_v43, %v2573_v49  ;;  %v2799_v27 = vpop.f32.mrf.mxu1  ;;  %4167 = vmatmul.mubr.msk.f32.gmra.mxu0 %vm1529_vm1, %v4388_v35  ;;  %4199 = vmatmul.mubr.msk.f32.gmra.mxu1 %vm1529_vm1, %v4388_v35 }
 0x40b   : > { %v2577_v50 = vpop.f32.mrf.mxu0  ;;  %3160 = vmatprep.mubr.f32.mxu0 %v7439_v15  ;;  %3417 = vmatprep.mubr.f32.mxu1 %v7439_v15 }
 0x40c   : > { %4395 = vrsqrt.f32 %v2798_v54  ;;  %v2578_v52 = vadd.f32 1e-05, %v2577_v50  ;;  %v2802_v44 = vpop.f32.mrf.mxu1 }
 0x40d   : > { %v4390_v46 = vpop.eup %4389  ;;  %v2579_v31 = vpop.f32.mrf.mxu0 }
 0x40e   : > { %v2803_v51 = vadd.f32 %v2802_v44, %v2578_v52  ;;  %v2804_v53 = vpop.f32.mrf.mxu1  ;;  %4168 = vmatmul.mubr.msk.f32.gmra.mxu0 %vm1529_vm1, %v4390_v46  ;;  %4200 = vmatmul.mubr.msk.f32.gmra.mxu1 %vm1529_vm1, %v4390_v46 }
 0x40f   : > { %v2582_v16 = vpop.f32.mrf.mxu0  ;;  %3166 = vmatprep.mubr.f32.mxu0 %v7439_v15  ;;  %3423 = vmatprep.mubr.f32.mxu1 %v7439_v15 }
 0x410   : > { %4397 = vrsqrt.f32 %v2803_v51  ;;  %v2583_v40 = vadd.f32 1e-05, %v2582_v16  ;;  %v2807_v23 = vpop.f32.mrf.mxu1 }
 0x411   : > { %v4392_v48 = vpop.eup %4391  ;;  %v2584_v47 = vpop.f32.mrf.mxu0 }
 0x412   : > { %v2808_v42 = vadd.f32 %v2807_v23, %v2583_v40  ;;  %v2809_v49 = vpop.f32.mrf.mxu1  ;;  %4169 = vmatmul.mubr.msk.f32.gmra.mxu0 %vm1529_vm1, %v4392_v48  ;;  %4201 = vmatmul.mubr.msk.f32.gmra.mxu1 %vm1529_vm1, %v4392_v48 }
 0x413   : > { %v2587_v43 = vpop.f32.mrf.mxu0  ;;  %3172 = vmatprep.mubr.f32.mxu0 %v7439_v15  ;;  %3429 = vmatprep.mubr.f32.mxu1 %v7439_v15 }
 0x414   : > { %4399 = vrsqrt.f32 %v2808_v42  ;;  %v2588_v35 = vadd.f32 1e-05, %v2587_v43  ;;  %v2812_v39 = vpop.f32.mrf.mxu1 }
 0x415   : > { %v4394_v54 = vpop.eup %4393  ;;  %v2589_v27 = vpop.f32.mrf.mxu0 }
 0x416   : > { %v2813_v50 = vadd.f32 %v2812_v39, %v2588_v35  ;;  %v2814_v52 = vpop.f32.mrf.mxu1  ;;  %4170 = vmatmul.mubr.msk.f32.gmra.mxu0 %vm1529_vm1, %v4394_v54  ;;  %4202 = vmatmul.mubr.msk.f32.gmra.mxu1 %vm1529_vm1, %v4394_v54 }
 0x417   : > { %v2592_v44 = vpop.f32.mrf.mxu0  ;;  %3178 = vmatprep.mubr.f32.mxu0 %v7439_v15  ;;  %3435 = vmatprep.mubr.f32.mxu1 %v7439_v15 }
 0x418   : > { %4401 = vrsqrt.f32 %v2813_v50  ;;  %v2593_v46 = vadd.f32 1e-05, %v2592_v44  ;;  %v2817_v31 = vpop.f32.mrf.mxu1 }
 0x419   : > { %v4396_v51 = vpop.eup %4395  ;;  %v2594_v53 = vpop.f32.mrf.mxu0 }
 0x41a   : > { %v2818_v16 = vadd.f32 %v2817_v31, %v2593_v46  ;;  %v2819_v40 = vpop.f32.mrf.mxu1  ;;  %4171 = vmatmul.mubr.msk.f32.gmra.mxu0 %vm1529_vm1, %v4396_v51  ;;  %4203 = vmatmul.mubr.msk.f32.gmra.mxu1 %vm1529_vm1, %v4396_v51 }
 0x41b   : > { %v2597_v23 = vpop.f32.mrf.mxu0  ;;  %3184 = vmatprep.mubr.f32.mxu0 %v7439_v15  ;;  %3441 = vmatprep.mubr.f32.mxu1 %v7439_v15 }
 0x41c   : > { %4403 = vrsqrt.f32 %v2818_v16  ;;  %v2598_v48 = vadd.f32 1e-05, %v2597_v23  ;;  %v2822_v47 = vpop.f32.mrf.mxu1 }
 0x41d   : > { %v4398_v42 = vpop.eup %4397  ;;  %v2599_v49 = vpop.f32.mrf.mxu0 }
 0x41e   : > { %v2823_v43 = vadd.f32 %v2822_v47, %v2598_v48  ;;  %v2824_v35 = vpop.f32.mrf.mxu1  ;;  %4172 = vmatmul.mubr.msk.f32.gmra.mxu0 %vm1529_vm1, %v4398_v42  ;;  %4204 = vmatmul.mubr.msk.f32.gmra.mxu1 %vm1529_vm1, %v4398_v42 }
 0x41f   : > { %v2602_v39 = vpop.f32.mrf.mxu0  ;;  %3190 = vmatprep.mubr.f32.mxu0 %v7439_v15  ;;  %3447 = vmatprep.mubr.f32.mxu1 %v7439_v15 }
 0x420   : > { %4405 = vrsqrt.f32 %v2823_v43  ;;  %v2603_v54 = vadd.f32 1e-05, %v2602_v39  ;;  %v2827_v27 = vpop.f32.mrf.mxu1 }
 0x421   : > { %v4400_v50 = vpop.eup %4399  ;;  %v2604_v52 = vpop.f32.mrf.mxu0 }
 0x422   : > { %v2828_v44 = vadd.f32 %v2827_v27, %v2603_v54  ;;  %v2829_v46 = vpop.f32.mrf.mxu1  ;;  %4173 = vmatmul.mubr.msk.f32.gmra.mxu0 %vm1529_vm1, %v4400_v50  ;;  %4205 = vmatmul.mubr.msk.f32.gmra.mxu1 %vm1529_vm1, %v4400_v50 }
 0x423   : > { %v2607_v31 = vpop.f32.mrf.mxu0  ;;  %3196 = vmatprep.mubr.f32.mxu0 %v7439_v15  ;;  %3453 = vmatprep.mubr.f32.mxu1 %v7439_v15 }
 0x424   : > { %4407 = vrsqrt.f32 %v2828_v44  ;;  %v2608_v51 = vadd.f32 1e-05, %v2607_v31  ;;  %v2832_v53 = vpop.f32.mrf.mxu1 }
 0x425   : > { %v4402_v16 = vpop.eup %4401  ;;  %v2609_v40 = vpop.f32.mrf.mxu0 }
 0x426   : > { %v2833_v23 = vadd.f32 %v2832_v53, %v2608_v51  ;;  %v2834_v48 = vpop.f32.mrf.mxu1  ;;  %4174 = vmatmul.mubr.msk.f32.gmra.mxu0 %vm1529_vm1, %v4402_v16  ;;  %4206 = vmatmul.mubr.msk.f32.gmra.mxu1 %vm1529_vm1, %v4402_v16 }
 0x427   : > { %v2612_v47 = vpop.f32.mrf.mxu0  ;;  %3202 = vmatprep.mubr.f32.mxu0 %v7439_v15  ;;  %3459 = vmatprep.mubr.f32.mxu1 %v7439_v15  ;;  %v3626_v48 = vlaneseq }
 0x428   : > { %4409 = vrsqrt.f32 %v2833_v23  ;;  %v2613_v42 = vadd.f32 1e-05, %v2612_v47  ;;  %v2837_v49 = vpop.f32.mrf.mxu1 }
 0x429   : > { %v4404_v43 = vpop.eup %4403  ;;  %v2614_v35 = vpop.f32.mrf.mxu0  ;;  %v3627_v47 = vshrl.u32 %v3626_v48, 7 }
 0x42a   : > { %v2838_v39 = vadd.f32 %v2837_v49, %v2613_v42  ;;  %v2839_v54 = vpop.f32.mrf.mxu1  ;;  %4175 = vmatmul.mubr.msk.f32.gmra.mxu0 %vm1529_vm1, %v4404_v43  ;;  %4207 = vmatmul.mubr.msk.f32.gmra.mxu1 %vm1529_vm1, %v4404_v43  ;;  %v3624_v43 = vld [vmem:[%s7035_s5] sm:$0xf] }
 0x42b   : > { %v2617_v27 = vpop.f32.mrf.mxu0  ;;  %3208 = vmatprep.mubr.f32.mxu0 %v7439_v15  ;;  %3465 = vmatprep.mubr.f32.mxu1 %v7439_v15  ;;  %v3628_v42 = vsub.s32 0, %v3627_v47  ;;  %v3636_v49 = vsub.s32 2, %v3627_v47  ;;  %v3632_v35 = vsub.s32 1, %v3627_v47 }
 0x42c   : > { %4411 = vrsqrt.f32 %v2838_v39  ;;  %v2618_v50 = vadd.f32 1e-05, %v2617_v27  ;;  %v2842_v52 = vpop.f32.mrf.mxu1  ;;  %v3640_v39 = vsub.s32 3, %v3627_v47 }
 0x42d   : > { %v4406_v44 = vpop.eup %4405  ;;  %v2619_v46 = vpop.f32.mrf.mxu0  ;;  %v6624_v54 = vrot.slane %v3624_v43, %v3628_v42  ;;  %v6626_v27 = vrot.slane %v3624_v43, %v3636_v49 }
 0x42e   : > { %v2843_v31 = vadd.f32 %v2842_v52, %v2618_v50  ;;  %v2844_v51 = vpop.f32.mrf.mxu1  ;;  %4176 = vmatmul.mubr.msk.f32.gmra.mxu0 %vm1529_vm1, %v4406_v44  ;;  %4208 = vmatmul.mubr.msk.f32.gmra.mxu1 %vm1529_vm1, %v4406_v44  ;;  %v6630_v46 = vrot.slane %v3624_v43, %v3632_v35 }
 0x42f   : > { %3214 = vmatprep.mubr.f32.mxu0 %v7439_v15  ;;  %3471 = vmatprep.mubr.f32.mxu1 %v7439_v15 }
 0x430   : > { %4413 = vrsqrt.f32 %v2843_v31  ;;  %v6632_v31 = vrot.slane %v3624_v43, %v3640_v39 }
 0x431   : > { %v4408_v53 = vpop.eup %4407 }
 0x432   : > { %4177 = vmatmul.mubr.msk.f32.gmra.mxu0 %vm1529_vm1, %v4408_v53  ;;  %4209 = vmatmul.mubr.msk.f32.gmra.mxu1 %vm1529_vm1, %v4408_v53 }
 0x433   : > { %3220 = vmatprep.mubr.f32.mxu0 %v7439_v15  ;;  %3477 = vmatprep.mubr.f32.mxu1 %v7439_v15 }
 0x435   : > { %v4410_v16 = vpop.eup %4409 }
 0x436   : > { %4178 = vmatmul.mubr.msk.f32.gmra.mxu0 %vm1529_vm1, %v4410_v16  ;;  %4210 = vmatmul.mubr.msk.f32.gmra.mxu1 %vm1529_vm1, %v4410_v16 }
 0x437   : > { %3226 = vmatprep.mubr.f32.mxu0 %v7439_v15  ;;  %3483 = vmatprep.mubr.f32.mxu1 %v7439_v15 }
 0x439   : > { %v4412_v40 = vpop.eup %4411 }
 0x43a   : > { %4179 = vmatmul.mubr.msk.f32.gmra.mxu0 %vm1529_vm1, %v4412_v40  ;;  %4211 = vmatmul.mubr.msk.f32.gmra.mxu1 %vm1529_vm1, %v4412_v40 }
 0x43b   : > { %3232 = vmatprep.mubr.f32.mxu0 %v7439_v15  ;;  %3489 = vmatprep.mubr.f32.mxu1 %v7439_v15 }
 0x43d   : > { %v4414_v23 = vpop.eup %4413 }
 0x43e   : > { %4180 = vmatmul.mubr.msk.f32.gmra.mxu0 %vm1529_vm1, %v4414_v23  ;;  %4212 = vmatmul.mubr.msk.f32.gmra.mxu1 %vm1529_vm1, %v4414_v23  ;;  %v7441_v23 = vld [vmem:[#allocation82_spill] sm:$0xff] }
 0x482   : > { %v3048_v15 = vpop.f32.mrf.mxu0  ;;  %v3305_v50 = vpop.f32.mrf.mxu1 }
 0x483   : > { %v3496_v52 = vmul.f32 %v3048_v15, %v5835_v57  ;;  %v3498_v44 = vmul.f32 %v3305_v50, %v5838_v3  ;;  %v7440_v3 = vld [vmem:[#allocation81_spill] sm:$0xff] }
 0x484   : > { %v3050_v51 = vpop.f32.mrf.mxu0  ;;  %v3307_v53 = vpop.f32.mrf.mxu1 }
 0x485   : > { %v3646_v16 = vadd.f32 %v6624_v54, %v3496_v52  ;;  %v3648_v57 = vadd.f32 %v6626_v27, %v3498_v44  ;;  %v3497_v40 = vmul.f32 %v3050_v51, %v7440_v3  ;;  %v3499_v48 = vmul.f32 %v3307_v53, %v7441_v23 }
 0x486   : > { %v3054_v47 = vpop.f32.mrf.mxu0  ;;  %v3311_v42 = vpop.f32.mrf.mxu1 }
 0x487   : > { %3774 = vst [vmem:[%s6637_s8] sm:$0xff] %v3646_v16  ;;  %4245 = vst [vmem:[%s6637_s8 + $0x20] sm:$0xff] %v3648_v57  ;;  %v3647_v49 = vadd.f32 %v6630_v46, %v3497_v40  ;;  %v3649_v43 = vadd.f32 %v6632_v31, %v3499_v48  ;;  %v3500_v35 = vmul.f32 %v3054_v47, %v5853_v61 }
 0x488   : > { %v3502_v39 = vmul.f32 %v3311_v42, %v5858_v10  ;;  %v3056_v15 = vpop.f32.mrf.mxu0  ;;  %v3313_v50 = vpop.f32.mrf.mxu1 }
 0x489   : > { %4213 = vst [vmem:[%s6637_s8 + $0x10] sm:$0xff] %v3647_v49  ;;  %4277 = vst [vmem:[%s6637_s8 + $0x30] sm:$0xff] %v3649_v43  ;;  %v3650_v52 = vadd.f32 %v6624_v54, %v3500_v35  ;;  %v3501_v51 = vmul.f32 %v3056_v15, %v5861_v59  ;;  %v3503_v53 = vmul.f32 %v3313_v50, %v5864_v1 }
 0x48a   : > { %v3652_v44 = vadd.f32 %v6626_v27, %v3502_v39  ;;  %v3060_v16 = vpop.f32.mrf.mxu0  ;;  %v3317_v57 = vpop.f32.mrf.mxu1 }
 0x48b   : > { %3775 = vst [vmem:[%s6637_s8 + $0x8] sm:$0xff] %v3650_v52  ;;  %v3651_v61 = vadd.f32 %v6630_v46, %v3501_v51  ;;  %v3653_v10 = vadd.f32 %v6632_v31, %v3503_v53  ;;  %v3504_v3 = vmul.f32 %v3060_v16, %v5879_v55  ;;  %v3506_v40 = vmul.f32 %v3317_v57, %v5884_v9 }
 0x48c   : > { %4246 = vst [vmem:[%s6637_s8 + $0x28] sm:$0xff] %v3652_v44  ;;  %v3062_v23 = vpop.f32.mrf.mxu0  ;;  %v3319_v48 = vpop.f32.mrf.mxu1 }
 0x48d   : > { %4214 = vst [vmem:[%s6637_s8 + $0x18] sm:$0xff] %v3651_v61  ;;  %4278 = vst [vmem:[%s6637_s8 + $0x38] sm:$0xff] %v3653_v10  ;;  %v3654_v59 = vadd.f32 %v6624_v54, %v3504_v3  ;;  %v3656_v1 = vadd.f32 %v6626_v27, %v3506_v40  ;;  %v3505_v47 = vmul.f32 %v3062_v23, %v5887_v62 }
 0x48e   : > { %v3507_v42 = vmul.f32 %v3319_v48, %v5890_v63  ;;  %v3066_v49 = vpop.f32.mrf.mxu0  ;;  %v3323_v43 = vpop.f32.mrf.mxu1 }
 0x48f   : > { %3776 = vst [vmem:[%s6637_s8 + $0x40] sm:$0xff] %v3654_v59  ;;  %4247 = vst [vmem:[%s6637_s8 + $0x60] sm:$0xff] %v3656_v1  ;;  %v3655_v55 = vadd.f32 %v6630_v46, %v3505_v47  ;;  %v3508_v35 = vmul.f32 %v3066_v49, %v5905_v4  ;;  %v3510_v39 = vmul.f32 %v3323_v43, %v5910_v8 }
 0x490   : > { %v3657_v9 = vadd.f32 %v6632_v31, %v3507_v42  ;;  %v3068_v15 = vpop.f32.mrf.mxu0  ;;  %v3325_v50 = vpop.f32.mrf.mxu1 }
 0x491   : > { %4215 = vst [vmem:[%s6637_s8 + $0x50] sm:$0xff] %v3655_v55  ;;  %v3658_v62 = vadd.f32 %v6624_v54, %v3508_v35  ;;  %v3660_v63 = vadd.f32 %v6626_v27, %v3510_v39  ;;  %v3509_v52 = vmul.f32 %v3068_v15, %v5913_v58  ;;  %v3511_v44 = vmul.f32 %v3325_v50, %v5916_v60 }
 0x492   : > { %4279 = vst [vmem:[%s6637_s8 + $0x70] sm:$0xff] %v3657_v9  ;;  %v3072_v51 = vpop.f32.mrf.mxu0  ;;  %v3329_v53 = vpop.f32.mrf.mxu1 }
 0x493   : > { %3777 = vst [vmem:[%s6637_s8 + $0x48] sm:$0xff] %v3658_v62  ;;  %4248 = vst [vmem:[%s6637_s8 + $0x68] sm:$0xff] %v3660_v63  ;;  %v3659_v4 = vadd.f32 %v6630_v46, %v3509_v52  ;;  %v3661_v8 = vadd.f32 %v6632_v31, %v3511_v44  ;;  %v3512_v16 = vmul.f32 %v3072_v51, %v5931_v56 }
 0x494   : > { %v3514_v57 = vmul.f32 %v3329_v53, %v5936_v14  ;;  %v3074_v61 = vpop.f32.mrf.mxu0  ;;  %v3331_v10 = vpop.f32.mrf.mxu1 }
 0x495   : > { %4216 = vst [vmem:[%s6637_s8 + $0x58] sm:$0xff] %v3659_v4  ;;  %4280 = vst [vmem:[%s6637_s8 + $0x78] sm:$0xff] %v3661_v8  ;;  %v3662_v58 = vadd.f32 %v6624_v54, %v3512_v16  ;;  %v3513_v3 = vmul.f32 %v3074_v61, %v5939_v0  ;;  %v3515_v40 = vmul.f32 %v3331_v10, %v5942_v7 }
 0x496   : > { %v3664_v60 = vadd.f32 %v6626_v27, %v3514_v57  ;;  %v3078_v23 = vpop.f32.mrf.mxu0  ;;  %v3335_v48 = vpop.f32.mrf.mxu1 }
 0x497   : > { %3778 = vst [vmem:[%s6637_s8 + $0x80] sm:$0xff] %v3662_v58  ;;  %v3663_v56 = vadd.f32 %v6630_v46, %v3513_v3  ;;  %v3665_v14 = vadd.f32 %v6632_v31, %v3515_v40  ;;  %v3516_v59 = vmul.f32 %v3078_v23, %v5951_v21  ;;  %v3518_v1 = vmul.f32 %v3335_v48, %v5956_v17 }
 0x498   : > { %4249 = vst [vmem:[%s6637_s8 + $0xa0] sm:$0xff] %v3664_v60  ;;  %v3080_v47 = vpop.f32.mrf.mxu0  ;;  %v3337_v42 = vpop.f32.mrf.mxu1 }
 0x499   : > { %4217 = vst [vmem:[%s6637_s8 + $0x90] sm:$0xff] %v3663_v56  ;;  %4281 = vst [vmem:[%s6637_s8 + $0xb0] sm:$0xff] %v3665_v14  ;;  %v3666_v0 = vadd.f32 %v6624_v54, %v3516_v59  ;;  %v3668_v7 = vadd.f32 %v6626_v27, %v3518_v1  ;;  %v3517_v49 = vmul.f32 %v3080_v47, %v5959_v18 }
 0x49a   : > { %v3519_v43 = vmul.f32 %v3337_v42, %v5962_v12  ;;  %v3084_v55 = vpop.f32.mrf.mxu0  ;;  %v3341_v9 = vpop.f32.mrf.mxu1 }
 0x49b   : > { %3779 = vst [vmem:[%s6637_s8 + $0x88] sm:$0xff] %v3666_v0  ;;  %4250 = vst [vmem:[%s6637_s8 + $0xa8] sm:$0xff] %v3668_v7  ;;  %v3667_v21 = vadd.f32 %v6630_v46, %v3517_v49  ;;  %v3520_v35 = vmul.f32 %v3084_v55, %v5971_v25  ;;  %v3522_v39 = vmul.f32 %v3341_v9, %v5976_v11 }
 0x49c   : > { %v3669_v17 = vadd.f32 %v6632_v31, %v3519_v43  ;;  %v3086_v15 = vpop.f32.mrf.mxu0  ;;  %v3343_v50 = vpop.f32.mrf.mxu1 }
 0x49d   : > { %4218 = vst [vmem:[%s6637_s8 + $0x98] sm:$0xff] %v3667_v21  ;;  %v3670_v18 = vadd.f32 %v6624_v54, %v3520_v35  ;;  %v3672_v12 = vadd.f32 %v6626_v27, %v3522_v39  ;;  %v3521_v62 = vmul.f32 %v3086_v15, %v5979_v20  ;;  %v3523_v63 = vmul.f32 %v3343_v50, %v5982_v22 }
 0x49e   : > { %4282 = vst [vmem:[%s6637_s8 + $0xb8] sm:$0xff] %v3669_v17  ;;  %v3090_v52 = vpop.f32.mrf.mxu0  ;;  %v3347_v44 = vpop.f32.mrf.mxu1 }
 0x49f   : > { %3780 = vst [vmem:[%s6637_s8 + $0xc0] sm:$0xff] %v3670_v18  ;;  %4251 = vst [vmem:[%s6637_s8 + $0xe0] sm:$0xff] %v3672_v12  ;;  %v3671_v25 = vadd.f32 %v6630_v46, %v3521_v62  ;;  %v3673_v11 = vadd.f32 %v6632_v31, %v3523_v63  ;;  %v3524_v51 = vmul.f32 %v3090_v52, %v5991_v29  ;;  %v7442_v52 = vld [vmem:[#allocation83_spill] sm:$0xff] }
 0x4a0   : > { %v3526_v53 = vmul.f32 %v3347_v44, %v5996_v19  ;;  %v3092_v4 = vpop.f32.mrf.mxu0  ;;  %v3349_v8 = vpop.f32.mrf.mxu1 }
 0x4a1   : > { %4219 = vst [vmem:[%s6637_s8 + $0xd0] sm:$0xff] %v3671_v25  ;;  %4283 = vst [vmem:[%s6637_s8 + $0xf0] sm:$0xff] %v3673_v11  ;;  %v3674_v20 = vadd.f32 %v6624_v54, %v3524_v51  ;;  %v3525_v16 = vmul.f32 %v3092_v4, %v5999_v24  ;;  %v3527_v57 = vmul.f32 %v3349_v8, %v6002_v26  ;;  %v7443_v25 = vld [vmem:[#allocation84_spill] sm:$0xff]  ;;  %v7444_v4 = vld [vmem:[#allocation85_spill] sm:$0xff] }
 0x4a2   : > { %v3676_v22 = vadd.f32 %v6626_v27, %v3526_v53  ;;  %v3096_v61 = vpop.f32.mrf.mxu0  ;;  %v3353_v10 = vpop.f32.mrf.mxu1 }
 0x4a3   : > { %3781 = vst [vmem:[%s6637_s8 + $0xc8] sm:$0xff] %v3674_v20  ;;  %v3675_v29 = vadd.f32 %v6630_v46, %v3525_v16  ;;  %v3677_v19 = vadd.f32 %v6632_v31, %v3527_v57  ;;  %v3528_v58 = vmul.f32 %v3096_v61, %v6011_v33  ;;  %v3530_v60 = vmul.f32 %v3353_v10, %v6016_v6  ;;  %v7445_v20 = vld [vmem:[#allocation86_spill] sm:$0xff] }
 0x4a4   : > { %4252 = vst [vmem:[%s6637_s8 + $0xe8] sm:$0xff] %v3676_v22  ;;  %v3098_v3 = vpop.f32.mrf.mxu0  ;;  %v3355_v40 = vpop.f32.mrf.mxu1 }
 0x4a5   : > { %4220 = vst [vmem:[%s6637_s8 + $0xd8] sm:$0xff] %v3675_v29  ;;  %4284 = vst [vmem:[%s6637_s8 + $0xf8] sm:$0xff] %v3677_v19  ;;  %v3678_v24 = vadd.f32 %v6624_v54, %v3528_v58  ;;  %v3680_v26 = vadd.f32 %v6626_v27, %v3530_v60  ;;  %v3529_v23 = vmul.f32 %v3098_v3, %v6019_v28  ;;  %v7446_v29 = vld [vmem:[#allocation87_spill] sm:$0xff]  ;;  %v7447_v58 = vld [vmem:[#allocation88_spill] sm:$0xff] }
 0x4a6   : > { %v3531_v48 = vmul.f32 %v3355_v40, %v6022_v30  ;;  %v3102_v56 = vpop.f32.mrf.mxu0  ;;  %v3359_v14 = vpop.f32.mrf.mxu1 }
 0x4a7   : > { %3782 = vst [vmem:[%s6637_s8 + $0x100] sm:$0xff] %v3678_v24  ;;  %4253 = vst [vmem:[%s6637_s8 + $0x120] sm:$0xff] %v3680_v26  ;;  %v3679_v33 = vadd.f32 %v6630_v46, %v3529_v23  ;;  %v3532_v59 = vmul.f32 %v3102_v56, %v6031_v37  ;;  %v3534_v1 = vmul.f32 %v3359_v14, %v6036_v5  ;;  %v7448_v23 = vld [vmem:[#allocation5_spill] sm:$0xff]  ;;  %v7449_v56 = vld [vmem:[#allocation6_spill] sm:$0xff] }
 0x4a8   : > { %v3681_v6 = vadd.f32 %v6632_v31, %v3531_v48  ;;  %v3104_v47 = vpop.f32.mrf.mxu0  ;;  %v3361_v42 = vpop.f32.mrf.mxu1 }
 0x4a9   : > { %4221 = vst [vmem:[%s6637_s8 + $0x110] sm:$0xff] %v3679_v33  ;;  %v3682_v28 = vadd.f32 %v6624_v54, %v3532_v59  ;;  %v3684_v30 = vadd.f32 %v6626_v27, %v3534_v1  ;;  %v3533_v0 = vmul.f32 %v3104_v47, %v6039_v32  ;;  %v3535_v7 = vmul.f32 %v3361_v42, %v6042_v34  ;;  %v7450_v47 = vld [vmem:[#allocation7_spill] sm:$0xff] }
 0x4aa   : > { %4285 = vst [vmem:[%s6637_s8 + $0x130] sm:$0xff] %v3681_v6  ;;  %v3108_v49 = vpop.f32.mrf.mxu0  ;;  %v3365_v43 = vpop.f32.mrf.mxu1 }
 0x4ab   : > { %3783 = vst [vmem:[%s6637_s8 + $0x108] sm:$0xff] %v3682_v28  ;;  %4254 = vst [vmem:[%s6637_s8 + $0x128] sm:$0xff] %v3684_v30  ;;  %v3683_v37 = vadd.f32 %v6630_v46, %v3533_v0  ;;  %v3685_v5 = vadd.f32 %v6632_v31, %v3535_v7  ;;  %v3536_v55 = vmul.f32 %v3108_v49, %v6051_v41  ;;  %v7451_v28 = vld [vmem:[#allocation8_spill] sm:$0xff] }
 0x4ac   : > { %v3538_v9 = vmul.f32 %v3365_v43, %v6056_v2  ;;  %v3110_v21 = vpop.f32.mrf.mxu0  ;;  %v3367_v17 = vpop.f32.mrf.mxu1 }
 0x4ad   : > { %4222 = vst [vmem:[%s6637_s8 + $0x118] sm:$0xff] %v3683_v37  ;;  %4286 = vst [vmem:[%s6637_s8 + $0x138] sm:$0xff] %v3685_v5  ;;  %v3686_v32 = vadd.f32 %v6624_v54, %v3536_v55  ;;  %v3537_v35 = vmul.f32 %v3110_v21, %v6059_v36  ;;  %v3539_v39 = vmul.f32 %v3367_v17, %v6062_v38  ;;  %v7452_v37 = vld [vmem:[#allocation9_spill] sm:$0xff]  ;;  %v7453_v55 = vld [vmem:[#allocation10_spill] sm:$0xff] }
 0x4ae   : > { %v3688_v34 = vadd.f32 %v6626_v27, %v3538_v9  ;;  %v3114_v15 = vpop.f32.mrf.mxu0  ;;  %v3371_v50 = vpop.f32.mrf.mxu1 }
 0x4af   : > { %3784 = vst [vmem:[%s6637_s8 + $0x140] sm:$0xff] %v3686_v32  ;;  %v3687_v41 = vadd.f32 %v6630_v46, %v3537_v35  ;;  %v3689_v2 = vadd.f32 %v6632_v31, %v3539_v39  ;;  %v3540_v18 = vmul.f32 %v3114_v15, %v6071_v45  ;;  %v3542_v12 = vmul.f32 %v3371_v50, %v6076_v13  ;;  %v7454_v35 = vld [vmem:[#allocation11_spill] sm:$0xff]  ;;  %v7455_v15 = vld [vmem:[#allocation12_spill] sm:$0xff] }
 0x4b0   : > { %4255 = vst [vmem:[%s6637_s8 + $0x160] sm:$0xff] %v3688_v34  ;;  %v3116_v62 = vpop.f32.mrf.mxu0  ;;  %v3373_v63 = vpop.f32.mrf.mxu1 }
 0x4b1   : > { %4223 = vst [vmem:[%s6637_s8 + $0x150] sm:$0xff] %v3687_v41  ;;  %4287 = vst [vmem:[%s6637_s8 + $0x170] sm:$0xff] %v3689_v2  ;;  %v3690_v36 = vadd.f32 %v6624_v54, %v3540_v18  ;;  %v3692_v38 = vadd.f32 %v6626_v27, %v3542_v12  ;;  %v3541_v44 = vmul.f32 %v3116_v62, %v7442_v52  ;;  %v7456_v62 = vld [vmem:[#allocation13_spill] sm:$0xff] }
 0x4b2   : > { %v3543_v11 = vmul.f32 %v3373_v63, %v7443_v25  ;;  %v3120_v51 = vpop.f32.mrf.mxu0  ;;  %v3377_v53 = vpop.f32.mrf.mxu1 }
 0x4b3   : > { %3785 = vst [vmem:[%s6637_s8 + $0x148] sm:$0xff] %v3690_v36  ;;  %4256 = vst [vmem:[%s6637_s8 + $0x168] sm:$0xff] %v3692_v38  ;;  %v3691_v45 = vadd.f32 %v6630_v46, %v3541_v44  ;;  %v3544_v8 = vmul.f32 %v3120_v51, %v7444_v4  ;;  %v3546_v22 = vmul.f32 %v3377_v53, %v7445_v20  ;;  %v7457_v36 = vld [vmem:[#allocation14_spill] sm:$0xff]  ;;  %v7458_v51 = vld [vmem:[#allocation15_spill] sm:$0xff] }
 0x4b4   : > { %v3693_v13 = vadd.f32 %v6632_v31, %v3543_v11  ;;  %v3122_v16 = vpop.f32.mrf.mxu0  ;;  %v3379_v57 = vpop.f32.mrf.mxu1 }
 0x4b5   : > { %4224 = vst [vmem:[%s6637_s8 + $0x158] sm:$0xff] %v3691_v45  ;;  %v3694_v61 = vadd.f32 %v6624_v54, %v3544_v8  ;;  %v3696_v10 = vadd.f32 %v6626_v27, %v3546_v22  ;;  %v3545_v19 = vmul.f32 %v3122_v16, %v7446_v29  ;;  %v3547_v60 = vmul.f32 %v3379_v57, %v7447_v58  ;;  %v7459_v45 = vld [vmem:[#allocation16_spill] sm:$0xff]  ;;  %v7460_v16 = vld [vmem:[#allocation17_spill] sm:$0xff] }
 0x4b6   : > { %4288 = vst [vmem:[%s6637_s8 + $0x178] sm:$0xff] %v3693_v13  ;;  %v3126_v3 = vpop.f32.mrf.mxu0  ;;  %v3383_v40 = vpop.f32.mrf.mxu1 }
 0x4b7   : > { %3786 = vst [vmem:[%s6637_s8 + $0x180] sm:$0xff] %v3694_v61  ;;  %4257 = vst [vmem:[%s6637_s8 + $0x1a0] sm:$0xff] %v3696_v10  ;;  %v3695_v24 = vadd.f32 %v6630_v46, %v3545_v19  ;;  %v3697_v26 = vadd.f32 %v6632_v31, %v3547_v60  ;;  %v3548_v48 = vmul.f32 %v3126_v3, %v7448_v23  ;;  %v7461_v61 = vld [vmem:[#allocation18_spill] sm:$0xff]  ;;  %v7462_v3 = vld [vmem:[#allocation19_spill] sm:$0xff] }
 0x4b8   : > { %v3550_v14 = vmul.f32 %v3383_v40, %v7449_v56  ;;  %v3128_v33 = vpop.f32.mrf.mxu0  ;;  %v3385_v6 = vpop.f32.mrf.mxu1 }
 0x4b9   : > { %4225 = vst [vmem:[%s6637_s8 + $0x190] sm:$0xff] %v3695_v24  ;;  %4289 = vst [vmem:[%s6637_s8 + $0x1b0] sm:$0xff] %v3697_v26  ;;  %v3698_v59 = vadd.f32 %v6624_v54, %v3548_v48  ;;  %v3549_v42 = vmul.f32 %v3128_v33, %v7450_v47  ;;  %v3551_v30 = vmul.f32 %v3385_v6, %v7451_v28  ;;  %v7463_v24 = vld [vmem:[#allocation20_spill] sm:$0xff]  ;;  %v7464_v33 = vld [vmem:[#allocation21_spill] sm:$0xff] }
 0x4ba   : > { %v3700_v1 = vadd.f32 %v6626_v27, %v3550_v14  ;;  %v3132_v0 = vpop.f32.mrf.mxu0  ;;  %v3389_v7 = vpop.f32.mrf.mxu1 }
 0x4bb   : > { %3787 = vst [vmem:[%s6637_s8 + $0x188] sm:$0xff] %v3698_v59  ;;  %v3699_v49 = vadd.f32 %v6630_v46, %v3549_v42  ;;  %v3701_v43 = vadd.f32 %v6632_v31, %v3551_v30  ;;  %v3552_v5 = vmul.f32 %v3132_v0, %v7452_v37  ;;  %v3554_v9 = vmul.f32 %v3389_v7, %v7453_v55  ;;  %v7465_v59 = vld [vmem:[#allocation22_spill] sm:$0xff]  ;;  %v7466_v0 = vld [vmem:[#allocation23_spill] sm:$0xff] }
 0x4bc   : > { %4258 = vst [vmem:[%s6637_s8 + $0x1a8] sm:$0xff] %v3700_v1  ;;  %v3134_v21 = vpop.f32.mrf.mxu0  ;;  %v3391_v17 = vpop.f32.mrf.mxu1 }
 0x4bd   : > { %4226 = vst [vmem:[%s6637_s8 + $0x198] sm:$0xff] %v3699_v49  ;;  %4290 = vst [vmem:[%s6637_s8 + $0x1b8] sm:$0xff] %v3701_v43  ;;  %v3702_v32 = vadd.f32 %v6624_v54, %v3552_v5  ;;  %v3704_v34 = vadd.f32 %v6626_v27, %v3554_v9  ;;  %v3553_v39 = vmul.f32 %v3134_v21, %v7454_v35  ;;  %v7467_v49 = vld [vmem:[#allocation24_spill] sm:$0xff]  ;;  %v7468_v21 = vld [vmem:[#allocation25_spill] sm:$0xff] }
 0x4be   : > { %v3555_v50 = vmul.f32 %v3391_v17, %v7455_v15  ;;  %v3138_v41 = vpop.f32.mrf.mxu0  ;;  %v3395_v2 = vpop.f32.mrf.mxu1 }
 0x4bf   : > { %3788 = vst [vmem:[%s6637_s8 + $0x1c0] sm:$0xff] %v3702_v32  ;;  %4259 = vst [vmem:[%s6637_s8 + $0x1e0] sm:$0xff] %v3704_v34  ;;  %v3703_v18 = vadd.f32 %v6630_v46, %v3553_v39  ;;  %v3556_v63 = vmul.f32 %v3138_v41, %v7456_v62  ;;  %v3558_v38 = vmul.f32 %v3395_v2, %v7457_v36  ;;  %v7469_v32 = vld [vmem:[#allocation26_spill] sm:$0xff]  ;;  %v7470_v41 = vld [vmem:[#allocation27_spill] sm:$0xff] }
 0x4c0   : > { %v3705_v12 = vadd.f32 %v6632_v31, %v3555_v50  ;;  %v3140_v52 = vpop.f32.mrf.mxu0  ;;  %v3397_v44 = vpop.f32.mrf.mxu1 }
 0x4c1   : > { %4227 = vst [vmem:[%s6637_s8 + $0x1d0] sm:$0xff] %v3703_v18  ;;  %v3706_v25 = vadd.f32 %v6624_v54, %v3556_v63  ;;  %v3708_v11 = vadd.f32 %v6626_v27, %v3558_v38  ;;  %v3557_v53 = vmul.f32 %v3140_v52, %v7458_v51  ;;  %v3559_v13 = vmul.f32 %v3397_v44, %v7459_v45  ;;  %v7471_v18 = vld [vmem:[#allocation28_spill] sm:$0xff]  ;;  %v7472_v52 = vld [vmem:[#allocation29_spill] sm:$0xff] }
 0x4c2   : > { %4291 = vst [vmem:[%s6637_s8 + $0x1f0] sm:$0xff] %v3705_v12  ;;  %v3144_v4 = vpop.f32.mrf.mxu0  ;;  %v3401_v8 = vpop.f32.mrf.mxu1 }
 0x4c3   : > { %3789 = vst [vmem:[%s6637_s8 + $0x1c8] sm:$0xff] %v3706_v25  ;;  %4260 = vst [vmem:[%s6637_s8 + $0x1e8] sm:$0xff] %v3708_v11  ;;  %v3707_v20 = vadd.f32 %v6630_v46, %v3557_v53  ;;  %v3709_v22 = vadd.f32 %v6632_v31, %v3559_v13  ;;  %v3560_v57 = vmul.f32 %v3144_v4, %v7460_v16  ;;  %v7473_v25 = vld [vmem:[#allocation30_spill] sm:$0xff]  ;;  %v7474_v4 = vld [vmem:[#allocation31_spill] sm:$0xff] }
 0x4c4   : > { %v3562_v10 = vmul.f32 %v3401_v8, %v7461_v61  ;;  %v3146_v29 = vpop.f32.mrf.mxu0  ;;  %v3403_v19 = vpop.f32.mrf.mxu1 }
 0x4c5   : > { %4228 = vst [vmem:[%s6637_s8 + $0x1d8] sm:$0xff] %v3707_v20  ;;  %4292 = vst [vmem:[%s6637_s8 + $0x1f8] sm:$0xff] %v3709_v22  ;;  %v3710_v58 = vadd.f32 %v6624_v54, %v3560_v57  ;;  %v3561_v40 = vmul.f32 %v3146_v29, %v7462_v3  ;;  %v3563_v26 = vmul.f32 %v3403_v19, %v7463_v24  ;;  %v7475_v20 = vld [vmem:[#allocation32_spill] sm:$0xff]  ;;  %v7476_v29 = vld [vmem:[#allocation33_spill] sm:$0xff] }
 0x4c6   : > { %v3712_v60 = vadd.f32 %v6626_v27, %v3562_v10  ;;  %v3150_v23 = vpop.f32.mrf.mxu0  ;;  %v3407_v48 = vpop.f32.mrf.mxu1 }
 0x4c7   : > { %3790 = vst [vmem:[%s6637_s8 + $0x200] sm:$0xff] %v3710_v58  ;;  %v3711_v56 = vadd.f32 %v6630_v46, %v3561_v40  ;;  %v3713_v14 = vadd.f32 %v6632_v31, %v3563_v26  ;;  %v3564_v6 = vmul.f32 %v3150_v23, %v7464_v33  ;;  %v3566_v1 = vmul.f32 %v3407_v48, %v7465_v59  ;;  %v7477_v58 = vld [vmem:[#allocation34_spill] sm:$0xff]  ;;  %v7478_v23 = vld [vmem:[#allocation35_spill] sm:$0xff] }
 0x4c8   : > { %4261 = vst [vmem:[%s6637_s8 + $0x220] sm:$0xff] %v3712_v60  ;;  %v3152_v47 = vpop.f32.mrf.mxu0  ;;  %v3409_v42 = vpop.f32.mrf.mxu1 }
 0x4c9   : > { %4229 = vst [vmem:[%s6637_s8 + $0x210] sm:$0xff] %v3711_v56  ;;  %4293 = vst [vmem:[%s6637_s8 + $0x230] sm:$0xff] %v3713_v14  ;;  %v3714_v28 = vadd.f32 %v6624_v54, %v3564_v6  ;;  %v3716_v30 = vadd.f32 %v6626_v27, %v3566_v1  ;;  %v3565_v7 = vmul.f32 %v3152_v47, %v7466_v0  ;;  %v7479_v56 = vld [vmem:[#allocation36_spill] sm:$0xff]  ;;  %v7480_v47 = vld [vmem:[#allocation37_spill] sm:$0xff] }
 0x4ca   : > { %v3567_v43 = vmul.f32 %v3409_v42, %v7467_v49  ;;  %v3156_v37 = vpop.f32.mrf.mxu0  ;;  %v3413_v5 = vpop.f32.mrf.mxu1 }
 0x4cb   : > { %3791 = vst [vmem:[%s6637_s8 + $0x208] sm:$0xff] %v3714_v28  ;;  %4262 = vst [vmem:[%s6637_s8 + $0x228] sm:$0xff] %v3716_v30  ;;  %v3715_v55 = vadd.f32 %v6630_v46, %v3565_v7  ;;  %v3568_v17 = vmul.f32 %v3156_v37, %v7468_v21  ;;  %v3570_v34 = vmul.f32 %v3413_v5, %v7469_v32  ;;  %v7481_v28 = vld [vmem:[#allocation38_spill] sm:$0xff]  ;;  %v7482_v37 = vld [vmem:[#allocation39_spill] sm:$0xff] }
 0x4cc   : > { %v3717_v9 = vadd.f32 %v6632_v31, %v3567_v43  ;;  %v3158_v35 = vpop.f32.mrf.mxu0  ;;  %v3415_v39 = vpop.f32.mrf.mxu1 }
 0x4cd   : > { %4230 = vst [vmem:[%s6637_s8 + $0x218] sm:$0xff] %v3715_v55  ;;  %v3718_v15 = vadd.f32 %v6624_v54, %v3568_v17  ;;  %v3720_v50 = vadd.f32 %v6626_v27, %v3570_v34  ;;  %v3569_v2 = vmul.f32 %v3158_v35, %v7470_v41  ;;  %v3571_v12 = vmul.f32 %v3415_v39, %v7471_v18  ;;  %v7483_v55 = vld [vmem:[#allocation40_spill] sm:$0xff]  ;;  %v7484_v35 = vld [vmem:[#allocation41_spill] sm:$0xff] }
 0x4ce   : > { %4294 = vst [vmem:[%s6637_s8 + $0x238] sm:$0xff] %v3717_v9  ;;  %v3162_v62 = vpop.f32.mrf.mxu0  ;;  %v3419_v63 = vpop.f32.mrf.mxu1 }
 0x4cf   : > { %3792 = vst [vmem:[%s6637_s8 + $0x240] sm:$0xff] %v3718_v15  ;;  %4263 = vst [vmem:[%s6637_s8 + $0x260] sm:$0xff] %v3720_v50  ;;  %v3719_v36 = vadd.f32 %v6630_v46, %v3569_v2  ;;  %v3721_v38 = vadd.f32 %v6632_v31, %v3571_v12  ;;  %v3572_v44 = vmul.f32 %v3162_v62, %v7472_v52  ;;  %v7485_v15 = vld [vmem:[#allocation42_spill] sm:$0xff]  ;;  %v7486_v62 = vld [vmem:[#allocation43_spill] sm:$0xff] }
 0x4d0   : > { %v3574_v11 = vmul.f32 %v3419_v63, %v7473_v25  ;;  %v3164_v51 = vpop.f32.mrf.mxu0  ;;  %v3421_v53 = vpop.f32.mrf.mxu1 }
 0x4d1   : > { %4231 = vst [vmem:[%s6637_s8 + $0x250] sm:$0xff] %v3719_v36  ;;  %4295 = vst [vmem:[%s6637_s8 + $0x270] sm:$0xff] %v3721_v38  ;;  %v3722_v45 = vadd.f32 %v6624_v54, %v3572_v44  ;;  %v3573_v8 = vmul.f32 %v3164_v51, %v7474_v4  ;;  %v3575_v22 = vmul.f32 %v3421_v53, %v7475_v20  ;;  %v7487_v36 = vld [vmem:[#allocation44_spill] sm:$0xff]  ;;  %v7488_v51 = vld [vmem:[#allocation45_spill] sm:$0xff] }
 0x4d2   : > { %v3724_v13 = vadd.f32 %v6626_v27, %v3574_v11  ;;  %v3168_v16 = vpop.f32.mrf.mxu0  ;;  %v3425_v57 = vpop.f32.mrf.mxu1 }
 0x4d3   : > { %3793 = vst [vmem:[%s6637_s8 + $0x248] sm:$0xff] %v3722_v45  ;;  %v3723_v61 = vadd.f32 %v6630_v46, %v3573_v8  ;;  %v3725_v10 = vadd.f32 %v6632_v31, %v3575_v22  ;;  %v3576_v19 = vmul.f32 %v3168_v16, %v7476_v29  ;;  %v3578_v60 = vmul.f32 %v3425_v57, %v7477_v58  ;;  %v7489_v45 = vld [vmem:[#allocation46_spill] sm:$0xff]  ;;  %v7490_v16 = vld [vmem:[#allocation47_spill] sm:$0xff] }
 0x4d4   : > { %4264 = vst [vmem:[%s6637_s8 + $0x268] sm:$0xff] %v3724_v13  ;;  %v3170_v3 = vpop.f32.mrf.mxu0  ;;  %v3427_v40 = vpop.f32.mrf.mxu1 }
 0x4d5   : > { %4232 = vst [vmem:[%s6637_s8 + $0x258] sm:$0xff] %v3723_v61  ;;  %4296 = vst [vmem:[%s6637_s8 + $0x278] sm:$0xff] %v3725_v10  ;;  %v3726_v24 = vadd.f32 %v6624_v54, %v3576_v19  ;;  %v3728_v26 = vadd.f32 %v6626_v27, %v3578_v60  ;;  %v3577_v48 = vmul.f32 %v3170_v3, %v7478_v23  ;;  %v7491_v61 = vld [vmem:[#allocation48_spill] sm:$0xff]  ;;  %v7492_v3 = vld [vmem:[#allocation49_spill] sm:$0xff] }
 0x4d6   : > { %v3579_v14 = vmul.f32 %v3427_v40, %v7479_v56  ;;  %v3174_v33 = vpop.f32.mrf.mxu0  ;;  %v3431_v6 = vpop.f32.mrf.mxu1 }
 0x4d7   : > { %3794 = vst [vmem:[%s6637_s8 + $0x280] sm:$0xff] %v3726_v24  ;;  %4265 = vst [vmem:[%s6637_s8 + $0x2a0] sm:$0xff] %v3728_v26  ;;  %v3727_v59 = vadd.f32 %v6630_v46, %v3577_v48  ;;  %v3580_v42 = vmul.f32 %v3174_v33, %v7480_v47  ;;  %v3582_v30 = vmul.f32 %v3431_v6, %v7481_v28  ;;  %v7493_v24 = vld [vmem:[#allocation50_spill] sm:$0xff]  ;;  %v7494_v33 = vld [vmem:[#allocation51_spill] sm:$0xff] }
 0x4d8   : > { %v3729_v1 = vadd.f32 %v6632_v31, %v3579_v14  ;;  %v3176_v0 = vpop.f32.mrf.mxu0  ;;  %v3433_v7 = vpop.f32.mrf.mxu1 }
 0x4d9   : > { %4233 = vst [vmem:[%s6637_s8 + $0x290] sm:$0xff] %v3727_v59  ;;  %v3730_v49 = vadd.f32 %v6624_v54, %v3580_v42  ;;  %v3732_v43 = vadd.f32 %v6626_v27, %v3582_v30  ;;  %v3581_v5 = vmul.f32 %v3176_v0, %v7482_v37  ;;  %v3583_v9 = vmul.f32 %v3433_v7, %v7483_v55  ;;  %v7495_v59 = vld [vmem:[#allocation52_spill] sm:$0xff]  ;;  %v7496_v0 = vld [vmem:[#allocation53_spill] sm:$0xff] }
 0x4da   : > { %4297 = vst [vmem:[%s6637_s8 + $0x2b0] sm:$0xff] %v3729_v1  ;;  %v3180_v21 = vpop.f32.mrf.mxu0  ;;  %v3437_v17 = vpop.f32.mrf.mxu1 }
 0x4db   : > { %3795 = vst [vmem:[%s6637_s8 + $0x288] sm:$0xff] %v3730_v49  ;;  %4266 = vst [vmem:[%s6637_s8 + $0x2a8] sm:$0xff] %v3732_v43  ;;  %v3731_v32 = vadd.f32 %v6630_v46, %v3581_v5  ;;  %v3733_v34 = vadd.f32 %v6632_v31, %v3583_v9  ;;  %v3584_v39 = vmul.f32 %v3180_v21, %v7484_v35  ;;  %v7497_v49 = vld [vmem:[#allocation54_spill] sm:$0xff]  ;;  %v7498_v21 = vld [vmem:[#allocation55_spill] sm:$0xff] }
 0x4dc   : > { %v3586_v50 = vmul.f32 %v3437_v17, %v7485_v15  ;;  %v3182_v41 = vpop.f32.mrf.mxu0  ;;  %v3439_v2 = vpop.f32.mrf.mxu1 }
 0x4dd   : > { %4234 = vst [vmem:[%s6637_s8 + $0x298] sm:$0xff] %v3731_v32  ;;  %4298 = vst [vmem:[%s6637_s8 + $0x2b8] sm:$0xff] %v3733_v34  ;;  %v3734_v18 = vadd.f32 %v6624_v54, %v3584_v39  ;;  %v3585_v63 = vmul.f32 %v3182_v41, %v7486_v62  ;;  %v3587_v38 = vmul.f32 %v3439_v2, %v7487_v36  ;;  %v7499_v32 = vld [vmem:[#allocation56_spill] sm:$0xff]  ;;  %v7500_v41 = vld [vmem:[#allocation57_spill] sm:$0xff] }
 0x4de   : > { %v3736_v12 = vadd.f32 %v6626_v27, %v3586_v50  ;;  %v3186_v52 = vpop.f32.mrf.mxu0  ;;  %v3443_v44 = vpop.f32.mrf.mxu1 }
 0x4df   : > { %3796 = vst [vmem:[%s6637_s8 + $0x2c0] sm:$0xff] %v3734_v18  ;;  %v3735_v25 = vadd.f32 %v6630_v46, %v3585_v63  ;;  %v3737_v11 = vadd.f32 %v6632_v31, %v3587_v38  ;;  %v3588_v53 = vmul.f32 %v3186_v52, %v7488_v51  ;;  %v3590_v13 = vmul.f32 %v3443_v44, %v7489_v45  ;;  %v7501_v18 = vld [vmem:[#allocation58_spill] sm:$0xff]  ;;  %v7502_v52 = vld [vmem:[#allocation59_spill] sm:$0xff] }
 0x4e0   : > { %4267 = vst [vmem:[%s6637_s8 + $0x2e0] sm:$0xff] %v3736_v12  ;;  %v3188_v4 = vpop.f32.mrf.mxu0  ;;  %v3445_v8 = vpop.f32.mrf.mxu1 }
 0x4e1   : > { %4235 = vst [vmem:[%s6637_s8 + $0x2d0] sm:$0xff] %v3735_v25  ;;  %4299 = vst [vmem:[%s6637_s8 + $0x2f0] sm:$0xff] %v3737_v11  ;;  %v3738_v20 = vadd.f32 %v6624_v54, %v3588_v53  ;;  %v3740_v22 = vadd.f32 %v6626_v27, %v3590_v13  ;;  %v3589_v57 = vmul.f32 %v3188_v4, %v7490_v16  ;;  %v7503_v25 = vld [vmem:[#allocation60_spill] sm:$0xff]  ;;  %v7504_v4 = vld [vmem:[#allocation61_spill] sm:$0xff] }
 0x4e2   : > { %v3591_v10 = vmul.f32 %v3445_v8, %v7491_v61  ;;  %v3192_v29 = vpop.f32.mrf.mxu0  ;;  %v3449_v19 = vpop.f32.mrf.mxu1 }
 0x4e3   : > { %3797 = vst [vmem:[%s6637_s8 + $0x2c8] sm:$0xff] %v3738_v20  ;;  %4268 = vst [vmem:[%s6637_s8 + $0x2e8] sm:$0xff] %v3740_v22  ;;  %v3739_v58 = vadd.f32 %v6630_v46, %v3589_v57  ;;  %v3592_v40 = vmul.f32 %v3192_v29, %v7492_v3  ;;  %v3594_v26 = vmul.f32 %v3449_v19, %v7493_v24  ;;  %v7505_v20 = vld [vmem:[#allocation62_spill] sm:$0xff]  ;;  %v7506_v29 = vld [vmem:[#allocation63_spill] sm:$0xff] }
 0x4e4   : > { %v3741_v60 = vadd.f32 %v6632_v31, %v3591_v10  ;;  %v3194_v23 = vpop.f32.mrf.mxu0  ;;  %v3451_v48 = vpop.f32.mrf.mxu1 }
 0x4e5   : > { %4236 = vst [vmem:[%s6637_s8 + $0x2d8] sm:$0xff] %v3739_v58  ;;  %v3742_v56 = vadd.f32 %v6624_v54, %v3592_v40  ;;  %v3744_v14 = vadd.f32 %v6626_v27, %v3594_v26  ;;  %v3593_v6 = vmul.f32 %v3194_v23, %v7494_v33  ;;  %v3595_v1 = vmul.f32 %v3451_v48, %v7495_v59  ;;  %v7507_v58 = vld [vmem:[#allocation64_spill] sm:$0xff]  ;;  %v7508_v23 = vld [vmem:[#allocation65_spill] sm:$0xff] }
 0x4e6   : > { %4300 = vst [vmem:[%s6637_s8 + $0x2f8] sm:$0xff] %v3741_v60  ;;  %v3198_v47 = vpop.f32.mrf.mxu0  ;;  %v3455_v42 = vpop.f32.mrf.mxu1 }
 0x4e7   : > { %3798 = vst [vmem:[%s6637_s8 + $0x300] sm:$0xff] %v3742_v56  ;;  %4269 = vst [vmem:[%s6637_s8 + $0x320] sm:$0xff] %v3744_v14  ;;  %v3743_v28 = vadd.f32 %v6630_v46, %v3593_v6  ;;  %v3745_v30 = vadd.f32 %v6632_v31, %v3595_v1  ;;  %v3596_v7 = vmul.f32 %v3198_v47, %v7496_v0  ;;  %v7509_v56 = vld [vmem:[#allocation66_spill] sm:$0xff]  ;;  %v7510_v47 = vld [vmem:[#allocation67_spill] sm:$0xff] }
 0x4e8   : > { %v3598_v43 = vmul.f32 %v3455_v42, %v7497_v49  ;;  %v3200_v37 = vpop.f32.mrf.mxu0  ;;  %v3457_v5 = vpop.f32.mrf.mxu1 }
 0x4e9   : > { %4237 = vst [vmem:[%s6637_s8 + $0x310] sm:$0xff] %v3743_v28  ;;  %4301 = vst [vmem:[%s6637_s8 + $0x330] sm:$0xff] %v3745_v30  ;;  %v3746_v55 = vadd.f32 %v6624_v54, %v3596_v7  ;;  %v3597_v17 = vmul.f32 %v3200_v37, %v7498_v21  ;;  %v3599_v34 = vmul.f32 %v3457_v5, %v7499_v32  ;;  %v7511_v28 = vld [vmem:[#allocation68_spill] sm:$0xff]  ;;  %v7512_v37 = vld [vmem:[#allocation69_spill] sm:$0xff] }
 0x4ea   : > { %v3748_v9 = vadd.f32 %v6626_v27, %v3598_v43  ;;  %v3204_v35 = vpop.f32.mrf.mxu0  ;;  %v3461_v39 = vpop.f32.mrf.mxu1 }
 0x4eb   : > { %3799 = vst [vmem:[%s6637_s8 + $0x308] sm:$0xff] %v3746_v55  ;;  %v3747_v15 = vadd.f32 %v6630_v46, %v3597_v17  ;;  %v3749_v50 = vadd.f32 %v6632_v31, %v3599_v34  ;;  %v3600_v2 = vmul.f32 %v3204_v35, %v7500_v41  ;;  %v3602_v12 = vmul.f32 %v3461_v39, %v7501_v18  ;;  %v7513_v55 = vld [vmem:[#allocation70_spill] sm:$0xff]  ;;  %v7514_v35 = vld [vmem:[#allocation71_spill] sm:$0xff] }
 0x4ec   : > { %4270 = vst [vmem:[%s6637_s8 + $0x328] sm:$0xff] %v3748_v9  ;;  %v3206_v62 = vpop.f32.mrf.mxu0  ;;  %v3463_v63 = vpop.f32.mrf.mxu1 }
 0x4ed   : > { %4238 = vst [vmem:[%s6637_s8 + $0x318] sm:$0xff] %v3747_v15  ;;  %4302 = vst [vmem:[%s6637_s8 + $0x338] sm:$0xff] %v3749_v50  ;;  %v3750_v36 = vadd.f32 %v6624_v54, %v3600_v2  ;;  %v3752_v38 = vadd.f32 %v6626_v27, %v3602_v12  ;;  %v3601_v44 = vmul.f32 %v3206_v62, %v7502_v52  ;;  %v7515_v15 = vld [vmem:[#allocation72_spill] sm:$0xff]  ;;  %v7516_v62 = vld [vmem:[#allocation73_spill] sm:$0xff] }
 0x4ee   : > { %v3603_v11 = vmul.f32 %v3463_v63, %v7503_v25  ;;  %v3210_v51 = vpop.f32.mrf.mxu0  ;;  %v3467_v53 = vpop.f32.mrf.mxu1 }
 0x4ef   : > { %3800 = vst [vmem:[%s6637_s8 + $0x340] sm:$0xff] %v3750_v36  ;;  %4271 = vst [vmem:[%s6637_s8 + $0x360] sm:$0xff] %v3752_v38  ;;  %v3751_v45 = vadd.f32 %v6630_v46, %v3601_v44  ;;  %v3604_v8 = vmul.f32 %v3210_v51, %v7504_v4  ;;  %v3606_v22 = vmul.f32 %v3467_v53, %v7505_v20  ;;  %v7517_v36 = vld [vmem:[#allocation74_spill] sm:$0xff]  ;;  %v7518_v51 = vld [vmem:[#allocation75_spill] sm:$0xff] }
 0x4f0   : > { %v3753_v13 = vadd.f32 %v6632_v31, %v3603_v11  ;;  %v3212_v16 = vpop.f32.mrf.mxu0  ;;  %v3469_v57 = vpop.f32.mrf.mxu1 }
 0x4f1   : > { %4239 = vst [vmem:[%s6637_s8 + $0x350] sm:$0xff] %v3751_v45  ;;  %v3754_v61 = vadd.f32 %v6624_v54, %v3604_v8  ;;  %v3756_v10 = vadd.f32 %v6626_v27, %v3606_v22  ;;  %v3605_v19 = vmul.f32 %v3212_v16, %v7506_v29  ;;  %v3607_v60 = vmul.f32 %v3469_v57, %v7507_v58  ;;  %v7519_v45 = vld [vmem:[#allocation76_spill] sm:$0xff]  ;;  %v7520_v16 = vld [vmem:[#allocation77_spill] sm:$0xff] }
 0x4f2   : > { %4303 = vst [vmem:[%s6637_s8 + $0x370] sm:$0xff] %v3753_v13  ;;  %v3216_v3 = vpop.f32.mrf.mxu0  ;;  %v3473_v40 = vpop.f32.mrf.mxu1 }
 0x4f3   : > { %3801 = vst [vmem:[%s6637_s8 + $0x348] sm:$0xff] %v3754_v61  ;;  %4272 = vst [vmem:[%s6637_s8 + $0x368] sm:$0xff] %v3756_v10  ;;  %v3755_v24 = vadd.f32 %v6630_v46, %v3605_v19  ;;  %v3757_v26 = vadd.f32 %v6632_v31, %v3607_v60  ;;  %v3608_v48 = vmul.f32 %v3216_v3, %v7508_v23  ;;  %v7521_v61 = vld [vmem:[#allocation78_spill] sm:$0xff]  ;;  %v7522_v3 = vld [vmem:[#allocation79_spill] sm:$0xff] }
 0x4f4   : > { %v3610_v14 = vmul.f32 %v3473_v40, %v7509_v56  ;;  %v3218_v33 = vpop.f32.mrf.mxu0  ;;  %v3475_v6 = vpop.f32.mrf.mxu1 }
 0x4f5   : > { %4240 = vst [vmem:[%s6637_s8 + $0x358] sm:$0xff] %v3755_v24  ;;  %4304 = vst [vmem:[%s6637_s8 + $0x378] sm:$0xff] %v3757_v26  ;;  %v3758_v59 = vadd.f32 %v6624_v54, %v3608_v48  ;;  %v3609_v42 = vmul.f32 %v3218_v33, %v7510_v47  ;;  %v3611_v30 = vmul.f32 %v3475_v6, %v7511_v28  ;;  %v7523_v24 = vld [vmem:[#allocation80_spill] sm:$0xff] }
 0x4f6   : > { %v3760_v1 = vadd.f32 %v6626_v27, %v3610_v14  ;;  %v3222_v0 = vpop.f32.mrf.mxu0  ;;  %v3479_v7 = vpop.f32.mrf.mxu1 }
 0x4f7   : > { %3802 = vst [vmem:[%s6637_s8 + $0x380] sm:$0xff] %v3758_v59  ;;  %v3759_v49 = vadd.f32 %v6630_v46, %v3609_v42  ;;  %v3761_v43 = vadd.f32 %v6632_v31, %v3611_v30  ;;  %v3612_v5 = vmul.f32 %v3222_v0, %v7512_v37  ;;  %v3614_v9 = vmul.f32 %v3479_v7, %v7513_v55 }
 0x4f8   : > { %4273 = vst [vmem:[%s6637_s8 + $0x3a0] sm:$0xff] %v3760_v1  ;;  %v3224_v21 = vpop.f32.mrf.mxu0  ;;  %v3481_v17 = vpop.f32.mrf.mxu1 }
 0x4f9   : > { %4241 = vst [vmem:[%s6637_s8 + $0x390] sm:$0xff] %v3759_v49  ;;  %4305 = vst [vmem:[%s6637_s8 + $0x3b0] sm:$0xff] %v3761_v43  ;;  %v3762_v32 = vadd.f32 %v6624_v54, %v3612_v5  ;;  %v3764_v34 = vadd.f32 %v6626_v27, %v3614_v9  ;;  %v3613_v39 = vmul.f32 %v3224_v21, %v7514_v35 }
 0x4fa   : > { %v3615_v50 = vmul.f32 %v3481_v17, %v7515_v15  ;;  %v3228_v41 = vpop.f32.mrf.mxu0  ;;  %v3485_v2 = vpop.f32.mrf.mxu1 }
 0x4fb   : > { %3803 = vst [vmem:[%s6637_s8 + $0x388] sm:$0xff] %v3762_v32  ;;  %4274 = vst [vmem:[%s6637_s8 + $0x3a8] sm:$0xff] %v3764_v34  ;;  %v3763_v18 = vadd.f32 %v6630_v46, %v3613_v39  ;;  %v3616_v63 = vmul.f32 %v3228_v41, %v7516_v62  ;;  %v3618_v38 = vmul.f32 %v3485_v2, %v7517_v36 }
 0x4fc   : > { %v3765_v12 = vadd.f32 %v6632_v31, %v3615_v50  ;;  %v3230_v52 = vpop.f32.mrf.mxu0  ;;  %v3487_v44 = vpop.f32.mrf.mxu1 }
 0x4fd   : > { %4242 = vst [vmem:[%s6637_s8 + $0x398] sm:$0xff] %v3763_v18  ;;  %v3766_v25 = vadd.f32 %v6624_v54, %v3616_v63  ;;  %v3768_v11 = vadd.f32 %v6626_v27, %v3618_v38  ;;  %v3617_v53 = vmul.f32 %v3230_v52, %v7518_v51  ;;  %v3619_v13 = vmul.f32 %v3487_v44, %v7519_v45 }
 0x4fe   : > { %4306 = vst [vmem:[%s6637_s8 + $0x3b8] sm:$0xff] %v3765_v12  ;;  %v3234_v4 = vpop.f32.mrf.mxu0  ;;  %v3491_v8 = vpop.f32.mrf.mxu1 }
 0x4ff   : > { %3804 = vst [vmem:[%s6637_s8 + $0x3c0] sm:$0xff] %v3766_v25  ;;  %4275 = vst [vmem:[%s6637_s8 + $0x3e0] sm:$0xff] %v3768_v11  ;;  %v3767_v20 = vadd.f32 %v6630_v46, %v3617_v53  ;;  %v3769_v22 = vadd.f32 %v6632_v31, %v3619_v13  ;;  %v3620_v57 = vmul.f32 %v3234_v4, %v7520_v16 }
 0x500   : > { %v3622_v10 = vmul.f32 %v3491_v8, %v7521_v61  ;;  %v3236_v29 = vpop.f32.mrf.mxu0  ;;  %v3493_v19 = vpop.f32.mrf.mxu1 }
 0x501   : > { %4243 = vst [vmem:[%s6637_s8 + $0x3d0] sm:$0xff] %v3767_v20  ;;  %4307 = vst [vmem:[%s6637_s8 + $0x3f0] sm:$0xff] %v3769_v22  ;;  %v3770_v58 = vadd.f32 %v6624_v54, %v3620_v57  ;;  %v3621_v40 = vmul.f32 %v3236_v29, %v7522_v3  ;;  %v3623_v26 = vmul.f32 %v3493_v19, %v7523_v24 }
 0x502   : > { %v3772_v60 = vadd.f32 %v6626_v27, %v3622_v10 }
 0x503   : > { %3805 = vst [vmem:[%s6637_s8 + $0x3c8] sm:$0xff] %v3770_v58  ;;  %v3771_v23 = vadd.f32 %v6630_v46, %v3621_v40  ;;  %v3773_v48 = vadd.f32 %v6632_v31, %v3623_v26 }
 0x504   : > { %4276 = vst [vmem:[%s6637_s8 + $0x3e8] sm:$0xff] %v3772_v60 }
 0x505   : > { %4244 = vst [vmem:[%s6637_s8 + $0x3d8] sm:$0xff] %v3771_v23  ;;  %4308 = vst [vmem:[%s6637_s8 + $0x3f8] sm:$0xff] %v3773_v48 }
 0x506 PF: > { %s17_s23 = sadd.s32 1, %s4531_s23   ;;  %s7524_s21 = smov %s4527_s22 }
 0x507   : > { %p14_p2 = scmp.ge.s32.totalorder %s17_s23, 4   ;;  %s7525_s22 = smov %s7527_s25 }
 0x509   :  { %16 = sbr.rel (!%p14_p2) target bundleno = 2 (0x2), region = 82 }
 0x50e   :  { %3937 = vsyncpa [#allocation3], 1 }
 0x50f   :  { %3939 = vsyncpa [#allocation3 + $0x1], 1 }

</bundles_post_ra>
